<compile_context>
chip_gen: v6e
topology: v6e:2x2x1
jax: 0.10.0
libtpu: 0.0.40
codegen_flags: <defaults>
</compile_context>

<pallas_src>
import math

import jax
import jax.numpy as jnp
from jax.experimental import pallas as pl
from jax.experimental.pallas import tpu as pltpu


# Taylor coefficients of cos(pi*r) as a polynomial in t = r**2 for |r| <= 0.5
# (i.e. |pi*r| <= pi/2).  Degree 12 in r: truncation error < 7e-9, well below
# f32 rounding noise.
_COS_PI_R_COEFFS = tuple(
    float((-1) ** k * math.pi ** (2 * k) / math.factorial(2 * k)) for k in range(7)
)


def _cosine_cutoff_kernel(x_ref, o_ref):
    """y = 0.5*(1 + cos(pi*x)) computed as cos(pi*r)^2, r = x/2 - nearest_int(x/2).

    Compute is f32 even for bf16/f16 I/O; cast back only at the store.
    """
    x = x_ref[...].astype(jnp.float32)
    u = x * 0.5                      # exact (power-of-two scale)
    r = u - jnp.floor(u + 0.5)       # r in [-0.5, 0.5]; subtraction exact (Sterbenz)
    t = r * r
    c = jnp.float32(_COS_PI_R_COEFFS[-1])
    for a in _COS_PI_R_COEFFS[-2::-1]:   # unrolled Horner: 6 mul+add
        c = c * t + jnp.float32(a)
    # 0.5*(1 + cos(2*pi*r)) == cos(pi*r)^2
    o_ref[...] = (c * c).astype(o_ref.dtype)
    # TODO(synk): upstream schnetpack also applies a (x < 1) cutoff mask; the given
    # forward does not, so it is intentionally omitted here to keep its semantics.


def _cosine_cutoff_jax(dist):
    """Plain-XLA fallback (small or ragged inputs)."""
    x = dist.astype(jnp.float32)
    return (0.5 * (jnp.cos(x * jnp.pi) + 1.0)).astype(dist.dtype)


def _round_up(x, m):
    return ((x + m - 1) // m) * m


def cosine_cutoff(dist, *, min_pallas_elems=64 * 1024,
                  target_block_bytes=4 * 1024 * 1024,
                  donate_input=False):
    """Behler cosine cutoff, elementwise, via a Pallas TPU kernel.

    Accepts any shape/float dtype; preserves shape and dtype.
    Set donate_input=True only if the caller can donate `dist`'s buffer.
    """
    orig_shape = dist.shape
    orig_dtype = dist.dtype
    n = int(math.prod(orig_shape)) if orig_shape else 1

    # Small inputs: kernel launch + tiling overhead dwarfs the math.
    if n < min_pallas_elems:
        return _cosine_cutoff_jax(dist)

    flat = dist.reshape(-1)  # metadata-only for contiguous arrays

    # Lane-dense column count (multiple of 128) dividing n exactly (no pad/slice
    # HBM passes).  Prefer wide columns, but only if rows >= 16 so the grid can
    # hold >= 2 row-blocks of >= 8 rows (v7x two-TensorCore sharding).
    cols = 0
    for c in (2048, 1024, 512, 256, 128):
        if n % c == 0 and (n // c) >= 16:
            cols = c
            break
    if cols == 0:
        for c in (2048, 1024, 512, 256, 128):
            if n % c == 0:
                cols = c
                break
    if cols == 0:
        # Ragged size (not a multiple of 128): pad+slice would add extra full HBM
        # passes to a bandwidth-bound op, so plain XLA wins here.
        return _cosine_cutoff_jax(dist)

    rows = n // cols
    x2d = flat.reshape(rows, cols)

    # Block-row count: size off the f32-equivalent footprint (kernel upcasts to
    # f32), target ~4 MiB per block, and cap so the "parallel" grid has >= 4
    # (>= 2 for small row counts) near-equal programs for even 2-TC balance.
    if rows <= 8:
        tm = rows                        # block equals full row extent (allowed)
    elif rows < 16:
        tm = 8
    else:
        eff_itemsize = max(jnp.dtype(orig_dtype).itemsize, 4)
        tm_cap = max(8, (target_block_bytes // (cols * eff_itemsize)) // 8 * 8)
        min_programs = 4 if rows >= 32 else 2
        tm_bal = max(8, (rows // min_programs) // 8 * 8)
        tm = min(tm_cap, tm_bal)

    grid = (pl.cdiv(rows, tm),)  # Pallas masks the partial edge row-block

    out2d = pl.pallas_call(
        _cosine_cutoff_kernel,
        out_shape=jax.ShapeDtypeStruct((rows, cols), orig_dtype),
        grid=grid,
        in_specs=[pl.BlockSpec((tm, cols), lambda i: (i, 0))],
        out_specs=pl.BlockSpec((tm, cols), lambda i: (i, 0)),
        input_output_aliases=({0: 0} if donate_input else {}),
        compiler_params=pltpu.CompilerParams(
            dimension_semantics=("parallel",),
            vmem_limit_bytes=32 * 1024 * 1024,  # safe on v5e/v6e/v7x
        ),
    )(x2d)

    return out2d.reshape(orig_shape)


if __name__ == "__main__":
    key = jax.random.PRNGKey(0)
    k1, k2, k3 = jax.random.split(key, 3)

    def ref_fn(d):
        x = d.astype(jnp.float32)
        return (0.5 * (jnp.cos(x * jnp.pi) + 1.0)).astype(d.dtype)

    # 1) Module-typical small shape (batch=2, n_atoms=8, n_neighbors=16)
    #    -> small-input XLA fallback path.
    dist_small = jax.random.uniform(k1, (2, 8, 16), dtype=jnp.float32)
    out_small = jax.block_until_ready(cosine_cutoff(dist_small))
    assert out_small.shape == dist_small.shape and out_small.dtype == dist_small.dtype
    assert jnp.allclose(out_small, ref_fn(dist_small), atol=1e-6)

    # 2) Pallas path (4 balanced programs), including x < 0 and x > 1 to check the
    #    range reduction matches jnp.cos semantics outside [0, 1].
    dist_big = jax.random.uniform(k2, (256, 2048), dtype=jnp.float32) * 2.5 - 0.5
    out_big = jax.block_until_ready(cosine_cutoff(dist_big))
    assert jnp.allclose(out_big, ref_fn(dist_big), atol=2e-6)

    # 3) Row count not divisible by the block rows -> masked partial edge block.
    dist_edge = jax.random.uniform(k3, (520, 1536), dtype=jnp.float32)
    out_edge = jax.block_until_ready(cosine_cutoff(dist_edge))
    assert jnp.allclose(out_edge, ref_fn(dist_edge), atol=2e-6)

    # 4) bf16 I/O through the Pallas path.  Reference computed in f32 then rounded
    #    to bf16; atol of ~1 bf16 ulp enforces the f32-internal compute path
    #    (a pure-bf16 polynomial would exceed it).
    dist_bf16 = jax.random.uniform(k2, (256, 2048), dtype=jnp.float32).astype(jnp.bfloat16)
    out_bf16 = jax.block_until_ready(cosine_cutoff(dist_bf16))
    assert out_bf16.dtype == jnp.bfloat16
    assert jnp.allclose(out_bf16.astype(jnp.float32),
                        ref_fn(dist_bf16).astype(jnp.float32), atol=4e-3)

    # Boundary semantics through the Pallas path: y(0) = 1, y(1) = 0.
    assert jnp.allclose(cosine_cutoff(jnp.zeros((256, 2048), jnp.float32)), 1.0, atol=1e-6)
    assert jnp.allclose(cosine_cutoff(jnp.ones((256, 2048), jnp.float32)), 0.0, atol=1e-6)

    print("KERNEL_OK")
</pallas_src>

<mosaic_0001>
module attributes {stable_mosaic.version = 11 : i64} {
  func.func @_cosine_cutoff_kernel(%arg0: i32, %arg1: memref<64x2048xf32, #tpu.memory_space<vmem>>, %arg2: memref<64x2048xf32, #tpu.memory_space<vmem>>) attributes {dimension_semantics = [#tpu.dimension_semantics<parallel>], iteration_bounds = array<i64: 4>, scalar_prefetch = 0 : i64, scratch_operands = 0 : i64, tpu.core_type = #tpu.core_type<tc>, window_params = [{transform_indices = @transform_0, window_bounds = array<i64: 64, 2048>}, {transform_indices = @transform_1, window_bounds = array<i64: 64, 2048>}]} {
    %c0 = arith.constant 0 : index
    %c0_0 = arith.constant 0 : index
    %0 = vector.load %arg1[%c0, %c0_0] : memref<64x2048xf32, #tpu.memory_space<vmem>>, vector<64x2048xf32>
    %cst = arith.constant 5.000000e-01 : f32
    %1 = vector.broadcast %cst : f32 to vector<64x2048xf32>
    %2 = arith.mulf %0, %1 : vector<64x2048xf32>
    %cst_1 = arith.constant 5.000000e-01 : f32
    %3 = vector.broadcast %cst_1 : f32 to vector<64x2048xf32>
    %4 = arith.addf %2, %3 : vector<64x2048xf32>
    %5 = math.floor %4 : vector<64x2048xf32>
    %6 = arith.subf %2, %5 : vector<64x2048xf32>
    %7 = arith.mulf %6, %6 : vector<64x2048xf32>
    %cst_2 = arith.constant 0.0019295743 : f32
    %8 = vector.broadcast %cst_2 : f32 to vector<64x2048xf32>
    %9 = arith.mulf %8, %7 : vector<64x2048xf32>
    %cst_3 = arith.constant -0.0258068908 : f32
    %10 = vector.broadcast %cst_3 : f32 to vector<64x2048xf32>
    %11 = arith.addf %9, %10 : vector<64x2048xf32>
    %12 = arith.mulf %11, %7 : vector<64x2048xf32>
    %cst_4 = arith.constant 0.235330626 : f32
    %13 = vector.broadcast %cst_4 : f32 to vector<64x2048xf32>
    %14 = arith.addf %12, %13 : vector<64x2048xf32>
    %15 = arith.mulf %14, %7 : vector<64x2048xf32>
    %cst_5 = arith.constant -1.33526278 : f32
    %16 = vector.broadcast %cst_5 : f32 to vector<64x2048xf32>
    %17 = arith.addf %15, %16 : vector<64x2048xf32>
    %18 = arith.mulf %17, %7 : vector<64x2048xf32>
    %cst_6 = arith.constant 4.05871201 : f32
    %19 = vector.broadcast %cst_6 : f32 to vector<64x2048xf32>
    %20 = arith.addf %18, %19 : vector<64x2048xf32>
    %21 = arith.mulf %20, %7 : vector<64x2048xf32>
    %cst_7 = arith.constant -4.93480206 : f32
    %22 = vector.broadcast %cst_7 : f32 to vector<64x2048xf32>
    %23 = arith.addf %21, %22 : vector<64x2048xf32>
    %24 = arith.mulf %23, %7 : vector<64x2048xf32>
    %cst_8 = arith.constant 1.000000e+00 : f32
    %25 = vector.broadcast %cst_8 : f32 to vector<64x2048xf32>
    %26 = arith.addf %24, %25 : vector<64x2048xf32>
    %27 = arith.mulf %26, %26 : vector<64x2048xf32>
    %c0_9 = arith.constant 0 : index
    %c0_10 = arith.constant 0 : index
    %28 = vector.load %arg2[%c0_9, %c0_10] : memref<64x2048xf32, #tpu.memory_space<vmem>>, vector<64x2048xf32>
    tpu.vector_store %arg2[%c0_9, %c0_10], %27 {strides = array<i32>} : memref<64x2048xf32, #tpu.memory_space<vmem>>, vector<64x2048xf32>,
    return
  }
  func.func @transform_0(%arg0: i32) -> (i32, i32) {
    %c0_i32 = arith.constant 0 : i32
    %c0_i32_0 = arith.constant 0 : i32
    return %arg0, %c0_i32 : i32, i32
  }
  func.func @transform_1(%arg0: i32) -> (i32, i32) {
    %c0_i32 = arith.constant 0 : i32
    %c0_i32_0 = arith.constant 0 : i32
    return %arg0, %c0_i32 : i32, i32
  }
}

</mosaic_0001>

<bundles_post_ra>
// kernel: tpu_custom_call.1
= control target key start
LH: loop header
LB: loop body
LE: loop exit
PB: predicated region body
PF: predicated region fallthrough
CT: control target
= control target key end

     0   :  { %6 = vsyncpa [#allocation3], 0  ;;  %s4391_s0 = inlined_call_operand.hbm [shape: f32[256,2048], index: 0, kind: input, shape index: {}]   ;;  %s4392_s1 = inlined_call_operand.hbm [shape: f32[256,2048], index: 1, kind: output, shape index: {}]  }
   0x1   :  { %8 = vsyncpa [#allocation3 + $0x1], 0 }
   0x2   :  { %9 = vsyncpa [#allocation4], 0 }
   0x3   :  { %11 = vsyncpa [#allocation4 + $0x1], 0  ;;  %s2966_s6 = smov 0   ;;  %s2968_s7 = smov 0  }
   0x4   :  { %s2970_s8 = smov 0   ;;  %s2972_s9 = smov 0  }
   0x5 LB: > { %s2987_s10 = sadd.s32 4294967295, %s2948_s9   ;;  %s2786_s11 = sadd.s32 4294967294, %s2948_s9   ;;  %s2948_s9 = sphi %s2972_s9, %s4406_s9   ;;  %s2944_s8 = sphi %s2970_s8, %s4405_s8   ;;  %s2940_s7 = sphi %s2968_s7, %s4404_s7   ;;  %s2936_s6 = sphi %s2966_s6, %s4403_s6  }
   0x6   : > { %s2991_s12 = sadd.s32 1, %s2948_s9   ;;  %s24_s13 = sadd.s32 1, %s2944_s8 }
   0x7   : > { %s21_s14 = ssub.s32 %s2948_s9, %s2991_s12  ;;  %p31_p0 = scmp.ne.s32.totalorder %s2944_s8, %s2940_s7 }
   0x8   : > { %p22_p1 = scmp.eq.s32.totalorder %s21_s14, 0  ;;  %p32_p2 = scmp.eq.s32.totalorder %s2948_s9, 0 }
   0x9   : > { %p37_p3 = scmp.ne.s32.totalorder %s2940_s7, %s2936_s6  ;;  %p38_p4 = scmp.eq.s32.totalorder %s2987_s10, 0 }
   0xa   : > { %s3003_s15 = scalar_select %p22_p1, %s2944_s8, %s24_s13  }
   0xb   : > { %p3005_p5 = por %p32_p2, %p31_p0  ;;  %p3009_p6 = por %p38_p4, %p37_p3 }
   0xc   : > { %p61_p7 = scmp.eq.s32.totalorder %s2987_s10, 3  ;;  %p67_p8 = scmp.eq.s32.totalorder %s2786_s11, 3 }
   0xd   : > { %s4396_s17 = scalar_select %p3009_p6, 1, 0 }
   0xe   : > { %p2818_p9 = scmp.lt.s32.totalorder %s2948_s9, 4  ;;  %p3015_p10 = por %p61_p7, %p31_p0 }
   0xf   : > { %p3019_p11 = por %p67_p8, %p37_p3  ;;  %s87_s20 = sand.u32 1, %s2944_s8  }
  0x10   : > { %s4397_s18 = scalar_select %p3015_p10, 1, 0 }
  0x11   : > { %s4398_s19 = scalar_select %p3019_p11, 1, 0 }
  0x12   : > { %s2803_s21 = sshll.u32 %s2948_s9, 14  ;;  %s2789_s22 = sshll.u32 %s87_s20, 10 }
  0x13   : > { %s3028_s25 = scalar_lea.hbm %s4391_s0, %s2803_s21  ;;  %s91_s26 = scalar_lea.vmem [#allocation2], %s2789_s22 }
  0x14   : > { %s99_s27 = sshll.u32 %s91_s26, 4  ;;  %p3032_p12 = pnand %p2818_p9, %p3005_p5  ;;  %s3036_s27 = int_to_ptr.vmem [resolvable:$true] %s99_s27 }
  0x15   : > { %s3038_s29 = scalar_lea.sflag [#allocation3], %s87_s20  ;;  %s2856_s30 = scalar_lea.hbm %s3028_s25, 16384 }
  0x16   : > { %p2857_p13 = scmp.ne.s32.totalorder %s3028_s25, %s2856_s30  ;;  %p2858_p0 = pneg %p3032_p12 }
  0x17   : > { %s2861_s4 = scalar_lea.hbm %s4391_s0, 65536  ;;  %p2862_p3 = scmp.lt.s32.totalorder %s3028_s25, %s4391_s0 }
  0x18   : > { %p2859_p1 = pnand %p2858_p0, %p2857_p13  ;;  %p2863_p4 = scmp.lt.s32.totalorder %s2861_s4, %s2856_s30 }
  0x1a   : > { %p2860_p2 = pneg %p2859_p1  ;;  %p2864_p5 = por %p2863_p4, %p2862_p3 }
  0x1c   : > { %p2865_p7 = pnand %p2864_p5, %p2860_p2 }
  0x1e   : > { %2868 = shalt.err (!%p2865_p7)
}
  0x1f   : > { %s2869_s13 = scalar_lea.vmem %s3036_s27, 16384  ;;  %s2950_s14 = smov [#allocation2]  }
  0x20   : > { %p2870_p8 = scmp.ne.s32.totalorder %s3036_s27, %s2869_s13  ;;  %s2874_s16 = sshll.u32 %s2950_s14, 4  ;;  %s2875_s16 = int_to_ptr.vmem [resolvable:$false] %s2874_s16 }
  0x21   : > { %s2876_s20 = scalar_lea.vmem %s2875_s16, 32768  ;;  %p2877_p1 = scmp.lt.s32.totalorder %s3036_s27, %s2875_s16 }
  0x22   : > { %p2872_p9 = pnand %p2870_p8, %p2858_p0  ;;  %p2878_p11 = scmp.lt.s32.totalorder %s2876_s20, %s2869_s13 }
  0x24   : > { %p2873_p13 = pneg %p2872_p9  ;;  %p2879_p10 = por %p2878_p11, %p2877_p1 }
  0x26   : > { %p2880_p6 = pnand %p2879_p10, %p2873_p13 }
  0x28   : > { %2883 = shalt.err (!%p2880_p6)
}
  0x29   : > { %s2951_s21 = smov 2048   ;;  %s2952_s22 = smov 128  }
  0x2a   : > { %2813 = dma.hbm_to_vmem [thread:$0]  (!%p3032_p12), %s3028_s25, 16384, %s3036_s27, %s3038_s29, %s2951_s21, %s2951_s21, %s2952_s22  }
  0x2b   : > { %p2793_p0 = scmp.ge.s32.totalorder %s2948_s9, 1  ;;  %p107_p2 = scmp.lt.s32.totalorder %s2948_s9, 5 }
  0x2d   : > { %p108_p3 = pnand %p2793_p0, %p107_p2 }
  0x2e   : > { %s3062_s23 = sand.u32 (!%p108_p3), 1, %s2940_s7   ;;  %p4400_p6 = scmp.ne.s32.totalorder (!%p108_p3), %s4396_s17, 0 }
  0x2f   : > { %111 = sbr.rel (%p108_p3) target bundleno = 663 (0x297), region = 24  ;;  %s2794_s24 = sshll.u32 (!%p108_p3), %s3062_s23, 10 }
  0x30   : > { %s114_s26 = scalar_lea.sflag (!%p108_p3), [#allocation3], %s3062_s23  ;;  %s3068_s30 = scalar_lea.vmem (!%p108_p3), [#allocation2], %s2794_s24 }
  0x34   : > { %2927 = dma.done.wait (%p4400_p6), %s114_s26, 16384  }
  0x35   : > { %2929 = vsyncadd (%p4400_p6), %s114_s26, 4294950912  ;;  %v138_v0 = vld [vmem:[%s3068_s30] sm:$0xff]  ;;  %v139_v1 = vld [vmem:[%s3068_s30 + $0x8] sm:$0xff]  ;;  %s3152_s17 = scalar_lea.vmem [#allocation5], %s2794_s24  ;;  %s2805_s25 = sshll.u32 %s2987_s10, 14 }
  0x36   : > { %v140_v2 = vld [vmem:[%s3068_s30 + $0x10] sm:$0xff]  ;;  %v266_v3 = vmul.f32 0.5, %v138_v0  ;;  %v267_v4 = vmul.f32 0.5, %v139_v1  ;;  %v141_v6 = vld [vmem:[%s3068_s30 + $0x18] sm:$0xff]  ;;  %v142_v7 = vld [vmem:[%s3068_s30 + $0x20] sm:$0xff]  ;;  %s2713_s27 = sshll.u32 %s3152_s17, 4  ;;  %s4345_s2 = scalar_lea.hbm %s4392_s1, %s2805_s25  ;;  %s4347_s27 = int_to_ptr.vmem [resolvable:$true] %s2713_s27 }
  0x37   : > { %v268_v5 = vmul.f32 0.5, %v140_v2  ;;  %v143_v8 = vld [vmem:[%s3068_s30 + $0x28] sm:$0xff]  ;;  %v269_v9 = vmul.f32 0.5, %v141_v6  ;;  %v270_v10 = vmul.f32 0.5, %v142_v7  ;;  %v144_v12 = vld [vmem:[%s3068_s30 + $0x30] sm:$0xff]  ;;  %v145_v13 = vld [vmem:[%s3068_s30 + $0x38] sm:$0xff] }
  0x38   : > { %v271_v11 = vmul.f32 0.5, %v143_v8  ;;  %v394_v14 = vadd.f32 0.5, %v266_v3  ;;  %v395_v15 = vadd.f32 0.5, %v267_v4  ;;  %v272_v17 = vmul.f32 0.5, %v144_v12  ;;  %s2699_s3 = scalar_lea.sflag [#allocation4], %s3062_s23  ;;  %s2884_s4 = scalar_lea.vmem %s4347_s27, 16384 }
  0x39   : > { %v396_v16 = vadd.f32 0.5, %v268_v5  ;;  %v397_v18 = vadd.f32 0.5, %v269_v9  ;;  %v398_v19 = vadd.f32 0.5, %v270_v10  ;;  %v273_v21 = vmul.f32 0.5, %v145_v13  ;;  %p2885_p10 = scmp.ne.s32.totalorder %s4347_s27, %s2884_s4  ;;  %p4401_p11 = scmp.ne.s32.totalorder %s4397_s18, 0 }
  0x3a   : > { %v399_v20 = vadd.f32 0.5, %v271_v11  ;;  %v522_v22 = vfloor.f32 %v394_v14  ;;  %v523_v23 = vfloor.f32 %v395_v15  ;;  %v400_v25 = vadd.f32 0.5, %v272_v17  ;;  %s2953_s10 = smov [#allocation5]  }
  0x3b   : > { %v524_v24 = vfloor.f32 %v396_v16  ;;  %v525_v26 = vfloor.f32 %v397_v18  ;;  %v526_v27 = vfloor.f32 %v398_v19  ;;  %v401_v29 = vadd.f32 0.5, %v273_v21  ;;  %p2886_p12 = pnand %p2885_p10, %p4401_p11  ;;  %s2888_s5 = sshll.u32 %s2953_s10, 4  ;;  %s2889_s5 = int_to_ptr.vmem [resolvable:$false] %s2888_s5 }
  0x3c   : > { %v527_v28 = vfloor.f32 %v399_v20  ;;  %v650_v30 = vsub.f32 %v266_v3, %v522_v22  ;;  %v651_v31 = vsub.f32 %v267_v4, %v523_v23  ;;  %v528_v33 = vfloor.f32 %v400_v25  ;;  %s2890_s11 = scalar_lea.vmem %s2889_s5, 32768  ;;  %p2891_p5 = scmp.lt.s32.totalorder %s4347_s27, %s2889_s5 }
  0x3d   : > { %v652_v32 = vsub.f32 %v268_v5, %v524_v24  ;;  %v653_v34 = vsub.f32 %v269_v9, %v525_v26  ;;  %v654_v35 = vsub.f32 %v270_v10, %v526_v27  ;;  %v529_v37 = vfloor.f32 %v401_v29  ;;  %p2887_p4 = pneg %p2886_p12  ;;  %p2892_p7 = scmp.lt.s32.totalorder %s2890_s11, %s2884_s4 }
  0x3e   : > { %v655_v36 = vsub.f32 %v271_v11, %v527_v28  ;;  %v3082_v38 = vmul.f32 %v650_v30, %v650_v30  ;;  %v3084_v39 = vmul.f32 %v651_v31, %v651_v31  ;;  %v656_v41 = vsub.f32 %v272_v17, %v528_v33 }
  0x3f   : > { %v3086_v40 = vmul.f32 %v652_v32, %v652_v32  ;;  %v3088_v42 = vmul.f32 %v653_v34, %v653_v34  ;;  %v3090_v43 = vmul.f32 %v654_v35, %v654_v35  ;;  %v657_v45 = vsub.f32 %v273_v21, %v529_v37  ;;  %p2893_p8 = por %p2892_p7, %p2891_p5 }
  0x40   : > { %v3092_v44 = vmul.f32 %v655_v36, %v655_v36  ;;  %v906_v46 = vmul.f32 0.0019295743, %v3082_v38  ;;  %v907_v47 = vmul.f32 0.0019295743, %v3084_v39  ;;  %v3097_v49 = vmul.f32 %v656_v41, %v656_v41 }
  0x41   : > { %v908_v48 = vmul.f32 0.0019295743, %v3086_v40  ;;  %v909_v50 = vmul.f32 0.0019295743, %v3088_v42  ;;  %v910_v51 = vmul.f32 0.0019295743, %v3090_v43  ;;  %v3102_v53 = vmul.f32 %v657_v45, %v657_v45  ;;  %p2894_p9 = pnand %p2893_p8, %p2887_p4 }
  0x42   : > { %v911_v52 = vmul.f32 0.0019295743, %v3092_v44  ;;  %v1034_v54 = vadd.f32 -0.02580689, %v906_v46  ;;  %v1035_v55 = vadd.f32 -0.02580689, %v907_v47 }
  0x43   : > { %v1036_v56 = vadd.f32 -0.02580689, %v908_v48  ;;  %v1037_v57 = vadd.f32 -0.02580689, %v909_v50  ;;  %v1038_v58 = vadd.f32 -0.02580689, %v910_v51 }
  0x44   : > { %v1039_v59 = vadd.f32 -0.02580689, %v911_v52  ;;  %v1162_v60 = vmul.f32 %v1034_v54, %v3082_v38  ;;  %v1163_v61 = vmul.f32 %v1035_v55, %v3084_v39  ;;  %v912_v63 = vmul.f32 0.0019295743, %v3097_v49 }
  0x45   : > { %v1164_v62 = vmul.f32 %v1036_v56, %v3086_v40  ;;  %v1165_v0 = vmul.f32 %v1037_v57, %v3088_v42  ;;  %v1166_v1 = vmul.f32 %v1038_v58, %v3090_v43  ;;  %v913_v3 = vmul.f32 0.0019295743, %v3102_v53 }
  0x46   : > { %v1167_v2 = vmul.f32 %v1039_v59, %v3092_v44  ;;  %v1290_v4 = vadd.f32 0.23533063, %v1162_v60  ;;  %v1291_v5 = vadd.f32 0.23533063, %v1163_v61  ;;  %v1040_v13 = vadd.f32 -0.02580689, %v912_v63 }
  0x47   : > { %v1292_v6 = vadd.f32 0.23533063, %v1164_v62  ;;  %v1293_v7 = vadd.f32 0.23533063, %v1165_v0  ;;  %v1294_v8 = vadd.f32 0.23533063, %v1166_v1 }
  0x48   : > { %v1295_v9 = vadd.f32 0.23533063, %v1167_v2  ;;  %v1418_v10 = vmul.f32 %v1290_v4, %v3082_v38  ;;  %v1419_v11 = vmul.f32 %v1291_v5, %v3084_v39  ;;  %v1041_v17 = vadd.f32 -0.02580689, %v913_v3 }
  0x49   : > { %v1420_v12 = vmul.f32 %v1292_v6, %v3086_v40  ;;  %v1421_v14 = vmul.f32 %v1293_v7, %v3088_v42  ;;  %v1422_v15 = vmul.f32 %v1294_v8, %v3090_v43  ;;  %v1168_v21 = vmul.f32 %v1040_v13, %v3097_v49 }
  0x4a   : > { %v1423_v16 = vmul.f32 %v1295_v9, %v3092_v44  ;;  %v1546_v18 = vadd.f32 -1.3352628, %v1418_v10  ;;  %v1547_v19 = vadd.f32 -1.3352628, %v1419_v11  ;;  %v1169_v25 = vmul.f32 %v1041_v17, %v3102_v53 }
  0x4b   : > { %v1548_v20 = vadd.f32 -1.3352628, %v1420_v12  ;;  %v1549_v22 = vadd.f32 -1.3352628, %v1421_v14  ;;  %v1550_v23 = vadd.f32 -1.3352628, %v1422_v15 }
  0x4c   : > { %v1551_v24 = vadd.f32 -1.3352628, %v1423_v16  ;;  %v1674_v26 = vmul.f32 %v1546_v18, %v3082_v38  ;;  %v1675_v27 = vmul.f32 %v1547_v19, %v3084_v39  ;;  %v1296_v29 = vadd.f32 0.23533063, %v1168_v21  ;;  %v147_v15 = vld [vmem:[%s3068_s30 + $0x48] sm:$0xff]  ;;  %v149_v19 = vld [vmem:[%s3068_s30 + $0x58] sm:$0xff] }
  0x4d   : > { %v1676_v28 = vmul.f32 %v1548_v20, %v3086_v40  ;;  %v1677_v30 = vmul.f32 %v1549_v22, %v3088_v42  ;;  %v1678_v31 = vmul.f32 %v1550_v23, %v3090_v43  ;;  %v1297_v33 = vadd.f32 0.23533063, %v1169_v25  ;;  %v150_v20 = vld [vmem:[%s3068_s30 + $0x60] sm:$0xff]  ;;  %v151_v21 = vld [vmem:[%s3068_s30 + $0x68] sm:$0xff] }
  0x4e   : > { %v1679_v32 = vmul.f32 %v1551_v24, %v3092_v44  ;;  %v1802_v34 = vadd.f32 4.058712, %v1674_v26  ;;  %v1803_v35 = vadd.f32 4.058712, %v1675_v27  ;;  %v1424_v37 = vmul.f32 %v1296_v29, %v3097_v49 }
  0x4f   : > { %v1804_v36 = vadd.f32 4.058712, %v1676_v28  ;;  %v1805_v41 = vadd.f32 4.058712, %v1677_v30  ;;  %v1806_v45 = vadd.f32 4.058712, %v1678_v31  ;;  %v1425_v47 = vmul.f32 %v1297_v33, %v3102_v53 }
  0x50   : > { %v1807_v46 = vadd.f32 4.058712, %v1679_v32  ;;  %v1930_v48 = vmul.f32 %v1802_v34, %v3082_v38  ;;  %v1931_v50 = vmul.f32 %v1803_v35, %v3084_v39  ;;  %v1552_v52 = vadd.f32 -1.3352628, %v1424_v37 }
  0x51   : > { %v1932_v51 = vmul.f32 %v1804_v36, %v3086_v40  ;;  %v1933_v54 = vmul.f32 %v1805_v41, %v3088_v42  ;;  %v1934_v55 = vmul.f32 %v1806_v45, %v3090_v43  ;;  %v1553_v57 = vadd.f32 -1.3352628, %v1425_v47  ;;  %v152_v47 = vld [vmem:[%s3068_s30 + $0x70] sm:$0xff] }
  0x52   : > { %v1935_v56 = vmul.f32 %v1807_v46, %v3092_v44  ;;  %v2058_v58 = vadd.f32 -4.934802, %v1930_v48  ;;  %v2059_v59 = vadd.f32 -4.934802, %v1931_v50  ;;  %v1680_v61 = vmul.f32 %v1552_v52, %v3097_v49 }
  0x53   : > { %v2060_v60 = vadd.f32 -4.934802, %v1932_v51  ;;  %v2061_v62 = vadd.f32 -4.934802, %v1933_v54  ;;  %v2062_v63 = vadd.f32 -4.934802, %v1934_v55  ;;  %v1681_v1 = vmul.f32 %v1553_v57, %v3102_v53 }
  0x54   : > { %v2063_v0 = vadd.f32 -4.934802, %v1935_v56  ;;  %v2186_v2 = vmul.f32 %v2058_v58, %v3082_v38  ;;  %v2187_v3 = vmul.f32 %v2059_v59, %v3084_v39  ;;  %v1808_v5 = vadd.f32 4.058712, %v1680_v61 }
  0x55   : > { %v2188_v4 = vmul.f32 %v2060_v60, %v3086_v40  ;;  %v2189_v6 = vmul.f32 %v2061_v62, %v3088_v42  ;;  %v2190_v7 = vmul.f32 %v2062_v63, %v3090_v43  ;;  %v1809_v9 = vadd.f32 4.058712, %v1681_v1  ;;  %v146_v42 = vld [vmem:[%s3068_s30 + $0x40] sm:$0xff]  ;;  %v148_v43 = vld [vmem:[%s3068_s30 + $0x50] sm:$0xff] }
  0x56   : > { %v2191_v8 = vmul.f32 %v2063_v0, %v3092_v44  ;;  %v2314_v10 = vadd.f32 1.0, %v2186_v2  ;;  %v2315_v11 = vadd.f32 1.0, %v2187_v3  ;;  %v1936_v39 = vmul.f32 %v1808_v5, %v3097_v49 }
  0x57   : > { %v2316_v38 = vadd.f32 1.0, %v2188_v4  ;;  %v2317_v12 = vadd.f32 1.0, %v2189_v6  ;;  %v2318_v13 = vadd.f32 1.0, %v2190_v7  ;;  %v1937_v14 = vmul.f32 %v1809_v9, %v3102_v53 }
  0x58   : > { %v2319_v40 = vadd.f32 1.0, %v2191_v8  ;;  %v2442_v16 = vmul.f32 %v2314_v10, %v2314_v10  ;;  %v2443_v44 = vmul.f32 %v2315_v11, %v2315_v11  ;;  %v2064_v18 = vadd.f32 -4.934802, %v1936_v39 }
  0x59   : > { %v2444_v17 = vmul.f32 %v2316_v38, %v2316_v38  ;;  %v2445_v22 = vmul.f32 %v2317_v12, %v2317_v12  ;;  %v2446_v23 = vmul.f32 %v2318_v13, %v2318_v13  ;;  %v2065_v25 = vadd.f32 -4.934802, %v1937_v14 }
  0x5a   : > { %v2447_v24 = vmul.f32 %v2319_v40, %v2319_v40  ;;  %2570 = vst [vmem:[%s3152_s17] sm:$0xff] %v2442_v16  ;;  %2571 = vst [vmem:[%s3152_s17 + $0x8] sm:$0xff] %v2443_v44  ;;  %v2192_v26 = vmul.f32 %v2064_v18, %v3097_v49  ;;  %v274_v27 = vmul.f32 0.5, %v146_v42  ;;  %v275_v28 = vmul.f32 0.5, %v147_v15 }
  0x5b   : > { %2572 = vst [vmem:[%s3152_s17 + $0x10] sm:$0xff] %v2444_v17  ;;  %v276_v29 = vmul.f32 0.5, %v148_v43  ;;  %2573 = vst [vmem:[%s3152_s17 + $0x18] sm:$0xff] %v2445_v22  ;;  %v2193_v30 = vmul.f32 %v2065_v25, %v3102_v53  ;;  %v277_v31 = vmul.f32 0.5, %v149_v19  ;;  %v278_v32 = vmul.f32 0.5, %v150_v20  ;;  %v153_v53 = vld [vmem:[%s3068_s30 + $0x78] sm:$0xff] }
  0x5c   : > { %2574 = vst [vmem:[%s3152_s17 + $0x20] sm:$0xff] %v2446_v23  ;;  %2575 = vst [vmem:[%s3152_s17 + $0x28] sm:$0xff] %v2447_v24  ;;  %v279_v33 = vmul.f32 0.5, %v151_v21  ;;  %v2320_v34 = vadd.f32 1.0, %v2192_v26  ;;  %v402_v35 = vadd.f32 0.5, %v274_v27  ;;  %v403_v36 = vadd.f32 0.5, %v275_v28 }
  0x5d   : > { %v404_v37 = vadd.f32 0.5, %v276_v29  ;;  %v2321_v41 = vadd.f32 1.0, %v2193_v30  ;;  %v405_v49 = vadd.f32 0.5, %v277_v31  ;;  %v406_v45 = vadd.f32 0.5, %v278_v32 }
  0x5e   : > { %v407_v46 = vadd.f32 0.5, %v279_v33  ;;  %v2448_v48 = vmul.f32 %v2320_v34, %v2320_v34  ;;  %v530_v50 = vfloor.f32 %v402_v35  ;;  %v531_v51 = vfloor.f32 %v403_v36 }
  0x5f   : > { %v532_v52 = vfloor.f32 %v404_v37  ;;  %v2449_v54 = vmul.f32 %v2321_v41, %v2321_v41  ;;  %v533_v55 = vfloor.f32 %v405_v49  ;;  %v534_v56 = vfloor.f32 %v406_v45 }
  0x60   : > { %v535_v57 = vfloor.f32 %v407_v46  ;;  %2576 = vst [vmem:[%s3152_s17 + $0x30] sm:$0xff] %v2448_v48  ;;  %v658_v58 = vsub.f32 %v274_v27, %v530_v50  ;;  %v659_v59 = vsub.f32 %v275_v28, %v531_v51  ;;  %v280_v61 = vmul.f32 0.5, %v152_v47 }
  0x61   : > { %v660_v60 = vsub.f32 %v276_v29, %v532_v52  ;;  %2577 = vst [vmem:[%s3152_s17 + $0x38] sm:$0xff] %v2449_v54  ;;  %v661_v62 = vsub.f32 %v277_v31, %v533_v55  ;;  %v662_v63 = vsub.f32 %v278_v32, %v534_v56  ;;  %v281_v1 = vmul.f32 0.5, %v153_v53 }
  0x62   : > { %v663_v0 = vsub.f32 %v279_v33, %v535_v57  ;;  %v3166_v2 = vmul.f32 %v658_v58, %v658_v58  ;;  %v3168_v3 = vmul.f32 %v659_v59, %v659_v59  ;;  %v408_v5 = vadd.f32 0.5, %v280_v61 }
  0x63   : > { %v3170_v4 = vmul.f32 %v660_v60, %v660_v60  ;;  %v3172_v6 = vmul.f32 %v661_v62, %v661_v62  ;;  %v3174_v7 = vmul.f32 %v662_v63, %v662_v63  ;;  %v409_v9 = vadd.f32 0.5, %v281_v1 }
  0x64   : > { %v3176_v8 = vmul.f32 %v663_v0, %v663_v0  ;;  %v914_v10 = vmul.f32 0.0019295743, %v3166_v2  ;;  %v915_v11 = vmul.f32 0.0019295743, %v3168_v3  ;;  %v536_v39 = vfloor.f32 %v408_v5 }
  0x65   : > { %v916_v38 = vmul.f32 0.0019295743, %v3170_v4  ;;  %v917_v12 = vmul.f32 0.0019295743, %v3172_v6  ;;  %v918_v13 = vmul.f32 0.0019295743, %v3174_v7  ;;  %v537_v14 = vfloor.f32 %v409_v9 }
  0x66   : > { %v919_v40 = vmul.f32 0.0019295743, %v3176_v8  ;;  %v1042_v42 = vadd.f32 -0.02580689, %v914_v10  ;;  %v1043_v15 = vadd.f32 -0.02580689, %v915_v11  ;;  %v664_v16 = vsub.f32 %v280_v61, %v536_v39 }
  0x67   : > { %v1044_v43 = vadd.f32 -0.02580689, %v916_v38  ;;  %v1045_v44 = vadd.f32 -0.02580689, %v917_v12  ;;  %v1046_v17 = vadd.f32 -0.02580689, %v918_v13  ;;  %v665_v19 = vsub.f32 %v281_v1, %v537_v14 }
  0x68   : > { %v1047_v18 = vadd.f32 -0.02580689, %v919_v40  ;;  %v1170_v20 = vmul.f32 %v1042_v42, %v3166_v2  ;;  %v1171_v21 = vmul.f32 %v1043_v15, %v3168_v3  ;;  %v3187_v23 = vmul.f32 %v664_v16, %v664_v16 }
  0x69   : > { %v1172_v22 = vmul.f32 %v1044_v43, %v3170_v4  ;;  %v1173_v24 = vmul.f32 %v1045_v44, %v3172_v6  ;;  %v1174_v25 = vmul.f32 %v1046_v17, %v3174_v7  ;;  %v3192_v27 = vmul.f32 %v665_v19, %v665_v19 }
  0x6a   : > { %v1175_v26 = vmul.f32 %v1047_v18, %v3176_v8  ;;  %v1298_v28 = vadd.f32 0.23533063, %v1170_v20  ;;  %v1299_v29 = vadd.f32 0.23533063, %v1171_v21  ;;  %v920_v37 = vmul.f32 0.0019295743, %v3187_v23 }
  0x6b   : > { %v1300_v30 = vadd.f32 0.23533063, %v1172_v22  ;;  %v1301_v31 = vadd.f32 0.23533063, %v1173_v24  ;;  %v1302_v32 = vadd.f32 0.23533063, %v1174_v25 }
  0x6c   : > { %v1303_v33 = vadd.f32 0.23533063, %v1175_v26  ;;  %v1426_v34 = vmul.f32 %v1298_v28, %v3166_v2  ;;  %v1427_v35 = vmul.f32 %v1299_v29, %v3168_v3  ;;  %v921_v46 = vmul.f32 0.0019295743, %v3192_v27 }
  0x6d   : > { %v1428_v36 = vmul.f32 %v1300_v30, %v3170_v4  ;;  %v1429_v41 = vmul.f32 %v1301_v31, %v3172_v6  ;;  %v1430_v49 = vmul.f32 %v1302_v32, %v3174_v7  ;;  %v1048_v57 = vadd.f32 -0.02580689, %v920_v37 }
  0x6e   : > { %v1431_v45 = vmul.f32 %v1303_v33, %v3176_v8  ;;  %v1554_v47 = vadd.f32 -1.3352628, %v1426_v34  ;;  %v1555_v48 = vadd.f32 -1.3352628, %v1427_v35  ;;  %v1049_v61 = vadd.f32 -0.02580689, %v921_v46 }
  0x6f   : > { %v1556_v50 = vadd.f32 -1.3352628, %v1428_v36  ;;  %v1557_v51 = vadd.f32 -1.3352628, %v1429_v41  ;;  %v1558_v52 = vadd.f32 -1.3352628, %v1430_v49  ;;  %v1176_v1 = vmul.f32 %v1048_v57, %v3187_v23 }
  0x70   : > { %v1559_v53 = vadd.f32 -1.3352628, %v1431_v45  ;;  %v1682_v54 = vmul.f32 %v1554_v47, %v3166_v2  ;;  %v1683_v55 = vmul.f32 %v1555_v48, %v3168_v3  ;;  %v1177_v11 = vmul.f32 %v1049_v61, %v3192_v27  ;;  %v157_v46 = vld [vmem:[%s3068_s30 + $0x98] sm:$0xff]  ;;  %v158_v47 = vld [vmem:[%s3068_s30 + $0xa0] sm:$0xff]  ;;  %v159_v48 = vld [vmem:[%s3068_s30 + $0xa8] sm:$0xff] }
  0x71   : > { %v1684_v56 = vmul.f32 %v1556_v50, %v3170_v4  ;;  %v1685_v58 = vmul.f32 %v1557_v51, %v3172_v6  ;;  %v1686_v59 = vmul.f32 %v1558_v52, %v3174_v7  ;;  %v1304_v13 = vadd.f32 0.23533063, %v1176_v1 }
  0x72   : > { %v1687_v60 = vmul.f32 %v1559_v53, %v3176_v8  ;;  %v1810_v62 = vadd.f32 4.058712, %v1682_v54  ;;  %v1811_v63 = vadd.f32 4.058712, %v1683_v55  ;;  %v1305_v15 = vadd.f32 0.23533063, %v1177_v11 }
  0x73   : > { %v1812_v0 = vadd.f32 4.058712, %v1684_v56  ;;  %v1813_v5 = vadd.f32 4.058712, %v1685_v58  ;;  %v1814_v9 = vadd.f32 4.058712, %v1686_v59  ;;  %v1432_v17 = vmul.f32 %v1304_v13, %v3187_v23 }
  0x74   : > { %v1815_v10 = vadd.f32 4.058712, %v1687_v60  ;;  %v1938_v38 = vmul.f32 %v1810_v62, %v3166_v2  ;;  %v1939_v39 = vmul.f32 %v1811_v63, %v3168_v3  ;;  %v1433_v21 = vmul.f32 %v1305_v15, %v3192_v27 }
  0x75   : > { %v1940_v12 = vmul.f32 %v1812_v0, %v3170_v4  ;;  %v1941_v40 = vmul.f32 %v1813_v5, %v3172_v6  ;;  %v1942_v14 = vmul.f32 %v1814_v9, %v3174_v7  ;;  %v1560_v26 = vadd.f32 -1.3352628, %v1432_v17 }
  0x76   : > { %v1943_v42 = vmul.f32 %v1815_v10, %v3176_v8  ;;  %v2066_v43 = vadd.f32 -4.934802, %v1938_v38  ;;  %v2067_v16 = vadd.f32 -4.934802, %v1939_v39  ;;  %v1561_v31 = vadd.f32 -1.3352628, %v1433_v21 }
  0x77   : > { %v2068_v44 = vadd.f32 -4.934802, %v1940_v12  ;;  %v2069_v18 = vadd.f32 -4.934802, %v1941_v40  ;;  %v2070_v19 = vadd.f32 -4.934802, %v1942_v14 }
  0x78   : > { %v2071_v20 = vadd.f32 -4.934802, %v1943_v42  ;;  %v2194_v22 = vmul.f32 %v2066_v43, %v3166_v2  ;;  %v2195_v24 = vmul.f32 %v2067_v16, %v3168_v3  ;;  %v1688_v3 = vmul.f32 %v1560_v26, %v3187_v23 }
  0x79   : > { %v2196_v25 = vmul.f32 %v2068_v44, %v3170_v4  ;;  %v2197_v28 = vmul.f32 %v2069_v18, %v3172_v6  ;;  %v2198_v29 = vmul.f32 %v2070_v19, %v3174_v7  ;;  %v1689_v36 = vmul.f32 %v1561_v31, %v3192_v27  ;;  %v154_v6 = vld [vmem:[%s3068_s30 + $0x80] sm:$0xff]  ;;  %v155_v7 = vld [vmem:[%s3068_s30 + $0x88] sm:$0xff] }
  0x7a   : > { %v2199_v30 = vmul.f32 %v2071_v20, %v3176_v8  ;;  %v2322_v32 = vadd.f32 1.0, %v2194_v22  ;;  %v2323_v33 = vadd.f32 1.0, %v2195_v24  ;;  %v156_v8 = vld [vmem:[%s3068_s30 + $0x90] sm:$0xff]  ;;  %v1816_v45 = vadd.f32 4.058712, %v1688_v3 }
  0x7b   : > { %v2324_v2 = vadd.f32 1.0, %v2196_v25  ;;  %v2325_v34 = vadd.f32 1.0, %v2197_v28  ;;  %v2326_v35 = vadd.f32 1.0, %v2198_v29  ;;  %v1817_v53 = vadd.f32 4.058712, %v1689_v36 }
  0x7c   : > { %v2327_v4 = vadd.f32 1.0, %v2199_v30  ;;  %v2450_v37 = vmul.f32 %v2322_v32, %v2322_v32  ;;  %v2451_v41 = vmul.f32 %v2323_v33, %v2323_v33  ;;  %v1944_v54 = vmul.f32 %v1816_v45, %v3187_v23  ;;  %v160_v30 = vld [vmem:[%s3068_s30 + $0xb0] sm:$0xff] }
  0x7d   : > { %v2452_v49 = vmul.f32 %v2324_v2, %v2324_v2  ;;  %v2453_v50 = vmul.f32 %v2325_v34, %v2325_v34  ;;  %v2454_v51 = vmul.f32 %v2326_v35, %v2326_v35  ;;  %v282_v55 = vmul.f32 0.5, %v154_v6  ;;  %v161_v2 = vld [vmem:[%s3068_s30 + $0xb8] sm:$0xff] }
  0x7e   : > { %v2455_v52 = vmul.f32 %v2327_v4, %v2327_v4  ;;  %2578 = vst [vmem:[%s3152_s17 + $0x40] sm:$0xff] %v2450_v37  ;;  %2579 = vst [vmem:[%s3152_s17 + $0x48] sm:$0xff] %v2451_v41  ;;  %v283_v56 = vmul.f32 0.5, %v155_v7  ;;  %v284_v57 = vmul.f32 0.5, %v156_v8  ;;  %v1945_v58 = vmul.f32 %v1817_v53, %v3192_v27 }
  0x7f   : > { %2580 = vst [vmem:[%s3152_s17 + $0x50] sm:$0xff] %v2452_v49  ;;  %2581 = vst [vmem:[%s3152_s17 + $0x58] sm:$0xff] %v2453_v50  ;;  %v285_v59 = vmul.f32 0.5, %v157_v46  ;;  %v286_v60 = vmul.f32 0.5, %v158_v47  ;;  %v287_v61 = vmul.f32 0.5, %v159_v48  ;;  %v410_v63 = vadd.f32 0.5, %v282_v55 }
  0x80   : > { %2582 = vst [vmem:[%s3152_s17 + $0x60] sm:$0xff] %v2454_v51  ;;  %2583 = vst [vmem:[%s3152_s17 + $0x68] sm:$0xff] %v2455_v52  ;;  %v2072_v62 = vadd.f32 -4.934802, %v1944_v54  ;;  %v411_v0 = vadd.f32 0.5, %v283_v56  ;;  %v412_v1 = vadd.f32 0.5, %v284_v57 }
  0x81   : > { %v2073_v5 = vadd.f32 -4.934802, %v1945_v58  ;;  %v413_v9 = vadd.f32 0.5, %v285_v59  ;;  %v414_v10 = vadd.f32 0.5, %v286_v60  ;;  %v415_v11 = vadd.f32 0.5, %v287_v61 }
  0x82   : > { %v2200_v38 = vmul.f32 %v2072_v62, %v3187_v23  ;;  %v538_v39 = vfloor.f32 %v410_v63  ;;  %v539_v12 = vfloor.f32 %v411_v0  ;;  %v540_v13 = vfloor.f32 %v412_v1 }
  0x83   : > { %v2201_v40 = vmul.f32 %v2073_v5, %v3192_v27  ;;  %v541_v14 = vfloor.f32 %v413_v9  ;;  %v542_v42 = vfloor.f32 %v414_v10  ;;  %v543_v15 = vfloor.f32 %v415_v11 }
  0x84   : > { %v2328_v43 = vadd.f32 1.0, %v2200_v38  ;;  %v666_v16 = vsub.f32 %v282_v55, %v538_v39  ;;  %v667_v44 = vsub.f32 %v283_v56, %v539_v12  ;;  %v668_v17 = vsub.f32 %v284_v57, %v540_v13 }
  0x85   : > { %v2329_v18 = vadd.f32 1.0, %v2201_v40  ;;  %v669_v19 = vsub.f32 %v285_v59, %v541_v14  ;;  %v670_v20 = vsub.f32 %v286_v60, %v542_v42  ;;  %v671_v23 = vsub.f32 %v287_v61, %v543_v15 }
  0x86   : > { %v2456_v21 = vmul.f32 %v2328_v43, %v2328_v43  ;;  %v3242_v22 = vmul.f32 %v666_v16, %v666_v16  ;;  %v3244_v24 = vmul.f32 %v667_v44, %v667_v44  ;;  %v3246_v27 = vmul.f32 %v668_v17, %v668_v17 }
  0x87   : > { %v2457_v25 = vmul.f32 %v2329_v18, %v2329_v18  ;;  %v3248_v26 = vmul.f32 %v669_v19, %v669_v19  ;;  %v3250_v28 = vmul.f32 %v670_v20, %v670_v20  ;;  %v3252_v29 = vmul.f32 %v671_v23, %v671_v23 }
  0x88   : > { %2584 = vst [vmem:[%s3152_s17 + $0x70] sm:$0xff] %v2456_v21  ;;  %v922_v31 = vmul.f32 0.0019295743, %v3242_v22  ;;  %v923_v32 = vmul.f32 0.0019295743, %v3244_v24  ;;  %v288_v46 = vmul.f32 0.5, %v160_v30 }
  0x89   : > { %v924_v33 = vmul.f32 0.0019295743, %v3246_v27  ;;  %2585 = vst [vmem:[%s3152_s17 + $0x78] sm:$0xff] %v2457_v25  ;;  %v925_v3 = vmul.f32 0.0019295743, %v3248_v26  ;;  %v289_v51 = vmul.f32 0.5, %v161_v2 }
  0x8a   : > { %v926_v34 = vmul.f32 0.0019295743, %v3250_v28  ;;  %v927_v35 = vmul.f32 0.0019295743, %v3252_v29  ;;  %v1050_v4 = vadd.f32 -0.02580689, %v922_v31 }
  0x8b   : > { %v1051_v36 = vadd.f32 -0.02580689, %v923_v32  ;;  %v1052_v6 = vadd.f32 -0.02580689, %v924_v33  ;;  %v1053_v7 = vadd.f32 -0.02580689, %v925_v3 }
  0x8c   : > { %v1054_v8 = vadd.f32 -0.02580689, %v926_v34  ;;  %v1055_v37 = vadd.f32 -0.02580689, %v927_v35  ;;  %v1178_v41 = vmul.f32 %v1050_v4, %v3242_v22  ;;  %v416_v61 = vadd.f32 0.5, %v288_v46 }
  0x8d   : > { %v1179_v49 = vmul.f32 %v1051_v36, %v3244_v24  ;;  %v1180_v45 = vmul.f32 %v1052_v6, %v3246_v27  ;;  %v1181_v47 = vmul.f32 %v1053_v7, %v3248_v26  ;;  %v417_v1 = vadd.f32 0.5, %v289_v51 }
  0x8e   : > { %v1182_v48 = vmul.f32 %v1054_v8, %v3250_v28  ;;  %v1183_v50 = vmul.f32 %v1055_v37, %v3252_v29  ;;  %v1306_v52 = vadd.f32 0.23533063, %v1178_v41  ;;  %v544_v11 = vfloor.f32 %v416_v61 }
  0x8f   : > { %v1307_v53 = vadd.f32 0.23533063, %v1179_v49  ;;  %v1308_v54 = vadd.f32 0.23533063, %v1180_v45  ;;  %v1309_v55 = vadd.f32 0.23533063, %v1181_v47  ;;  %v545_v13 = vfloor.f32 %v417_v1 }
  0x90   : > { %v1310_v56 = vadd.f32 0.23533063, %v1182_v48  ;;  %v1311_v57 = vadd.f32 0.23533063, %v1183_v50  ;;  %v1434_v58 = vmul.f32 %v1306_v52, %v3242_v22  ;;  %v672_v15 = vsub.f32 %v288_v46, %v544_v11  ;;  %v167_v1 = vld [vmem:[%s3068_s30 + $0xe8] sm:$0xff] }
  0x91   : > { %v1435_v59 = vmul.f32 %v1307_v53, %v3244_v24  ;;  %v1436_v60 = vmul.f32 %v1308_v54, %v3246_v27  ;;  %v1437_v62 = vmul.f32 %v1309_v55, %v3248_v26  ;;  %v673_v17 = vsub.f32 %v289_v51, %v545_v13 }
  0x92   : > { %v1438_v63 = vmul.f32 %v1310_v56, %v3250_v28  ;;  %v1439_v0 = vmul.f32 %v1311_v57, %v3252_v29  ;;  %v1562_v5 = vadd.f32 -1.3352628, %v1434_v58  ;;  %v3282_v23 = vmul.f32 %v672_v15, %v672_v15 }
  0x93   : > { %v1563_v9 = vadd.f32 -1.3352628, %v1435_v59  ;;  %v1564_v10 = vadd.f32 -1.3352628, %v1436_v60  ;;  %v1565_v38 = vadd.f32 -1.3352628, %v1437_v62  ;;  %v3284_v31 = vmul.f32 %v673_v17, %v673_v17 }
  0x94   : > { %v1566_v39 = vadd.f32 -1.3352628, %v1438_v63  ;;  %v1567_v12 = vadd.f32 -1.3352628, %v1439_v0  ;;  %v1690_v40 = vmul.f32 %v1562_v5, %v3242_v22  ;;  %v928_v3 = vmul.f32 0.0019295743, %v3282_v23 }
  0x95   : > { %v1691_v14 = vmul.f32 %v1563_v9, %v3244_v24  ;;  %v1692_v42 = vmul.f32 %v1564_v10, %v3246_v27  ;;  %v1693_v43 = vmul.f32 %v1565_v38, %v3248_v26  ;;  %v929_v36 = vmul.f32 0.0019295743, %v3284_v31  ;;  %v165_v63 = vld [vmem:[%s3068_s30 + $0xd8] sm:$0xff]  ;;  %v166_v0 = vld [vmem:[%s3068_s30 + $0xe0] sm:$0xff] }
  0x96   : > { %v1694_v16 = vmul.f32 %v1566_v39, %v3250_v28  ;;  %v1695_v44 = vmul.f32 %v1567_v12, %v3252_v29  ;;  %v1818_v18 = vadd.f32 4.058712, %v1690_v40  ;;  %v1056_v48 = vadd.f32 -0.02580689, %v928_v3 }
  0x97   : > { %v1819_v19 = vadd.f32 4.058712, %v1691_v14  ;;  %v1820_v20 = vadd.f32 4.058712, %v1692_v42  ;;  %v1821_v21 = vadd.f32 4.058712, %v1693_v43 }
  0x98   : > { %v1822_v25 = vadd.f32 4.058712, %v1694_v16  ;;  %v1823_v30 = vadd.f32 4.058712, %v1695_v44  ;;  %v1946_v32 = vmul.f32 %v1818_v18, %v3242_v22  ;;  %v1057_v53 = vadd.f32 -0.02580689, %v929_v36 }
  0x99   : > { %v1947_v33 = vmul.f32 %v1819_v19, %v3244_v24  ;;  %v1948_v2 = vmul.f32 %v1820_v20, %v3246_v27  ;;  %v1949_v34 = vmul.f32 %v1821_v21, %v3248_v26  ;;  %v293_v14 = vmul.f32 0.5, %v165_v63 }
  0x9a   : > { %v1950_v35 = vmul.f32 %v1822_v25, %v3250_v28  ;;  %v1951_v4 = vmul.f32 %v1823_v30, %v3252_v29  ;;  %v2074_v6 = vadd.f32 -4.934802, %v1946_v32  ;;  %v1185_v58 = vmul.f32 %v1057_v53, %v3284_v31 }
  0x9b   : > { %v2075_v7 = vadd.f32 -4.934802, %v1947_v33  ;;  %v2076_v8 = vadd.f32 -4.934802, %v1948_v2  ;;  %v2077_v37 = vadd.f32 -4.934802, %v1949_v34 }
  0x9c   : > { %v2078_v41 = vadd.f32 -4.934802, %v1950_v35  ;;  %v2079_v49 = vadd.f32 -4.934802, %v1951_v4  ;;  %v2202_v45 = vmul.f32 %v2074_v6, %v3242_v22  ;;  %v1313_v11 = vadd.f32 0.23533063, %v1185_v58 }
  0x9d   : > { %v2203_v46 = vmul.f32 %v2075_v7, %v3244_v24  ;;  %v2204_v47 = vmul.f32 %v2076_v8, %v3246_v27  ;;  %v2205_v50 = vmul.f32 %v2077_v37, %v3248_v26  ;;  %v1184_v24 = vmul.f32 %v1056_v48, %v3282_v23  ;;  %v162_v26 = vld [vmem:[%s3068_s30 + $0xc0] sm:$0xff] }
  0x9e   : > { %v2206_v51 = vmul.f32 %v2078_v41, %v3250_v28  ;;  %v2207_v52 = vmul.f32 %v2079_v49, %v3252_v29  ;;  %v2330_v54 = vadd.f32 1.0, %v2202_v45  ;;  %v163_v28 = vld [vmem:[%s3068_s30 + $0xc8] sm:$0xff]  ;;  %v164_v29 = vld [vmem:[%s3068_s30 + $0xd0] sm:$0xff]  ;;  %v290_v39 = vmul.f32 0.5, %v162_v26 }
  0x9f   : > { %v2331_v55 = vadd.f32 1.0, %v2203_v46  ;;  %v2332_v22 = vadd.f32 1.0, %v2204_v47  ;;  %v2333_v56 = vadd.f32 1.0, %v2205_v50  ;;  %v1312_v62 = vadd.f32 0.23533063, %v1184_v24 }
  0xa0   : > { %v2334_v57 = vadd.f32 1.0, %v2206_v51  ;;  %v2335_v27 = vadd.f32 1.0, %v2207_v52  ;;  %v2458_v59 = vmul.f32 %v2330_v54, %v2330_v54  ;;  %v291_v12 = vmul.f32 0.5, %v163_v28 }
  0xa1   : > { %v2459_v60 = vmul.f32 %v2331_v55, %v2331_v55  ;;  %v2460_v61 = vmul.f32 %v2332_v22, %v2332_v22  ;;  %v2461_v5 = vmul.f32 %v2333_v56, %v2333_v56  ;;  %v1440_v38 = vmul.f32 %v1312_v62, %v3282_v23 }
  0xa2   : > { %v2462_v9 = vmul.f32 %v2334_v57, %v2334_v57  ;;  %v2463_v10 = vmul.f32 %v2335_v27, %v2335_v27  ;;  %2586 = vst [vmem:[%s3152_s17 + $0x80] sm:$0xff] %v2458_v59  ;;  %v292_v13 = vmul.f32 0.5, %v164_v29  ;;  %v1441_v40 = vmul.f32 %v1313_v11, %v3284_v31 }
  0xa3   : > { %2587 = vst [vmem:[%s3152_s17 + $0x88] sm:$0xff] %v2459_v60  ;;  %2588 = vst [vmem:[%s3152_s17 + $0x90] sm:$0xff] %v2460_v61  ;;  %v294_v42 = vmul.f32 0.5, %v166_v0  ;;  %v295_v15 = vmul.f32 0.5, %v167_v1  ;;  %v1568_v43 = vadd.f32 -1.3352628, %v1440_v38 }
  0xa4   : > { %2589 = vst [vmem:[%s3152_s17 + $0x98] sm:$0xff] %v2461_v5  ;;  %2590 = vst [vmem:[%s3152_s17 + $0xa0] sm:$0xff] %v2462_v9  ;;  %v418_v16 = vadd.f32 0.5, %v290_v39  ;;  %v419_v44 = vadd.f32 0.5, %v291_v12  ;;  %v420_v17 = vadd.f32 0.5, %v292_v13  ;;  %v421_v19 = vadd.f32 0.5, %v293_v14 }
  0xa5   : > { %2591 = vst [vmem:[%s3152_s17 + $0xa8] sm:$0xff] %v2463_v10  ;;  %v1569_v18 = vadd.f32 -1.3352628, %v1441_v40  ;;  %v422_v20 = vadd.f32 0.5, %v294_v42  ;;  %v423_v21 = vadd.f32 0.5, %v295_v15  ;;  %v1696_v25 = vmul.f32 %v1568_v43, %v3282_v23 }
  0xa6   : > { %v546_v30 = vfloor.f32 %v418_v16  ;;  %v547_v32 = vfloor.f32 %v419_v44  ;;  %v548_v33 = vfloor.f32 %v420_v17  ;;  %v549_v3 = vfloor.f32 %v421_v19 }
  0xa7   : > { %v1697_v2 = vmul.f32 %v1569_v18, %v3284_v31  ;;  %v550_v34 = vfloor.f32 %v422_v20  ;;  %v551_v35 = vfloor.f32 %v423_v21  ;;  %v1824_v4 = vadd.f32 4.058712, %v1696_v25 }
  0xa8   : > { %v674_v36 = vsub.f32 %v290_v39, %v546_v30  ;;  %v675_v6 = vsub.f32 %v291_v12, %v547_v32  ;;  %v676_v7 = vsub.f32 %v292_v13, %v548_v33  ;;  %v677_v37 = vsub.f32 %v293_v14, %v549_v3  ;;  %v169_v13 = vld [vmem:[%s3068_s30 + $0xf8] sm:$0xff] }
  0xa9   : > { %v1825_v8 = vadd.f32 4.058712, %v1697_v2  ;;  %v678_v41 = vsub.f32 %v294_v42, %v550_v34  ;;  %v679_v49 = vsub.f32 %v295_v15, %v551_v35  ;;  %v1952_v45 = vmul.f32 %v1824_v4, %v3282_v23 }
  0xaa   : > { %v3319_v46 = vmul.f32 %v674_v36, %v674_v36  ;;  %v3321_v47 = vmul.f32 %v675_v6, %v675_v6  ;;  %v3323_v48 = vmul.f32 %v676_v7, %v676_v7  ;;  %v3326_v51 = vmul.f32 %v677_v37, %v677_v37 }
  0xab   : > { %v1953_v50 = vmul.f32 %v1825_v8, %v3284_v31  ;;  %v3328_v52 = vmul.f32 %v678_v41, %v678_v41  ;;  %v3330_v53 = vmul.f32 %v679_v49, %v679_v49  ;;  %v2080_v54 = vadd.f32 -4.934802, %v1952_v45 }
  0xac   : > { %v930_v55 = vmul.f32 0.0019295743, %v3319_v46  ;;  %v931_v22 = vmul.f32 0.0019295743, %v3321_v47  ;;  %v932_v56 = vmul.f32 0.0019295743, %v3323_v48 }
  0xad   : > { %v2081_v24 = vadd.f32 -4.934802, %v1953_v50  ;;  %v933_v57 = vmul.f32 0.0019295743, %v3326_v51  ;;  %v2208_v27 = vmul.f32 %v2080_v54, %v3282_v23  ;;  %v934_v28 = vmul.f32 0.0019295743, %v3328_v52 }
  0xae   : > { %v1058_v58 = vadd.f32 -0.02580689, %v930_v55  ;;  %v1059_v26 = vadd.f32 -0.02580689, %v931_v22  ;;  %v1060_v59 = vadd.f32 -0.02580689, %v932_v56 }
  0xaf   : > { %v2209_v29 = vmul.f32 %v2081_v24, %v3284_v31  ;;  %v1061_v60 = vadd.f32 -0.02580689, %v933_v57  ;;  %v935_v61 = vmul.f32 0.0019295743, %v3330_v53  ;;  %v2336_v62 = vadd.f32 1.0, %v2208_v27  ;;  %v168_v31 = vld [vmem:[%s3068_s30 + $0xf0] sm:$0xff] }
  0xb0   : > { %v1186_v63 = vmul.f32 %v1058_v58, %v3319_v46  ;;  %v1187_v0 = vmul.f32 %v1059_v26, %v3321_v47  ;;  %v1062_v1 = vadd.f32 -0.02580689, %v934_v28  ;;  %v1188_v5 = vmul.f32 %v1060_v59, %v3323_v48 }
  0xb1   : > { %v2337_v23 = vadd.f32 1.0, %v2209_v29  ;;  %v1189_v9 = vmul.f32 %v1061_v60, %v3326_v51  ;;  %v1063_v10 = vadd.f32 -0.02580689, %v935_v61  ;;  %v2464_v11 = vmul.f32 %v2336_v62, %v2336_v62 }
  0xb2   : > { %v1314_v38 = vadd.f32 0.23533063, %v1186_v63  ;;  %v1315_v39 = vadd.f32 0.23533063, %v1187_v0  ;;  %v1190_v12 = vmul.f32 %v1062_v1, %v3328_v52  ;;  %v1316_v14 = vadd.f32 0.23533063, %v1188_v5 }
  0xb3   : > { %v2465_v40 = vmul.f32 %v2337_v23, %v2337_v23  ;;  %v1317_v42 = vadd.f32 0.23533063, %v1189_v9  ;;  %v1191_v15 = vmul.f32 %v1063_v10, %v3330_v53  ;;  %2592 = vst [vmem:[%s3152_s17 + $0xb0] sm:$0xff] %v2464_v11  ;;  %v296_v17 = vmul.f32 0.5, %v168_v31 }
  0xb4   : > { %v1442_v43 = vmul.f32 %v1314_v38, %v3319_v46  ;;  %v1443_v16 = vmul.f32 %v1315_v39, %v3321_v47  ;;  %v1318_v44 = vadd.f32 0.23533063, %v1190_v12  ;;  %v1444_v18 = vmul.f32 %v1316_v14, %v3323_v48 }
  0xb5   : > { %2593 = vst [vmem:[%s3152_s17 + $0xb8] sm:$0xff] %v2465_v40  ;;  %v1445_v19 = vmul.f32 %v1317_v42, %v3326_v51  ;;  %v1319_v20 = vadd.f32 0.23533063, %v1191_v15  ;;  %v297_v21 = vmul.f32 0.5, %v169_v13  ;;  %v424_v33 = vadd.f32 0.5, %v296_v17 }
  0xb6   : > { %v1570_v25 = vadd.f32 -1.3352628, %v1442_v43  ;;  %v1571_v30 = vadd.f32 -1.3352628, %v1443_v16  ;;  %v1446_v32 = vmul.f32 %v1318_v44, %v3328_v52  ;;  %v1572_v2 = vadd.f32 -1.3352628, %v1444_v18 }
  0xb7   : > { %v1573_v3 = vadd.f32 -1.3352628, %v1445_v19  ;;  %v1447_v34 = vmul.f32 %v1319_v20, %v3330_v53  ;;  %v425_v35 = vadd.f32 0.5, %v297_v21  ;;  %v552_v7 = vfloor.f32 %v424_v33 }
  0xb8   : > { %v1698_v4 = vmul.f32 %v1570_v25, %v3319_v46  ;;  %v1699_v36 = vmul.f32 %v1571_v30, %v3321_v47  ;;  %v1574_v6 = vadd.f32 -1.3352628, %v1446_v32  ;;  %v1700_v8 = vmul.f32 %v1572_v2, %v3323_v48  ;;  %v173_v25 = vld [vmem:[%s3068_s30 + $0x118] sm:$0xff] }
  0xb9   : > { %v1701_v37 = vmul.f32 %v1573_v3, %v3326_v51  ;;  %v1575_v41 = vadd.f32 -1.3352628, %v1447_v34  ;;  %v553_v49 = vfloor.f32 %v425_v35  ;;  %v680_v55 = vsub.f32 %v296_v17, %v552_v7  ;;  %v171_v17 = vld [vmem:[%s3068_s30 + $0x108] sm:$0xff] }
  0xba   : > { %v1826_v45 = vadd.f32 4.058712, %v1698_v4  ;;  %v1827_v50 = vadd.f32 4.058712, %v1699_v36  ;;  %v1702_v54 = vmul.f32 %v1574_v6, %v3328_v52  ;;  %v1828_v22 = vadd.f32 4.058712, %v1700_v8 }
  0xbb   : > { %v1829_v24 = vadd.f32 4.058712, %v1701_v37  ;;  %v1703_v56 = vmul.f32 %v1575_v41, %v3330_v53  ;;  %v681_v57 = vsub.f32 %v297_v21, %v553_v49  ;;  %v3364_v28 = vmul.f32 %v680_v55, %v680_v55  ;;  %v175_v36 = vld [vmem:[%s3068_s30 + $0x128] sm:$0xff] }
  0xbc   : > { %v1954_v27 = vmul.f32 %v1826_v45, %v3319_v46  ;;  %v1955_v58 = vmul.f32 %v1827_v50, %v3321_v47  ;;  %v1830_v26 = vadd.f32 4.058712, %v1702_v54  ;;  %v1956_v29 = vmul.f32 %v1828_v22, %v3323_v48 }
  0xbd   : > { %v1957_v59 = vmul.f32 %v1829_v24, %v3326_v51  ;;  %v1831_v60 = vadd.f32 4.058712, %v1703_v56  ;;  %v3368_v61 = vmul.f32 %v681_v57, %v681_v57  ;;  %v936_v1 = vmul.f32 0.0019295743, %v3364_v28 }
  0xbe   : > { %v2082_v62 = vadd.f32 -4.934802, %v1954_v27  ;;  %v2083_v63 = vadd.f32 -4.934802, %v1955_v58  ;;  %v1958_v0 = vmul.f32 %v1830_v26, %v3328_v52  ;;  %v2084_v23 = vadd.f32 -4.934802, %v1956_v29 }
  0xbf   : > { %v2085_v5 = vadd.f32 -4.934802, %v1957_v59  ;;  %v1959_v9 = vmul.f32 %v1831_v60, %v3330_v53  ;;  %v937_v10 = vmul.f32 0.0019295743, %v3368_v61  ;;  %v1064_v39 = vadd.f32 -0.02580689, %v936_v1 }
  0xc0   : > { %v2210_v31 = vmul.f32 %v2082_v62, %v3319_v46  ;;  %v2211_v11 = vmul.f32 %v2083_v63, %v3321_v47  ;;  %v2086_v38 = vadd.f32 -4.934802, %v1958_v0  ;;  %v2212_v12 = vmul.f32 %v2084_v23, %v3323_v48 }
  0xc1   : > { %v2213_v13 = vmul.f32 %v2085_v5, %v3326_v51  ;;  %v2087_v40 = vadd.f32 -4.934802, %v1959_v9  ;;  %v1065_v14 = vadd.f32 -0.02580689, %v937_v10  ;;  %v1192_v46 = vmul.f32 %v1064_v39, %v3364_v28  ;;  %v170_v51 = vld [vmem:[%s3068_s30 + $0x100] sm:$0xff] }
  0xc2   : > { %v2338_v42 = vadd.f32 1.0, %v2210_v31  ;;  %v2339_v15 = vadd.f32 1.0, %v2211_v11  ;;  %v2214_v43 = vmul.f32 %v2086_v38, %v3328_v52  ;;  %v2340_v16 = vadd.f32 1.0, %v2212_v12  ;;  %v172_v52 = vld [vmem:[%s3068_s30 + $0x110] sm:$0xff] }
  0xc3   : > { %v2341_v47 = vadd.f32 1.0, %v2213_v13  ;;  %v2215_v44 = vmul.f32 %v2087_v40, %v3330_v53  ;;  %v1193_v48 = vmul.f32 %v1065_v14, %v3368_v61  ;;  %v1320_v21 = vadd.f32 0.23533063, %v1192_v46  ;;  %v174_v53 = vld [vmem:[%s3068_s30 + $0x120] sm:$0xff] }
  0xc4   : > { %v2466_v18 = vmul.f32 %v2338_v42, %v2338_v42  ;;  %v2467_v19 = vmul.f32 %v2339_v15, %v2339_v15  ;;  %v2342_v20 = vadd.f32 1.0, %v2214_v43  ;;  %v2468_v30 = vmul.f32 %v2340_v16, %v2340_v16 }
  0xc5   : > { %v2469_v32 = vmul.f32 %v2341_v47, %v2341_v47  ;;  %v2343_v33 = vadd.f32 1.0, %v2215_v44  ;;  %v1321_v2 = vadd.f32 0.23533063, %v1193_v48  ;;  %v1448_v34 = vmul.f32 %v1320_v21, %v3364_v28 }
  0xc6   : > { %2594 = vst [vmem:[%s3152_s17 + $0xc0] sm:$0xff] %v2466_v18  ;;  %2595 = vst [vmem:[%s3152_s17 + $0xc8] sm:$0xff] %v2467_v19  ;;  %v2470_v3 = vmul.f32 %v2342_v20, %v2342_v20  ;;  %v298_v35 = vmul.f32 0.5, %v170_v51  ;;  %v299_v4 = vmul.f32 0.5, %v171_v17  ;;  %v300_v8 = vmul.f32 0.5, %v172_v52 }
  0xc7   : > { %2596 = vst [vmem:[%s3152_s17 + $0xd0] sm:$0xff] %v2468_v30  ;;  %2597 = vst [vmem:[%s3152_s17 + $0xd8] sm:$0xff] %v2469_v32  ;;  %v2471_v6 = vmul.f32 %v2343_v33, %v2343_v33  ;;  %v1449_v7 = vmul.f32 %v1321_v2, %v3368_v61  ;;  %v301_v37 = vmul.f32 0.5, %v173_v25  ;;  %v1576_v41 = vadd.f32 -1.3352628, %v1448_v34 }
  0xc8   : > { %2598 = vst [vmem:[%s3152_s17 + $0xe0] sm:$0xff] %v2470_v3  ;;  %v426_v49 = vadd.f32 0.5, %v298_v35  ;;  %v427_v45 = vadd.f32 0.5, %v299_v4  ;;  %v302_v50 = vmul.f32 0.5, %v174_v53  ;;  %v428_v55 = vadd.f32 0.5, %v300_v8 }
  0xc9   : > { %2599 = vst [vmem:[%s3152_s17 + $0xe8] sm:$0xff] %v2471_v6  ;;  %v1577_v54 = vadd.f32 -1.3352628, %v1449_v7  ;;  %v429_v22 = vadd.f32 0.5, %v301_v37  ;;  %v303_v24 = vmul.f32 0.5, %v175_v36  ;;  %v1704_v56 = vmul.f32 %v1576_v41, %v3364_v28  ;;  %v177_v7 = vld [vmem:[%s3068_s30 + $0x138] sm:$0xff] }
  0xca   : > { %v554_v57 = vfloor.f32 %v426_v49  ;;  %v555_v27 = vfloor.f32 %v427_v45  ;;  %v430_v58 = vadd.f32 0.5, %v302_v50  ;;  %v556_v29 = vfloor.f32 %v428_v55 }
  0xcb   : > { %v1705_v26 = vmul.f32 %v1577_v54, %v3368_v61  ;;  %v557_v59 = vfloor.f32 %v429_v22  ;;  %v431_v60 = vadd.f32 0.5, %v303_v24  ;;  %v1832_v62 = vadd.f32 4.058712, %v1704_v56 }
  0xcc   : > { %v682_v63 = vsub.f32 %v298_v35, %v554_v57  ;;  %v683_v0 = vsub.f32 %v299_v4, %v555_v27  ;;  %v558_v1 = vfloor.f32 %v430_v58  ;;  %v684_v5 = vsub.f32 %v300_v8, %v556_v29 }
  0xcd   : > { %v1833_v23 = vadd.f32 4.058712, %v1705_v26  ;;  %v685_v9 = vsub.f32 %v301_v37, %v557_v59  ;;  %v559_v10 = vfloor.f32 %v431_v60  ;;  %v1960_v31 = vmul.f32 %v1832_v62, %v3364_v28 }
  0xce   : > { %v3399_v11 = vmul.f32 %v682_v63, %v682_v63  ;;  %v3401_v38 = vmul.f32 %v683_v0, %v683_v0  ;;  %v686_v39 = vsub.f32 %v302_v50, %v558_v1  ;;  %v3404_v13 = vmul.f32 %v684_v5, %v684_v5 }
  0xcf   : > { %v1961_v12 = vmul.f32 %v1833_v23, %v3368_v61  ;;  %v3406_v40 = vmul.f32 %v685_v9, %v685_v9  ;;  %v687_v14 = vsub.f32 %v303_v24, %v559_v10  ;;  %v2088_v42 = vadd.f32 -4.934802, %v1960_v31 }
  0xd0   : > { %v938_v15 = vmul.f32 0.0019295743, %v3399_v11  ;;  %v939_v43 = vmul.f32 0.0019295743, %v3401_v38  ;;  %v3410_v46 = vmul.f32 %v686_v39, %v686_v39  ;;  %v940_v47 = vmul.f32 0.0019295743, %v3404_v13 }
  0xd1   : > { %v2089_v16 = vadd.f32 -4.934802, %v1961_v12  ;;  %v941_v44 = vmul.f32 0.0019295743, %v3406_v40  ;;  %v3414_v48 = vmul.f32 %v687_v14, %v687_v14  ;;  %v2216_v51 = vmul.f32 %v2088_v42, %v3364_v28 }
  0xd2   : > { %v1066_v17 = vadd.f32 -0.02580689, %v938_v15  ;;  %v1067_v18 = vadd.f32 -0.02580689, %v939_v43  ;;  %v942_v19 = vmul.f32 0.0019295743, %v3410_v46 }
  0xd3   : > { %v2217_v20 = vmul.f32 %v2089_v16, %v3368_v61  ;;  %v1068_v21 = vadd.f32 -0.02580689, %v940_v47  ;;  %v1069_v52 = vadd.f32 -0.02580689, %v941_v44  ;;  %v943_v25 = vmul.f32 0.0019295743, %v3414_v48 }
  0xd4   : > { %v2344_v30 = vadd.f32 1.0, %v2216_v51  ;;  %v1194_v32 = vmul.f32 %v1066_v17, %v3399_v11  ;;  %v1195_v33 = vmul.f32 %v1067_v18, %v3401_v38  ;;  %v1070_v2 = vadd.f32 -0.02580689, %v942_v19  ;;  %v176_v61 = vld [vmem:[%s3068_s30 + $0x130] sm:$0xff] }
  0xd5   : > { %v2345_v28 = vadd.f32 1.0, %v2217_v20  ;;  %v1196_v53 = vmul.f32 %v1068_v21, %v3404_v13  ;;  %v1197_v3 = vmul.f32 %v1069_v52, %v3406_v40  ;;  %v1071_v34 = vadd.f32 -0.02580689, %v943_v25 }
  0xd6   : > { %v2472_v35 = vmul.f32 %v2344_v30, %v2344_v30  ;;  %v1322_v4 = vadd.f32 0.23533063, %v1194_v32  ;;  %v1323_v36 = vadd.f32 0.23533063, %v1195_v33  ;;  %v1198_v6 = vmul.f32 %v1070_v2, %v3410_v46 }
  0xd7   : > { %v2473_v8 = vmul.f32 %v2345_v28, %v2345_v28  ;;  %v1324_v37 = vadd.f32 0.23533063, %v1196_v53  ;;  %v1325_v41 = vadd.f32 0.23533063, %v1197_v3  ;;  %v1199_v49 = vmul.f32 %v1071_v34, %v3414_v48 }
  0xd8   : > { %2600 = vst [vmem:[%s3152_s17 + $0xf0] sm:$0xff] %v2472_v35  ;;  %v1450_v45 = vmul.f32 %v1322_v4, %v3399_v11  ;;  %v1451_v50 = vmul.f32 %v1323_v36, %v3401_v38  ;;  %v1326_v54 = vadd.f32 0.23533063, %v1198_v6  ;;  %v304_v55 = vmul.f32 0.5, %v176_v61 }
  0xd9   : > { %2601 = vst [vmem:[%s3152_s17 + $0xf8] sm:$0xff] %v2473_v8  ;;  %v1452_v22 = vmul.f32 %v1324_v37, %v3404_v13  ;;  %v1453_v24 = vmul.f32 %v1325_v41, %v3406_v40  ;;  %v1327_v56 = vadd.f32 0.23533063, %v1199_v49  ;;  %v305_v57 = vmul.f32 0.5, %v177_v7 }
  0xda   : > { %v1578_v27 = vadd.f32 -1.3352628, %v1450_v45  ;;  %v1579_v58 = vadd.f32 -1.3352628, %v1451_v50  ;;  %v1454_v26 = vmul.f32 %v1326_v54, %v3410_v46  ;;  %v432_v29 = vadd.f32 0.5, %v304_v55 }
  0xdb   : > { %v1580_v59 = vadd.f32 -1.3352628, %v1452_v22  ;;  %v1581_v60 = vadd.f32 -1.3352628, %v1453_v24  ;;  %v1455_v62 = vmul.f32 %v1327_v56, %v3414_v48  ;;  %v433_v63 = vadd.f32 0.5, %v305_v57 }
  0xdc   : > { %v1706_v0 = vmul.f32 %v1578_v27, %v3399_v11  ;;  %v1707_v1 = vmul.f32 %v1579_v58, %v3401_v38  ;;  %v1582_v23 = vadd.f32 -1.3352628, %v1454_v26  ;;  %v560_v5 = vfloor.f32 %v432_v29  ;;  %v181_v27 = vld [vmem:[%s3068_s30 + $0x158] sm:$0xff] }
  0xdd   : > { %v1708_v9 = vmul.f32 %v1580_v59, %v3404_v13  ;;  %v1709_v10 = vmul.f32 %v1581_v60, %v3406_v40  ;;  %v1583_v31 = vadd.f32 -1.3352628, %v1455_v62  ;;  %v561_v39 = vfloor.f32 %v433_v63 }
  0xde   : > { %v1834_v12 = vadd.f32 4.058712, %v1706_v0  ;;  %v1835_v14 = vadd.f32 4.058712, %v1707_v1  ;;  %v1710_v42 = vmul.f32 %v1582_v23, %v3410_v46  ;;  %v688_v15 = vsub.f32 %v304_v55, %v560_v5  ;;  %v179_v55 = vld [vmem:[%s3068_s30 + $0x148] sm:$0xff] }
  0xdf   : > { %v1836_v43 = vadd.f32 4.058712, %v1708_v9  ;;  %v1837_v16 = vadd.f32 4.058712, %v1709_v10  ;;  %v1711_v47 = vmul.f32 %v1583_v31, %v3414_v48  ;;  %v689_v44 = vsub.f32 %v305_v57, %v561_v39  ;;  %v183_v1 = vld [vmem:[%s3068_s30 + $0x168] sm:$0xff] }
  0xe0   : > { %v1962_v51 = vmul.f32 %v1834_v12, %v3399_v11  ;;  %v1963_v17 = vmul.f32 %v1835_v14, %v3401_v38  ;;  %v1838_v18 = vadd.f32 4.058712, %v1710_v42  ;;  %v3444_v19 = vmul.f32 %v688_v15, %v688_v15 }
  0xe1   : > { %v1964_v20 = vmul.f32 %v1836_v43, %v3404_v13  ;;  %v1965_v21 = vmul.f32 %v1837_v16, %v3406_v40  ;;  %v1839_v52 = vadd.f32 4.058712, %v1711_v47  ;;  %v3448_v25 = vmul.f32 %v689_v44, %v689_v44 }
  0xe2   : > { %v2090_v30 = vadd.f32 -4.934802, %v1962_v51  ;;  %v2091_v32 = vadd.f32 -4.934802, %v1963_v17  ;;  %v1966_v33 = vmul.f32 %v1838_v18, %v3410_v46  ;;  %v944_v2 = vmul.f32 0.0019295743, %v3444_v19 }
  0xe3   : > { %v2092_v28 = vadd.f32 -4.934802, %v1964_v20  ;;  %v2093_v53 = vadd.f32 -4.934802, %v1965_v21  ;;  %v1967_v3 = vmul.f32 %v1839_v52, %v3414_v48  ;;  %v945_v34 = vmul.f32 0.0019295743, %v3448_v25 }
  0xe4   : > { %v2218_v61 = vmul.f32 %v2090_v30, %v3399_v11  ;;  %v2219_v35 = vmul.f32 %v2091_v32, %v3401_v38  ;;  %v2094_v4 = vadd.f32 -4.934802, %v1966_v33  ;;  %v1072_v36 = vadd.f32 -0.02580689, %v944_v2 }
  0xe5   : > { %v2220_v6 = vmul.f32 %v2092_v28, %v3404_v13  ;;  %v2221_v7 = vmul.f32 %v2093_v53, %v3406_v40  ;;  %v2095_v8 = vadd.f32 -4.934802, %v1967_v3  ;;  %v1073_v37 = vadd.f32 -0.02580689, %v945_v34  ;;  %v178_v40 = vld [vmem:[%s3068_s30 + $0x140] sm:$0xff] }
  0xe6   : > { %v2346_v41 = vadd.f32 1.0, %v2218_v61  ;;  %v2347_v49 = vadd.f32 1.0, %v2219_v35  ;;  %v2222_v45 = vmul.f32 %v2094_v4, %v3410_v46  ;;  %v1200_v11 = vmul.f32 %v1072_v36, %v3444_v19  ;;  %v180_v46 = vld [vmem:[%s3068_s30 + $0x150] sm:$0xff] }
  0xe7   : > { %v2348_v50 = vadd.f32 1.0, %v2220_v6  ;;  %v2349_v38 = vadd.f32 1.0, %v2221_v7  ;;  %v2223_v54 = vmul.f32 %v2095_v8, %v3414_v48  ;;  %v1201_v13 = vmul.f32 %v1073_v37, %v3448_v25  ;;  %v182_v48 = vld [vmem:[%s3068_s30 + $0x160] sm:$0xff] }
  0xe8   : > { %v2474_v22 = vmul.f32 %v2346_v41, %v2346_v41  ;;  %v2475_v24 = vmul.f32 %v2347_v49, %v2347_v49  ;;  %v2350_v56 = vadd.f32 1.0, %v2222_v45  ;;  %v1328_v57 = vadd.f32 0.23533063, %v1200_v11 }
  0xe9   : > { %v2476_v58 = vmul.f32 %v2348_v50, %v2348_v50  ;;  %v2477_v26 = vmul.f32 %v2349_v38, %v2349_v38  ;;  %v2351_v29 = vadd.f32 1.0, %v2223_v54  ;;  %v1329_v59 = vadd.f32 0.23533063, %v1201_v13 }
  0xea   : > { %2602 = vst [vmem:[%s3152_s17 + $0x100] sm:$0xff] %v2474_v22  ;;  %2603 = vst [vmem:[%s3152_s17 + $0x108] sm:$0xff] %v2475_v24  ;;  %v2478_v60 = vmul.f32 %v2350_v56, %v2350_v56  ;;  %v1456_v62 = vmul.f32 %v1328_v57, %v3444_v19  ;;  %v306_v63 = vmul.f32 0.5, %v178_v40  ;;  %v307_v0 = vmul.f32 0.5, %v179_v55 }
  0xeb   : > { %2604 = vst [vmem:[%s3152_s17 + $0x110] sm:$0xff] %v2476_v58  ;;  %2605 = vst [vmem:[%s3152_s17 + $0x118] sm:$0xff] %v2477_v26  ;;  %v2479_v23 = vmul.f32 %v2351_v29, %v2351_v29  ;;  %v1457_v5 = vmul.f32 %v1329_v59, %v3448_v25  ;;  %v308_v9 = vmul.f32 0.5, %v180_v46  ;;  %v309_v10 = vmul.f32 0.5, %v181_v27 }
  0xec   : > { %2606 = vst [vmem:[%s3152_s17 + $0x120] sm:$0xff] %v2478_v60  ;;  %v1584_v31 = vadd.f32 -1.3352628, %v1456_v62  ;;  %v434_v39 = vadd.f32 0.5, %v306_v63  ;;  %v435_v12 = vadd.f32 0.5, %v307_v0  ;;  %v310_v14 = vmul.f32 0.5, %v182_v48 }
  0xed   : > { %2607 = vst [vmem:[%s3152_s17 + $0x128] sm:$0xff] %v2479_v23  ;;  %v1585_v42 = vadd.f32 -1.3352628, %v1457_v5  ;;  %v436_v15 = vadd.f32 0.5, %v308_v9  ;;  %v437_v43 = vadd.f32 0.5, %v309_v10  ;;  %v311_v16 = vmul.f32 0.5, %v183_v1 }
  0xee   : > { %v1712_v47 = vmul.f32 %v1584_v31, %v3444_v19  ;;  %v562_v44 = vfloor.f32 %v434_v39  ;;  %v563_v51 = vfloor.f32 %v435_v12  ;;  %v438_v17 = vadd.f32 0.5, %v310_v14  ;;  %v185_v5 = vld [vmem:[%s3068_s30 + $0x178] sm:$0xff] }
  0xef   : > { %v1713_v18 = vmul.f32 %v1585_v42, %v3448_v25  ;;  %v564_v20 = vfloor.f32 %v436_v15  ;;  %v565_v21 = vfloor.f32 %v437_v43  ;;  %v439_v52 = vadd.f32 0.5, %v311_v16 }
  0xf0   : > { %v1840_v30 = vadd.f32 4.058712, %v1712_v47  ;;  %v690_v32 = vsub.f32 %v306_v63, %v562_v44  ;;  %v691_v33 = vsub.f32 %v307_v0, %v563_v51  ;;  %v566_v2 = vfloor.f32 %v438_v17 }
  0xf1   : > { %v1841_v28 = vadd.f32 4.058712, %v1713_v18  ;;  %v692_v53 = vsub.f32 %v308_v9, %v564_v20  ;;  %v693_v3 = vsub.f32 %v309_v10, %v565_v21  ;;  %v567_v34 = vfloor.f32 %v439_v52 }
  0xf2   : > { %v1968_v61 = vmul.f32 %v1840_v30, %v3444_v19  ;;  %v3479_v35 = vmul.f32 %v690_v32, %v690_v32  ;;  %v3481_v4 = vmul.f32 %v691_v33, %v691_v33  ;;  %v694_v36 = vsub.f32 %v310_v14, %v566_v2 }
  0xf3   : > { %v1969_v6 = vmul.f32 %v1841_v28, %v3448_v25  ;;  %v3484_v7 = vmul.f32 %v692_v53, %v692_v53  ;;  %v3486_v8 = vmul.f32 %v693_v3, %v693_v3  ;;  %v695_v37 = vsub.f32 %v311_v16, %v567_v34 }
  0xf4   : > { %v2096_v41 = vadd.f32 -4.934802, %v1968_v61  ;;  %v946_v49 = vmul.f32 0.0019295743, %v3479_v35  ;;  %v947_v45 = vmul.f32 0.0019295743, %v3481_v4  ;;  %v3490_v11 = vmul.f32 %v694_v36, %v694_v36 }
  0xf5   : > { %v2097_v50 = vadd.f32 -4.934802, %v1969_v6  ;;  %v948_v38 = vmul.f32 0.0019295743, %v3484_v7  ;;  %v949_v54 = vmul.f32 0.0019295743, %v3486_v8  ;;  %v3494_v13 = vmul.f32 %v695_v37, %v695_v37 }
  0xf6   : > { %v2224_v40 = vmul.f32 %v2096_v41, %v3444_v19  ;;  %v1074_v55 = vadd.f32 -0.02580689, %v946_v49  ;;  %v1075_v22 = vadd.f32 -0.02580689, %v947_v45  ;;  %v950_v24 = vmul.f32 0.0019295743, %v3490_v11 }
  0xf7   : > { %v2225_v56 = vmul.f32 %v2097_v50, %v3448_v25  ;;  %v1076_v57 = vadd.f32 -0.02580689, %v948_v38  ;;  %v1077_v46 = vadd.f32 -0.02580689, %v949_v54  ;;  %v951_v27 = vmul.f32 0.0019295743, %v3494_v13 }
  0xf8   : > { %v2352_v58 = vadd.f32 1.0, %v2224_v40  ;;  %v1202_v26 = vmul.f32 %v1074_v55, %v3479_v35  ;;  %v1203_v29 = vmul.f32 %v1075_v22, %v3481_v4  ;;  %v1078_v59 = vadd.f32 -0.02580689, %v950_v24  ;;  %v184_v25 = vld [vmem:[%s3068_s30 + $0x170] sm:$0xff] }
  0xf9   : > { %v2353_v19 = vadd.f32 1.0, %v2225_v56  ;;  %v1204_v48 = vmul.f32 %v1076_v57, %v3484_v7  ;;  %v1205_v60 = vmul.f32 %v1077_v46, %v3486_v8  ;;  %v1079_v62 = vadd.f32 -0.02580689, %v951_v27 }
  0xfa   : > { %v2480_v63 = vmul.f32 %v2352_v58, %v2352_v58  ;;  %v1330_v0 = vadd.f32 0.23533063, %v1202_v26  ;;  %v1331_v1 = vadd.f32 0.23533063, %v1203_v29  ;;  %v1206_v23 = vmul.f32 %v1078_v59, %v3490_v11 }
  0xfb   : > { %v2481_v9 = vmul.f32 %v2353_v19, %v2353_v19  ;;  %v1332_v10 = vadd.f32 0.23533063, %v1204_v48  ;;  %v1333_v31 = vadd.f32 0.23533063, %v1205_v60  ;;  %v1207_v39 = vmul.f32 %v1079_v62, %v3494_v13 }
  0xfc   : > { %2608 = vst [vmem:[%s3152_s17 + $0x130] sm:$0xff] %v2480_v63  ;;  %v1458_v12 = vmul.f32 %v1330_v0, %v3479_v35  ;;  %v1459_v14 = vmul.f32 %v1331_v1, %v3481_v4  ;;  %v1334_v42 = vadd.f32 0.23533063, %v1206_v23  ;;  %v312_v15 = vmul.f32 0.5, %v184_v25 }
  0xfd   : > { %2609 = vst [vmem:[%s3152_s17 + $0x138] sm:$0xff] %v2481_v9  ;;  %v1460_v43 = vmul.f32 %v1332_v10, %v3484_v7  ;;  %v1461_v16 = vmul.f32 %v1333_v31, %v3486_v8  ;;  %v1335_v47 = vadd.f32 0.23533063, %v1207_v39  ;;  %v313_v44 = vmul.f32 0.5, %v185_v5 }
  0xfe   : > { %v1586_v51 = vadd.f32 -1.3352628, %v1458_v12  ;;  %v1587_v17 = vadd.f32 -1.3352628, %v1459_v14  ;;  %v1462_v18 = vmul.f32 %v1334_v42, %v3490_v11  ;;  %v440_v20 = vadd.f32 0.5, %v312_v15 }
  0xff   : > { %v1588_v21 = vadd.f32 -1.3352628, %v1460_v43  ;;  %v1589_v52 = vadd.f32 -1.3352628, %v1461_v16  ;;  %v1463_v30 = vmul.f32 %v1335_v47, %v3494_v13  ;;  %v441_v32 = vadd.f32 0.5, %v313_v44 }
 0x100   : > { %v1714_v33 = vmul.f32 %v1586_v51, %v3479_v35  ;;  %v1715_v2 = vmul.f32 %v1587_v17, %v3481_v4  ;;  %v1590_v28 = vadd.f32 -1.3352628, %v1462_v18  ;;  %v568_v53 = vfloor.f32 %v440_v20  ;;  %v189_v51 = vld [vmem:[%s3068_s30 + $0x198] sm:$0xff] }
 0x101   : > { %v1716_v3 = vmul.f32 %v1588_v21, %v3484_v7  ;;  %v1717_v34 = vmul.f32 %v1589_v52, %v3486_v8  ;;  %v1591_v61 = vadd.f32 -1.3352628, %v1463_v30  ;;  %v569_v36 = vfloor.f32 %v441_v32 }
 0x102   : > { %v1842_v6 = vadd.f32 4.058712, %v1714_v33  ;;  %v1843_v37 = vadd.f32 4.058712, %v1715_v2  ;;  %v1718_v41 = vmul.f32 %v1590_v28, %v3490_v11  ;;  %v696_v49 = vsub.f32 %v312_v15, %v568_v53  ;;  %v187_v15 = vld [vmem:[%s3068_s30 + $0x188] sm:$0xff] }
 0x103   : > { %v1844_v45 = vadd.f32 4.058712, %v1716_v3  ;;  %v1845_v50 = vadd.f32 4.058712, %v1717_v34  ;;  %v1719_v38 = vmul.f32 %v1591_v61, %v3494_v13  ;;  %v697_v54 = vsub.f32 %v313_v44, %v569_v36  ;;  %v191_v2 = vld [vmem:[%s3068_s30 + $0x1a8] sm:$0xff] }
 0x104   : > { %v1970_v40 = vmul.f32 %v1842_v6, %v3479_v35  ;;  %v1971_v55 = vmul.f32 %v1843_v37, %v3481_v4  ;;  %v1846_v22 = vadd.f32 4.058712, %v1718_v41  ;;  %v3524_v24 = vmul.f32 %v696_v49, %v696_v49 }
 0x105   : > { %v1972_v56 = vmul.f32 %v1844_v45, %v3484_v7  ;;  %v1973_v57 = vmul.f32 %v1845_v50, %v3486_v8  ;;  %v1847_v46 = vadd.f32 4.058712, %v1719_v38  ;;  %v3528_v27 = vmul.f32 %v697_v54, %v697_v54 }
 0x106   : > { %v2098_v58 = vadd.f32 -4.934802, %v1970_v40  ;;  %v2099_v26 = vadd.f32 -4.934802, %v1971_v55  ;;  %v1974_v29 = vmul.f32 %v1846_v22, %v3490_v11  ;;  %v952_v59 = vmul.f32 0.0019295743, %v3524_v24 }
 0x107   : > { %v2100_v19 = vadd.f32 -4.934802, %v1972_v56  ;;  %v2101_v48 = vadd.f32 -4.934802, %v1973_v57  ;;  %v1975_v60 = vmul.f32 %v1847_v46, %v3494_v13  ;;  %v953_v62 = vmul.f32 0.0019295743, %v3528_v27 }
 0x108   : > { %v2226_v25 = vmul.f32 %v2098_v58, %v3479_v35  ;;  %v2227_v63 = vmul.f32 %v2099_v26, %v3481_v4  ;;  %v2102_v0 = vadd.f32 -4.934802, %v1974_v29  ;;  %v1080_v1 = vadd.f32 -0.02580689, %v952_v59 }
 0x109   : > { %v2228_v23 = vmul.f32 %v2100_v19, %v3484_v7  ;;  %v2229_v5 = vmul.f32 %v2101_v48, %v3486_v8  ;;  %v2103_v9 = vadd.f32 -4.934802, %v1975_v60  ;;  %v1081_v10 = vadd.f32 -0.02580689, %v953_v62  ;;  %v186_v8 = vld [vmem:[%s3068_s30 + $0x180] sm:$0xff] }
 0x10a   : > { %v2354_v31 = vadd.f32 1.0, %v2226_v25  ;;  %v2355_v39 = vadd.f32 1.0, %v2227_v63  ;;  %v2230_v12 = vmul.f32 %v2102_v0, %v3490_v11  ;;  %v1208_v35 = vmul.f32 %v1080_v1, %v3524_v24  ;;  %v188_v11 = vld [vmem:[%s3068_s30 + $0x190] sm:$0xff] }
 0x10b   : > { %v2356_v14 = vadd.f32 1.0, %v2228_v23  ;;  %v2357_v4 = vadd.f32 1.0, %v2229_v5  ;;  %v2231_v42 = vmul.f32 %v2103_v9, %v3494_v13  ;;  %v1209_v7 = vmul.f32 %v1081_v10, %v3528_v27  ;;  %v190_v13 = vld [vmem:[%s3068_s30 + $0x1a0] sm:$0xff] }
 0x10c   : > { %v2482_v43 = vmul.f32 %v2354_v31, %v2354_v31  ;;  %v2483_v16 = vmul.f32 %v2355_v39, %v2355_v39  ;;  %v2358_v47 = vadd.f32 1.0, %v2230_v12  ;;  %v1336_v44 = vadd.f32 0.23533063, %v1208_v35 }
 0x10d   : > { %v2484_v17 = vmul.f32 %v2356_v14, %v2356_v14  ;;  %v2485_v18 = vmul.f32 %v2357_v4, %v2357_v4  ;;  %v2359_v20 = vadd.f32 1.0, %v2231_v42  ;;  %v1337_v21 = vadd.f32 0.23533063, %v1209_v7 }
 0x10e   : > { %2610 = vst [vmem:[%s3152_s17 + $0x140] sm:$0xff] %v2482_v43  ;;  %2611 = vst [vmem:[%s3152_s17 + $0x148] sm:$0xff] %v2483_v16  ;;  %v2486_v52 = vmul.f32 %v2358_v47, %v2358_v47  ;;  %v1464_v30 = vmul.f32 %v1336_v44, %v3524_v24  ;;  %v314_v32 = vmul.f32 0.5, %v186_v8  ;;  %v315_v33 = vmul.f32 0.5, %v187_v15 }
 0x10f   : > { %2612 = vst [vmem:[%s3152_s17 + $0x150] sm:$0xff] %v2484_v17  ;;  %2613 = vst [vmem:[%s3152_s17 + $0x158] sm:$0xff] %v2485_v18  ;;  %v2487_v28 = vmul.f32 %v2359_v20, %v2359_v20  ;;  %v1465_v53 = vmul.f32 %v1337_v21, %v3528_v27  ;;  %v316_v3 = vmul.f32 0.5, %v188_v11  ;;  %v317_v34 = vmul.f32 0.5, %v189_v51 }
 0x110   : > { %2614 = vst [vmem:[%s3152_s17 + $0x160] sm:$0xff] %v2486_v52  ;;  %v1592_v61 = vadd.f32 -1.3352628, %v1464_v30  ;;  %v442_v36 = vadd.f32 0.5, %v314_v32  ;;  %v443_v6 = vadd.f32 0.5, %v315_v33  ;;  %v318_v37 = vmul.f32 0.5, %v190_v13 }
 0x111   : > { %2615 = vst [vmem:[%s3152_s17 + $0x168] sm:$0xff] %v2487_v28  ;;  %v1593_v41 = vadd.f32 -1.3352628, %v1465_v53  ;;  %v444_v49 = vadd.f32 0.5, %v316_v3  ;;  %v445_v45 = vadd.f32 0.5, %v317_v34  ;;  %v319_v50 = vmul.f32 0.5, %v191_v2 }
 0x112   : > { %v1720_v38 = vmul.f32 %v1592_v61, %v3524_v24  ;;  %v570_v54 = vfloor.f32 %v442_v36  ;;  %v571_v40 = vfloor.f32 %v443_v6  ;;  %v446_v55 = vadd.f32 0.5, %v318_v37  ;;  %v193_v53 = vld [vmem:[%s3068_s30 + $0x1b8] sm:$0xff] }
 0x113   : > { %v1721_v22 = vmul.f32 %v1593_v41, %v3528_v27  ;;  %v572_v56 = vfloor.f32 %v444_v49  ;;  %v573_v57 = vfloor.f32 %v445_v45  ;;  %v447_v46 = vadd.f32 0.5, %v319_v50 }
 0x114   : > { %v1848_v58 = vadd.f32 4.058712, %v1720_v38  ;;  %v698_v26 = vsub.f32 %v314_v32, %v570_v54  ;;  %v699_v29 = vsub.f32 %v315_v33, %v571_v40  ;;  %v574_v59 = vfloor.f32 %v446_v55 }
 0x115   : > { %v1849_v19 = vadd.f32 4.058712, %v1721_v22  ;;  %v700_v48 = vsub.f32 %v316_v3, %v572_v56  ;;  %v701_v60 = vsub.f32 %v317_v34, %v573_v57  ;;  %v575_v62 = vfloor.f32 %v447_v46 }
 0x116   : > { %v1976_v25 = vmul.f32 %v1848_v58, %v3524_v24  ;;  %v3559_v63 = vmul.f32 %v698_v26, %v698_v26  ;;  %v3561_v0 = vmul.f32 %v699_v29, %v699_v29  ;;  %v702_v1 = vsub.f32 %v318_v37, %v574_v59 }
 0x117   : > { %v1977_v23 = vmul.f32 %v1849_v19, %v3528_v27  ;;  %v3564_v5 = vmul.f32 %v700_v48, %v700_v48  ;;  %v3566_v9 = vmul.f32 %v701_v60, %v701_v60  ;;  %v703_v10 = vsub.f32 %v319_v50, %v575_v62 }
 0x118   : > { %v2104_v31 = vadd.f32 -4.934802, %v1976_v25  ;;  %v954_v39 = vmul.f32 0.0019295743, %v3559_v63  ;;  %v955_v12 = vmul.f32 0.0019295743, %v3561_v0  ;;  %v3570_v35 = vmul.f32 %v702_v1, %v702_v1 }
 0x119   : > { %v2105_v14 = vadd.f32 -4.934802, %v1977_v23  ;;  %v956_v4 = vmul.f32 0.0019295743, %v3564_v5  ;;  %v957_v42 = vmul.f32 0.0019295743, %v3566_v9  ;;  %v3574_v7 = vmul.f32 %v703_v10, %v703_v10 }
 0x11a   : > { %v2232_v8 = vmul.f32 %v2104_v31, %v3524_v24  ;;  %v1082_v15 = vadd.f32 -0.02580689, %v954_v39  ;;  %v1083_v43 = vadd.f32 -0.02580689, %v955_v12  ;;  %v958_v16 = vmul.f32 0.0019295743, %v3570_v35 }
 0x11b   : > { %v2233_v47 = vmul.f32 %v2105_v14, %v3528_v27  ;;  %v1084_v44 = vadd.f32 -0.02580689, %v956_v4  ;;  %v1085_v11 = vadd.f32 -0.02580689, %v957_v42  ;;  %v959_v51 = vmul.f32 0.0019295743, %v3574_v7 }
 0x11c   : > { %v2360_v17 = vadd.f32 1.0, %v2232_v8  ;;  %v1210_v18 = vmul.f32 %v1082_v15, %v3559_v63  ;;  %v1211_v20 = vmul.f32 %v1083_v43, %v3561_v0  ;;  %v1086_v21 = vadd.f32 -0.02580689, %v958_v16  ;;  %v192_v27 = vld [vmem:[%s3068_s30 + $0x1b0] sm:$0xff] }
 0x11d   : > { %v2361_v24 = vadd.f32 1.0, %v2233_v47  ;;  %v1212_v13 = vmul.f32 %v1084_v44, %v3564_v5  ;;  %v1213_v52 = vmul.f32 %v1085_v11, %v3566_v9  ;;  %v1087_v30 = vadd.f32 -0.02580689, %v959_v51 }
 0x11e   : > { %v2488_v32 = vmul.f32 %v2360_v17, %v2360_v17  ;;  %v1338_v33 = vadd.f32 0.23533063, %v1210_v18  ;;  %v1339_v2 = vadd.f32 0.23533063, %v1211_v20  ;;  %v1214_v28 = vmul.f32 %v1086_v21, %v3570_v35 }
 0x11f   : > { %v2489_v3 = vmul.f32 %v2361_v24, %v2361_v24  ;;  %v1340_v34 = vadd.f32 0.23533063, %v1212_v13  ;;  %v1341_v61 = vadd.f32 0.23533063, %v1213_v52  ;;  %v1215_v36 = vmul.f32 %v1087_v30, %v3574_v7 }
 0x120   : > { %2616 = vst [vmem:[%s3152_s17 + $0x170] sm:$0xff] %v2488_v32  ;;  %v1466_v6 = vmul.f32 %v1338_v33, %v3559_v63  ;;  %v1467_v37 = vmul.f32 %v1339_v2, %v3561_v0  ;;  %v1342_v41 = vadd.f32 0.23533063, %v1214_v28  ;;  %v320_v49 = vmul.f32 0.5, %v192_v27 }
 0x121   : > { %2617 = vst [vmem:[%s3152_s17 + $0x178] sm:$0xff] %v2489_v3  ;;  %v1468_v45 = vmul.f32 %v1340_v34, %v3564_v5  ;;  %v1469_v50 = vmul.f32 %v1341_v61, %v3566_v9  ;;  %v1343_v38 = vadd.f32 0.23533063, %v1215_v36  ;;  %v321_v54 = vmul.f32 0.5, %v193_v53 }
 0x122   : > { %v1594_v40 = vadd.f32 -1.3352628, %v1466_v6  ;;  %v1595_v55 = vadd.f32 -1.3352628, %v1467_v37  ;;  %v1470_v22 = vmul.f32 %v1342_v41, %v3570_v35  ;;  %v448_v56 = vadd.f32 0.5, %v320_v49 }
 0x123   : > { %v1596_v57 = vadd.f32 -1.3352628, %v1468_v45  ;;  %v1597_v46 = vadd.f32 -1.3352628, %v1469_v50  ;;  %v1471_v58 = vmul.f32 %v1343_v38, %v3574_v7  ;;  %v449_v26 = vadd.f32 0.5, %v321_v54 }
 0x124   : > { %v1722_v29 = vmul.f32 %v1594_v40, %v3559_v63  ;;  %v1723_v59 = vmul.f32 %v1595_v55, %v3561_v0  ;;  %v1598_v19 = vadd.f32 -1.3352628, %v1470_v22  ;;  %v576_v48 = vfloor.f32 %v448_v56  ;;  %v197_v40 = vld [vmem:[%s3068_s30 + $0x1d8] sm:$0xff] }
 0x125   : > { %v1724_v60 = vmul.f32 %v1596_v57, %v3564_v5  ;;  %v1725_v62 = vmul.f32 %v1597_v46, %v3566_v9  ;;  %v1599_v25 = vadd.f32 -1.3352628, %v1471_v58  ;;  %v577_v1 = vfloor.f32 %v449_v26 }
 0x126   : > { %v1850_v23 = vadd.f32 4.058712, %v1722_v29  ;;  %v1851_v10 = vadd.f32 4.058712, %v1723_v59  ;;  %v1726_v31 = vmul.f32 %v1598_v19, %v3570_v35  ;;  %v704_v39 = vsub.f32 %v320_v49, %v576_v48  ;;  %v195_v49 = vld [vmem:[%s3068_s30 + $0x1c8] sm:$0xff] }
 0x127   : > { %v1852_v12 = vadd.f32 4.058712, %v1724_v60  ;;  %v1853_v14 = vadd.f32 4.058712, %v1725_v62  ;;  %v1727_v4 = vmul.f32 %v1599_v25, %v3574_v7  ;;  %v705_v42 = vsub.f32 %v321_v54, %v577_v1  ;;  %v199_v59 = vld [vmem:[%s3068_s30 + $0x1e8] sm:$0xff] }
 0x128   : > { %v1978_v8 = vmul.f32 %v1850_v23, %v3559_v63  ;;  %v1979_v15 = vmul.f32 %v1851_v10, %v3561_v0  ;;  %v1854_v43 = vadd.f32 4.058712, %v1726_v31  ;;  %v3604_v16 = vmul.f32 %v704_v39, %v704_v39 }
 0x129   : > { %v1980_v47 = vmul.f32 %v1852_v12, %v3564_v5  ;;  %v1981_v44 = vmul.f32 %v1853_v14, %v3566_v9  ;;  %v1855_v11 = vadd.f32 4.058712, %v1727_v4  ;;  %v3608_v51 = vmul.f32 %v705_v42, %v705_v42 }
 0x12a   : > { %v2106_v17 = vadd.f32 -4.934802, %v1978_v8  ;;  %v2107_v18 = vadd.f32 -4.934802, %v1979_v15  ;;  %v1982_v20 = vmul.f32 %v1854_v43, %v3570_v35  ;;  %v960_v21 = vmul.f32 0.0019295743, %v3604_v16 }
 0x12b   : > { %v2108_v24 = vadd.f32 -4.934802, %v1980_v47  ;;  %v2109_v13 = vadd.f32 -4.934802, %v1981_v44  ;;  %v1983_v52 = vmul.f32 %v1855_v11, %v3574_v7  ;;  %v961_v30 = vmul.f32 0.0019295743, %v3608_v51 }
 0x12c   : > { %v2234_v27 = vmul.f32 %v2106_v17, %v3559_v63  ;;  %v2235_v32 = vmul.f32 %v2107_v18, %v3561_v0  ;;  %v2110_v33 = vadd.f32 -4.934802, %v1982_v20  ;;  %v1088_v2 = vadd.f32 -0.02580689, %v960_v21 }
 0x12d   : > { %v2236_v28 = vmul.f32 %v2108_v24, %v3564_v5  ;;  %v2237_v53 = vmul.f32 %v2109_v13, %v3566_v9  ;;  %v2111_v3 = vadd.f32 -4.934802, %v1983_v52  ;;  %v1089_v34 = vadd.f32 -0.02580689, %v961_v30  ;;  %v194_v9 = vld [vmem:[%s3068_s30 + $0x1c0] sm:$0xff] }
 0x12e   : > { %v2362_v61 = vadd.f32 1.0, %v2234_v27  ;;  %v2363_v36 = vadd.f32 1.0, %v2235_v32  ;;  %v2238_v6 = vmul.f32 %v2110_v33, %v3570_v35  ;;  %v1216_v63 = vmul.f32 %v1088_v2, %v3604_v16  ;;  %v196_v35 = vld [vmem:[%s3068_s30 + $0x1d0] sm:$0xff] }
 0x12f   : > { %v2364_v37 = vadd.f32 1.0, %v2236_v28  ;;  %v2365_v0 = vadd.f32 1.0, %v2237_v53  ;;  %v2239_v41 = vmul.f32 %v2111_v3, %v3574_v7  ;;  %v1217_v5 = vmul.f32 %v1089_v34, %v3608_v51  ;;  %v198_v7 = vld [vmem:[%s3068_s30 + $0x1e0] sm:$0xff] }
 0x130   : > { %v2490_v45 = vmul.f32 %v2362_v61, %v2362_v61  ;;  %v2491_v50 = vmul.f32 %v2363_v36, %v2363_v36  ;;  %v2366_v38 = vadd.f32 1.0, %v2238_v6  ;;  %v1344_v54 = vadd.f32 0.23533063, %v1216_v63 }
 0x131   : > { %v2492_v55 = vmul.f32 %v2364_v37, %v2364_v37  ;;  %v2493_v22 = vmul.f32 %v2365_v0, %v2365_v0  ;;  %v2367_v56 = vadd.f32 1.0, %v2239_v41  ;;  %v1345_v57 = vadd.f32 0.23533063, %v1217_v5 }
 0x132   : > { %2618 = vst [vmem:[%s3152_s17 + $0x180] sm:$0xff] %v2490_v45  ;;  %2619 = vst [vmem:[%s3152_s17 + $0x188] sm:$0xff] %v2491_v50  ;;  %v2494_v46 = vmul.f32 %v2366_v38, %v2366_v38  ;;  %v1472_v58 = vmul.f32 %v1344_v54, %v3604_v16  ;;  %v322_v26 = vmul.f32 0.5, %v194_v9  ;;  %v323_v29 = vmul.f32 0.5, %v195_v49 }
 0x133   : > { %2620 = vst [vmem:[%s3152_s17 + $0x190] sm:$0xff] %v2492_v55  ;;  %2621 = vst [vmem:[%s3152_s17 + $0x198] sm:$0xff] %v2493_v22  ;;  %v2495_v19 = vmul.f32 %v2367_v56, %v2367_v56  ;;  %v1473_v48 = vmul.f32 %v1345_v57, %v3608_v51  ;;  %v324_v60 = vmul.f32 0.5, %v196_v35  ;;  %v325_v62 = vmul.f32 0.5, %v197_v40 }
 0x134   : > { %2622 = vst [vmem:[%s3152_s17 + $0x1a0] sm:$0xff] %v2494_v46  ;;  %v1600_v25 = vadd.f32 -1.3352628, %v1472_v58  ;;  %v450_v1 = vadd.f32 0.5, %v322_v26  ;;  %v451_v23 = vadd.f32 0.5, %v323_v29  ;;  %v326_v10 = vmul.f32 0.5, %v198_v7 }
 0x135   : > { %2623 = vst [vmem:[%s3152_s17 + $0x1a8] sm:$0xff] %v2495_v19  ;;  %v1601_v31 = vadd.f32 -1.3352628, %v1473_v48  ;;  %v452_v39 = vadd.f32 0.5, %v324_v60  ;;  %v453_v12 = vadd.f32 0.5, %v325_v62  ;;  %v327_v14 = vmul.f32 0.5, %v199_v59 }
 0x136   : > { %v1728_v4 = vmul.f32 %v1600_v25, %v3604_v16  ;;  %v578_v42 = vfloor.f32 %v450_v1  ;;  %v579_v8 = vfloor.f32 %v451_v23  ;;  %v454_v15 = vadd.f32 0.5, %v326_v10  ;;  %v201_v48 = vld [vmem:[%s3068_s30 + $0x1f8] sm:$0xff] }
 0x137   : > { %v1729_v43 = vmul.f32 %v1601_v31, %v3608_v51  ;;  %v580_v47 = vfloor.f32 %v452_v39  ;;  %v581_v44 = vfloor.f32 %v453_v12  ;;  %v455_v11 = vadd.f32 0.5, %v327_v14 }
 0x138   : > { %v1856_v17 = vadd.f32 4.058712, %v1728_v4  ;;  %v706_v18 = vsub.f32 %v322_v26, %v578_v42  ;;  %v707_v20 = vsub.f32 %v323_v29, %v579_v8  ;;  %v582_v21 = vfloor.f32 %v454_v15 }
 0x139   : > { %v1857_v24 = vadd.f32 4.058712, %v1729_v43  ;;  %v708_v13 = vsub.f32 %v324_v60, %v580_v47  ;;  %v709_v52 = vsub.f32 %v325_v62, %v581_v44  ;;  %v583_v30 = vfloor.f32 %v455_v11 }
 0x13a   : > { %v1984_v27 = vmul.f32 %v1856_v17, %v3604_v16  ;;  %v3639_v32 = vmul.f32 %v706_v18, %v706_v18  ;;  %v3641_v33 = vmul.f32 %v707_v20, %v707_v20  ;;  %v710_v2 = vsub.f32 %v326_v10, %v582_v21 }
 0x13b   : > { %v1985_v28 = vmul.f32 %v1857_v24, %v3608_v51  ;;  %v3644_v53 = vmul.f32 %v708_v13, %v708_v13  ;;  %v3646_v3 = vmul.f32 %v709_v52, %v709_v52  ;;  %v711_v34 = vsub.f32 %v327_v14, %v583_v30 }
 0x13c   : > { %v2112_v61 = vadd.f32 -4.934802, %v1984_v27  ;;  %v962_v36 = vmul.f32 0.0019295743, %v3639_v32  ;;  %v963_v6 = vmul.f32 0.0019295743, %v3641_v33  ;;  %v3650_v63 = vmul.f32 %v710_v2, %v710_v2 }
 0x13d   : > { %v2113_v37 = vadd.f32 -4.934802, %v1985_v28  ;;  %v964_v0 = vmul.f32 0.0019295743, %v3644_v53  ;;  %v965_v41 = vmul.f32 0.0019295743, %v3646_v3  ;;  %v3654_v5 = vmul.f32 %v711_v34, %v711_v34 }
 0x13e   : > { %v2240_v9 = vmul.f32 %v2112_v61, %v3604_v16  ;;  %v1090_v49 = vadd.f32 -0.02580689, %v962_v36  ;;  %v1091_v45 = vadd.f32 -0.02580689, %v963_v6  ;;  %v966_v50 = vmul.f32 0.0019295743, %v3650_v63 }
 0x13f   : > { %v2241_v38 = vmul.f32 %v2113_v37, %v3608_v51  ;;  %v1092_v54 = vadd.f32 -0.02580689, %v964_v0  ;;  %v1093_v35 = vadd.f32 -0.02580689, %v965_v41  ;;  %v967_v40 = vmul.f32 0.0019295743, %v3654_v5 }
 0x140   : > { %v2368_v55 = vadd.f32 1.0, %v2240_v9  ;;  %v1218_v22 = vmul.f32 %v1090_v49, %v3639_v32  ;;  %v1219_v56 = vmul.f32 %v1091_v45, %v3641_v33  ;;  %v1094_v57 = vadd.f32 -0.02580689, %v966_v50  ;;  %v200_v51 = vld [vmem:[%s3068_s30 + $0x1f0] sm:$0xff] }
 0x141   : > { %v2369_v16 = vadd.f32 1.0, %v2241_v38  ;;  %v1220_v7 = vmul.f32 %v1092_v54, %v3644_v53  ;;  %v1221_v46 = vmul.f32 %v1093_v35, %v3646_v3  ;;  %v1095_v58 = vadd.f32 -0.02580689, %v967_v40 }
 0x142   : > { %v2496_v26 = vmul.f32 %v2368_v55, %v2368_v55  ;;  %v1346_v29 = vadd.f32 0.23533063, %v1218_v22  ;;  %v1347_v59 = vadd.f32 0.23533063, %v1219_v56  ;;  %v1222_v19 = vmul.f32 %v1094_v57, %v3650_v63 }
 0x143   : > { %v2497_v60 = vmul.f32 %v2369_v16, %v2369_v16  ;;  %v1348_v62 = vadd.f32 0.23533063, %v1220_v7  ;;  %v1349_v25 = vadd.f32 0.23533063, %v1221_v46  ;;  %v1223_v1 = vmul.f32 %v1095_v58, %v3654_v5 }
 0x144   : > { %2624 = vst [vmem:[%s3152_s17 + $0x1b0] sm:$0xff] %v2496_v26  ;;  %v1474_v23 = vmul.f32 %v1346_v29, %v3639_v32  ;;  %v1475_v10 = vmul.f32 %v1347_v59, %v3641_v33  ;;  %v1350_v31 = vadd.f32 0.23533063, %v1222_v19  ;;  %v328_v39 = vmul.f32 0.5, %v200_v51 }
 0x145   : > { %2625 = vst [vmem:[%s3152_s17 + $0x1b8] sm:$0xff] %v2497_v60  ;;  %v1476_v12 = vmul.f32 %v1348_v62, %v3644_v53  ;;  %v1477_v14 = vmul.f32 %v1349_v25, %v3646_v3  ;;  %v1351_v4 = vadd.f32 0.23533063, %v1223_v1  ;;  %v329_v42 = vmul.f32 0.5, %v201_v48 }
 0x146   : > { %v1602_v8 = vadd.f32 -1.3352628, %v1474_v23  ;;  %v1603_v15 = vadd.f32 -1.3352628, %v1475_v10  ;;  %v1478_v43 = vmul.f32 %v1350_v31, %v3650_v63  ;;  %v456_v47 = vadd.f32 0.5, %v328_v39 }
 0x147   : > { %v1604_v44 = vadd.f32 -1.3352628, %v1476_v12  ;;  %v1605_v11 = vadd.f32 -1.3352628, %v1477_v14  ;;  %v1479_v17 = vmul.f32 %v1351_v4, %v3654_v5  ;;  %v457_v18 = vadd.f32 0.5, %v329_v42 }
 0x148   : > { %v1730_v20 = vmul.f32 %v1602_v8, %v3639_v32  ;;  %v1731_v21 = vmul.f32 %v1603_v15, %v3641_v33  ;;  %v1606_v24 = vadd.f32 -1.3352628, %v1478_v43  ;;  %v584_v13 = vfloor.f32 %v456_v47  ;;  %v205_v8 = vld [vmem:[%s3068_s30 + $0x218] sm:$0xff] }
 0x149   : > { %v1732_v52 = vmul.f32 %v1604_v44, %v3644_v53  ;;  %v1733_v30 = vmul.f32 %v1605_v11, %v3646_v3  ;;  %v1607_v27 = vadd.f32 -1.3352628, %v1479_v17  ;;  %v585_v2 = vfloor.f32 %v457_v18 }
 0x14a   : > { %v1858_v28 = vadd.f32 4.058712, %v1730_v20  ;;  %v1859_v34 = vadd.f32 4.058712, %v1731_v21  ;;  %v1734_v61 = vmul.f32 %v1606_v24, %v3650_v63  ;;  %v712_v36 = vsub.f32 %v328_v39, %v584_v13  ;;  %v203_v39 = vld [vmem:[%s3068_s30 + $0x208] sm:$0xff] }
 0x14b   : > { %v1860_v6 = vadd.f32 4.058712, %v1732_v52  ;;  %v1861_v37 = vadd.f32 4.058712, %v1733_v30  ;;  %v1735_v0 = vmul.f32 %v1607_v27, %v3654_v5  ;;  %v713_v41 = vsub.f32 %v329_v42, %v585_v2  ;;  %v207_v21 = vld [vmem:[%s3068_s30 + $0x228] sm:$0xff] }
 0x14c   : > { %v1986_v9 = vmul.f32 %v1858_v28, %v3639_v32  ;;  %v1987_v49 = vmul.f32 %v1859_v34, %v3641_v33  ;;  %v1862_v45 = vadd.f32 4.058712, %v1734_v61  ;;  %v3684_v50 = vmul.f32 %v712_v36, %v712_v36 }
 0x14d   : > { %v1988_v38 = vmul.f32 %v1860_v6, %v3644_v53  ;;  %v1989_v54 = vmul.f32 %v1861_v37, %v3646_v3  ;;  %v1863_v35 = vadd.f32 4.058712, %v1735_v0  ;;  %v3688_v40 = vmul.f32 %v713_v41, %v713_v41 }
 0x14e   : > { %v2114_v55 = vadd.f32 -4.934802, %v1986_v9  ;;  %v2115_v22 = vadd.f32 -4.934802, %v1987_v49  ;;  %v1990_v56 = vmul.f32 %v1862_v45, %v3650_v63  ;;  %v968_v57 = vmul.f32 0.0019295743, %v3684_v50 }
 0x14f   : > { %v2116_v16 = vadd.f32 -4.934802, %v1988_v38  ;;  %v2117_v7 = vadd.f32 -4.934802, %v1989_v54  ;;  %v1991_v46 = vmul.f32 %v1863_v35, %v3654_v5  ;;  %v969_v58 = vmul.f32 0.0019295743, %v3688_v40 }
 0x150   : > { %v2242_v51 = vmul.f32 %v2114_v55, %v3639_v32  ;;  %v2243_v26 = vmul.f32 %v2115_v22, %v3641_v33  ;;  %v2118_v29 = vadd.f32 -4.934802, %v1990_v56  ;;  %v1096_v59 = vadd.f32 -0.02580689, %v968_v57 }
 0x151   : > { %v2244_v19 = vmul.f32 %v2116_v16, %v3644_v53  ;;  %v2245_v48 = vmul.f32 %v2117_v7, %v3646_v3  ;;  %v2119_v60 = vadd.f32 -4.934802, %v1991_v46  ;;  %v1097_v62 = vadd.f32 -0.02580689, %v969_v58  ;;  %v202_v3 = vld [vmem:[%s3068_s30 + $0x200] sm:$0xff] }
 0x152   : > { %v2370_v25 = vadd.f32 1.0, %v2242_v51  ;;  %v2371_v1 = vadd.f32 1.0, %v2243_v26  ;;  %v2246_v23 = vmul.f32 %v2118_v29, %v3650_v63  ;;  %v1224_v32 = vmul.f32 %v1096_v59, %v3684_v50  ;;  %v204_v63 = vld [vmem:[%s3068_s30 + $0x210] sm:$0xff] }
 0x153   : > { %v2372_v10 = vadd.f32 1.0, %v2244_v19  ;;  %v2373_v33 = vadd.f32 1.0, %v2245_v48  ;;  %v2247_v31 = vmul.f32 %v2119_v60, %v3654_v5  ;;  %v1225_v53 = vmul.f32 %v1097_v62, %v3688_v40  ;;  %v206_v5 = vld [vmem:[%s3068_s30 + $0x220] sm:$0xff] }
 0x154   : > { %v2498_v12 = vmul.f32 %v2370_v25, %v2370_v25  ;;  %v2499_v14 = vmul.f32 %v2371_v1, %v2371_v1  ;;  %v2374_v4 = vadd.f32 1.0, %v2246_v23  ;;  %v1352_v42 = vadd.f32 0.23533063, %v1224_v32 }
 0x155   : > { %v2500_v15 = vmul.f32 %v2372_v10, %v2372_v10  ;;  %v2501_v43 = vmul.f32 %v2373_v33, %v2373_v33  ;;  %v2375_v47 = vadd.f32 1.0, %v2247_v31  ;;  %v1353_v44 = vadd.f32 0.23533063, %v1225_v53 }
 0x156   : > { %2626 = vst [vmem:[%s3152_s17 + $0x1c0] sm:$0xff] %v2498_v12  ;;  %2627 = vst [vmem:[%s3152_s17 + $0x1c8] sm:$0xff] %v2499_v14  ;;  %v2502_v11 = vmul.f32 %v2374_v4, %v2374_v4  ;;  %v1480_v17 = vmul.f32 %v1352_v42, %v3684_v50  ;;  %v330_v18 = vmul.f32 0.5, %v202_v3  ;;  %v331_v20 = vmul.f32 0.5, %v203_v39 }
 0x157   : > { %2628 = vst [vmem:[%s3152_s17 + $0x1d0] sm:$0xff] %v2500_v15  ;;  %2629 = vst [vmem:[%s3152_s17 + $0x1d8] sm:$0xff] %v2501_v43  ;;  %v2503_v24 = vmul.f32 %v2375_v47, %v2375_v47  ;;  %v1481_v13 = vmul.f32 %v1353_v44, %v3688_v40  ;;  %v332_v52 = vmul.f32 0.5, %v204_v63  ;;  %v333_v30 = vmul.f32 0.5, %v205_v8 }
 0x158   : > { %2630 = vst [vmem:[%s3152_s17 + $0x1e0] sm:$0xff] %v2502_v11  ;;  %v1608_v27 = vadd.f32 -1.3352628, %v1480_v17  ;;  %v458_v2 = vadd.f32 0.5, %v330_v18  ;;  %v459_v28 = vadd.f32 0.5, %v331_v20  ;;  %v334_v34 = vmul.f32 0.5, %v206_v5 }
 0x159   : > { %2631 = vst [vmem:[%s3152_s17 + $0x1e8] sm:$0xff] %v2503_v24  ;;  %v1609_v61 = vadd.f32 -1.3352628, %v1481_v13  ;;  %v460_v36 = vadd.f32 0.5, %v332_v52  ;;  %v461_v6 = vadd.f32 0.5, %v333_v30  ;;  %v335_v37 = vmul.f32 0.5, %v207_v21 }
 0x15a   : > { %v1736_v0 = vmul.f32 %v1608_v27, %v3684_v50  ;;  %v586_v41 = vfloor.f32 %v458_v2  ;;  %v587_v9 = vfloor.f32 %v459_v28  ;;  %v462_v49 = vadd.f32 0.5, %v334_v34  ;;  %v209_v13 = vld [vmem:[%s3068_s30 + $0x238] sm:$0xff] }
 0x15b   : > { %v1737_v45 = vmul.f32 %v1609_v61, %v3688_v40  ;;  %v588_v38 = vfloor.f32 %v460_v36  ;;  %v589_v54 = vfloor.f32 %v461_v6  ;;  %v463_v35 = vadd.f32 0.5, %v335_v37 }
 0x15c   : > { %v1864_v55 = vadd.f32 4.058712, %v1736_v0  ;;  %v714_v22 = vsub.f32 %v330_v18, %v586_v41  ;;  %v715_v56 = vsub.f32 %v331_v20, %v587_v9  ;;  %v590_v57 = vfloor.f32 %v462_v49 }
 0x15d   : > { %v1865_v16 = vadd.f32 4.058712, %v1737_v45  ;;  %v716_v7 = vsub.f32 %v332_v52, %v588_v38  ;;  %v717_v46 = vsub.f32 %v333_v30, %v589_v54  ;;  %v591_v58 = vfloor.f32 %v463_v35 }
 0x15e   : > { %v1992_v51 = vmul.f32 %v1864_v55, %v3684_v50  ;;  %v3719_v26 = vmul.f32 %v714_v22, %v714_v22  ;;  %v3721_v29 = vmul.f32 %v715_v56, %v715_v56  ;;  %v718_v59 = vsub.f32 %v334_v34, %v590_v57 }
 0x15f   : > { %v1993_v19 = vmul.f32 %v1865_v16, %v3688_v40  ;;  %v3724_v48 = vmul.f32 %v716_v7, %v716_v7  ;;  %v3726_v60 = vmul.f32 %v717_v46, %v717_v46  ;;  %v719_v62 = vsub.f32 %v335_v37, %v591_v58 }
 0x160   : > { %v2120_v25 = vadd.f32 -4.934802, %v1992_v51  ;;  %v970_v1 = vmul.f32 0.0019295743, %v3719_v26  ;;  %v971_v23 = vmul.f32 0.0019295743, %v3721_v29  ;;  %v3730_v32 = vmul.f32 %v718_v59, %v718_v59 }
 0x161   : > { %v2121_v10 = vadd.f32 -4.934802, %v1993_v19  ;;  %v972_v33 = vmul.f32 0.0019295743, %v3724_v48  ;;  %v973_v31 = vmul.f32 0.0019295743, %v3726_v60  ;;  %v3734_v53 = vmul.f32 %v719_v62, %v719_v62 }
 0x162   : > { %v2248_v3 = vmul.f32 %v2120_v25, %v3684_v50  ;;  %v1098_v39 = vadd.f32 -0.02580689, %v970_v1  ;;  %v1099_v12 = vadd.f32 -0.02580689, %v971_v23  ;;  %v974_v14 = vmul.f32 0.0019295743, %v3730_v32 }
 0x163   : > { %v2249_v4 = vmul.f32 %v2121_v10, %v3688_v40  ;;  %v1100_v42 = vadd.f32 -0.02580689, %v972_v33  ;;  %v1101_v63 = vadd.f32 -0.02580689, %v973_v31  ;;  %v975_v8 = vmul.f32 0.0019295743, %v3734_v53 }
 0x164   : > { %v2376_v15 = vadd.f32 1.0, %v2248_v3  ;;  %v1226_v43 = vmul.f32 %v1098_v39, %v3719_v26  ;;  %v1227_v47 = vmul.f32 %v1099_v12, %v3721_v29  ;;  %v1102_v44 = vadd.f32 -0.02580689, %v974_v14  ;;  %v208_v40 = vld [vmem:[%s3068_s30 + $0x230] sm:$0xff] }
 0x165   : > { %v2377_v50 = vadd.f32 1.0, %v2249_v4  ;;  %v1228_v5 = vmul.f32 %v1100_v42, %v3724_v48  ;;  %v1229_v11 = vmul.f32 %v1101_v63, %v3726_v60  ;;  %v1103_v17 = vadd.f32 -0.02580689, %v975_v8 }
 0x166   : > { %v2504_v18 = vmul.f32 %v2376_v15, %v2376_v15  ;;  %v1354_v20 = vadd.f32 0.23533063, %v1226_v43  ;;  %v1355_v21 = vadd.f32 0.23533063, %v1227_v47  ;;  %v1230_v24 = vmul.f32 %v1102_v44, %v3730_v32 }
 0x167   : > { %v2505_v52 = vmul.f32 %v2377_v50, %v2377_v50  ;;  %v1356_v30 = vadd.f32 0.23533063, %v1228_v5  ;;  %v1357_v27 = vadd.f32 0.23533063, %v1229_v11  ;;  %v1231_v2 = vmul.f32 %v1103_v17, %v3734_v53 }
 0x168   : > { %2632 = vst [vmem:[%s3152_s17 + $0x1f0] sm:$0xff] %v2504_v18  ;;  %v1482_v28 = vmul.f32 %v1354_v20, %v3719_v26  ;;  %v1483_v34 = vmul.f32 %v1355_v21, %v3721_v29  ;;  %v1358_v61 = vadd.f32 0.23533063, %v1230_v24  ;;  %v336_v36 = vmul.f32 0.5, %v208_v40 }
 0x169   : > { %2633 = vst [vmem:[%s3152_s17 + $0x1f8] sm:$0xff] %v2505_v52  ;;  %v1484_v6 = vmul.f32 %v1356_v30, %v3724_v48  ;;  %v1485_v37 = vmul.f32 %v1357_v27, %v3726_v60  ;;  %v1359_v0 = vadd.f32 0.23533063, %v1231_v2  ;;  %v337_v41 = vmul.f32 0.5, %v209_v13 }
 0x16a   : > { %v1610_v9 = vadd.f32 -1.3352628, %v1482_v28  ;;  %v1611_v49 = vadd.f32 -1.3352628, %v1483_v34  ;;  %v1486_v45 = vmul.f32 %v1358_v61, %v3730_v32  ;;  %v464_v38 = vadd.f32 0.5, %v336_v36 }
 0x16b   : > { %v1612_v54 = vadd.f32 -1.3352628, %v1484_v6  ;;  %v1613_v35 = vadd.f32 -1.3352628, %v1485_v37  ;;  %v1487_v55 = vmul.f32 %v1359_v0, %v3734_v53  ;;  %v465_v22 = vadd.f32 0.5, %v337_v41 }
 0x16c   : > { %v1738_v56 = vmul.f32 %v1610_v9, %v3719_v26  ;;  %v1739_v57 = vmul.f32 %v1611_v49, %v3721_v29  ;;  %v1614_v16 = vadd.f32 -1.3352628, %v1486_v45  ;;  %v592_v7 = vfloor.f32 %v464_v38  ;;  %v213_v9 = vld [vmem:[%s3068_s30 + $0x258] sm:$0xff] }
 0x16d   : > { %v1740_v46 = vmul.f32 %v1612_v54, %v3724_v48  ;;  %v1741_v58 = vmul.f32 %v1613_v35, %v3726_v60  ;;  %v1615_v51 = vadd.f32 -1.3352628, %v1487_v55  ;;  %v593_v59 = vfloor.f32 %v465_v22 }
 0x16e   : > { %v1866_v19 = vadd.f32 4.058712, %v1738_v56  ;;  %v1867_v62 = vadd.f32 4.058712, %v1739_v57  ;;  %v1742_v25 = vmul.f32 %v1614_v16, %v3730_v32  ;;  %v720_v1 = vsub.f32 %v336_v36, %v592_v7  ;;  %v211_v36 = vld [vmem:[%s3068_s30 + $0x248] sm:$0xff] }
 0x16f   : > { %v1868_v23 = vadd.f32 4.058712, %v1740_v46  ;;  %v1869_v10 = vadd.f32 4.058712, %v1741_v58  ;;  %v1743_v33 = vmul.f32 %v1615_v51, %v3734_v53  ;;  %v721_v31 = vsub.f32 %v337_v41, %v593_v59  ;;  %v215_v57 = vld [vmem:[%s3068_s30 + $0x268] sm:$0xff] }
 0x170   : > { %v1994_v3 = vmul.f32 %v1866_v19, %v3719_v26  ;;  %v1995_v39 = vmul.f32 %v1867_v62, %v3721_v29  ;;  %v1870_v12 = vadd.f32 4.058712, %v1742_v25  ;;  %v3764_v14 = vmul.f32 %v720_v1, %v720_v1 }
 0x171   : > { %v1996_v4 = vmul.f32 %v1868_v23, %v3724_v48  ;;  %v1997_v42 = vmul.f32 %v1869_v10, %v3726_v60  ;;  %v1871_v63 = vadd.f32 4.058712, %v1743_v33  ;;  %v3768_v8 = vmul.f32 %v721_v31, %v721_v31 }
 0x172   : > { %v2122_v15 = vadd.f32 -4.934802, %v1994_v3  ;;  %v2123_v43 = vadd.f32 -4.934802, %v1995_v39  ;;  %v1998_v47 = vmul.f32 %v1870_v12, %v3730_v32  ;;  %v976_v44 = vmul.f32 0.0019295743, %v3764_v14 }
 0x173   : > { %v2124_v50 = vadd.f32 -4.934802, %v1996_v4  ;;  %v2125_v5 = vadd.f32 -4.934802, %v1997_v42  ;;  %v1999_v11 = vmul.f32 %v1871_v63, %v3734_v53  ;;  %v977_v17 = vmul.f32 0.0019295743, %v3768_v8 }
 0x174   : > { %v2250_v40 = vmul.f32 %v2122_v15, %v3719_v26  ;;  %v2251_v18 = vmul.f32 %v2123_v43, %v3721_v29  ;;  %v2126_v20 = vadd.f32 -4.934802, %v1998_v47  ;;  %v1104_v21 = vadd.f32 -0.02580689, %v976_v44 }
 0x175   : > { %v2252_v24 = vmul.f32 %v2124_v50, %v3724_v48  ;;  %v2253_v13 = vmul.f32 %v2125_v5, %v3726_v60  ;;  %v2127_v52 = vadd.f32 -4.934802, %v1999_v11  ;;  %v1105_v30 = vadd.f32 -0.02580689, %v977_v17  ;;  %v210_v60 = vld [vmem:[%s3068_s30 + $0x240] sm:$0xff] }
 0x176   : > { %v2378_v27 = vadd.f32 1.0, %v2250_v40  ;;  %v2379_v2 = vadd.f32 1.0, %v2251_v18  ;;  %v2254_v28 = vmul.f32 %v2126_v20, %v3730_v32  ;;  %v1232_v26 = vmul.f32 %v1104_v21, %v3764_v14  ;;  %v212_v32 = vld [vmem:[%s3068_s30 + $0x250] sm:$0xff] }
 0x177   : > { %v2380_v34 = vadd.f32 1.0, %v2252_v24  ;;  %v2381_v29 = vadd.f32 1.0, %v2253_v13  ;;  %v2255_v61 = vmul.f32 %v2127_v52, %v3734_v53  ;;  %v1233_v48 = vmul.f32 %v1105_v30, %v3768_v8  ;;  %v214_v53 = vld [vmem:[%s3068_s30 + $0x260] sm:$0xff] }
 0x178   : > { %v2506_v6 = vmul.f32 %v2378_v27, %v2378_v27  ;;  %v2507_v37 = vmul.f32 %v2379_v2, %v2379_v2  ;;  %v2382_v0 = vadd.f32 1.0, %v2254_v28  ;;  %v1360_v41 = vadd.f32 0.23533063, %v1232_v26 }
 0x179   : > { %v2508_v49 = vmul.f32 %v2380_v34, %v2380_v34  ;;  %v2509_v45 = vmul.f32 %v2381_v29, %v2381_v29  ;;  %v2383_v38 = vadd.f32 1.0, %v2255_v61  ;;  %v1361_v54 = vadd.f32 0.23533063, %v1233_v48 }
 0x17a   : > { %2634 = vst [vmem:[%s3152_s17 + $0x200] sm:$0xff] %v2506_v6  ;;  %2635 = vst [vmem:[%s3152_s17 + $0x208] sm:$0xff] %v2507_v37  ;;  %v2510_v35 = vmul.f32 %v2382_v0, %v2382_v0  ;;  %v1488_v55 = vmul.f32 %v1360_v41, %v3764_v14  ;;  %v338_v22 = vmul.f32 0.5, %v210_v60  ;;  %v339_v56 = vmul.f32 0.5, %v211_v36 }
 0x17b   : > { %2636 = vst [vmem:[%s3152_s17 + $0x210] sm:$0xff] %v2508_v49  ;;  %2637 = vst [vmem:[%s3152_s17 + $0x218] sm:$0xff] %v2509_v45  ;;  %v2511_v16 = vmul.f32 %v2383_v38, %v2383_v38  ;;  %v1489_v7 = vmul.f32 %v1361_v54, %v3768_v8  ;;  %v340_v46 = vmul.f32 0.5, %v212_v32  ;;  %v341_v58 = vmul.f32 0.5, %v213_v9 }
 0x17c   : > { %2638 = vst [vmem:[%s3152_s17 + $0x220] sm:$0xff] %v2510_v35  ;;  %v1616_v51 = vadd.f32 -1.3352628, %v1488_v55  ;;  %v466_v59 = vadd.f32 0.5, %v338_v22  ;;  %v467_v19 = vadd.f32 0.5, %v339_v56  ;;  %v342_v62 = vmul.f32 0.5, %v214_v53 }
 0x17d   : > { %2639 = vst [vmem:[%s3152_s17 + $0x228] sm:$0xff] %v2511_v16  ;;  %v1617_v25 = vadd.f32 -1.3352628, %v1489_v7  ;;  %v468_v1 = vadd.f32 0.5, %v340_v46  ;;  %v469_v23 = vadd.f32 0.5, %v341_v58  ;;  %v343_v10 = vmul.f32 0.5, %v215_v57 }
 0x17e   : > { %v1744_v33 = vmul.f32 %v1616_v51, %v3764_v14  ;;  %v594_v31 = vfloor.f32 %v466_v59  ;;  %v595_v3 = vfloor.f32 %v467_v19  ;;  %v470_v39 = vadd.f32 0.5, %v342_v62  ;;  %v217_v7 = vld [vmem:[%s3068_s30 + $0x278] sm:$0xff] }
 0x17f   : > { %v1745_v12 = vmul.f32 %v1617_v25, %v3768_v8  ;;  %v596_v4 = vfloor.f32 %v468_v1  ;;  %v597_v42 = vfloor.f32 %v469_v23  ;;  %v471_v63 = vadd.f32 0.5, %v343_v10 }
 0x180   : > { %v1872_v15 = vadd.f32 4.058712, %v1744_v33  ;;  %v722_v43 = vsub.f32 %v338_v22, %v594_v31  ;;  %v723_v47 = vsub.f32 %v339_v56, %v595_v3  ;;  %v598_v44 = vfloor.f32 %v470_v39 }
 0x181   : > { %v1873_v50 = vadd.f32 4.058712, %v1745_v12  ;;  %v724_v5 = vsub.f32 %v340_v46, %v596_v4  ;;  %v725_v11 = vsub.f32 %v341_v58, %v597_v42  ;;  %v599_v17 = vfloor.f32 %v471_v63 }
 0x182   : > { %v2000_v40 = vmul.f32 %v1872_v15, %v3764_v14  ;;  %v3799_v18 = vmul.f32 %v722_v43, %v722_v43  ;;  %v3801_v20 = vmul.f32 %v723_v47, %v723_v47  ;;  %v726_v21 = vsub.f32 %v342_v62, %v598_v44 }
 0x183   : > { %v2001_v24 = vmul.f32 %v1873_v50, %v3768_v8  ;;  %v3804_v13 = vmul.f32 %v724_v5, %v724_v5  ;;  %v3806_v52 = vmul.f32 %v725_v11, %v725_v11  ;;  %v727_v30 = vsub.f32 %v343_v10, %v599_v17 }
 0x184   : > { %v2128_v27 = vadd.f32 -4.934802, %v2000_v40  ;;  %v978_v2 = vmul.f32 0.0019295743, %v3799_v18  ;;  %v979_v28 = vmul.f32 0.0019295743, %v3801_v20  ;;  %v3810_v26 = vmul.f32 %v726_v21, %v726_v21 }
 0x185   : > { %v2129_v34 = vadd.f32 -4.934802, %v2001_v24  ;;  %v980_v29 = vmul.f32 0.0019295743, %v3804_v13  ;;  %v981_v61 = vmul.f32 0.0019295743, %v3806_v52  ;;  %v3814_v48 = vmul.f32 %v727_v30, %v727_v30 }
 0x186   : > { %v2256_v60 = vmul.f32 %v2128_v27, %v3764_v14  ;;  %v1106_v36 = vadd.f32 -0.02580689, %v978_v2  ;;  %v1107_v6 = vadd.f32 -0.02580689, %v979_v28  ;;  %v982_v37 = vmul.f32 0.0019295743, %v3810_v26 }
 0x187   : > { %v2257_v0 = vmul.f32 %v2129_v34, %v3768_v8  ;;  %v1108_v41 = vadd.f32 -0.02580689, %v980_v29  ;;  %v1109_v32 = vadd.f32 -0.02580689, %v981_v61  ;;  %v983_v9 = vmul.f32 0.0019295743, %v3814_v48 }
 0x188   : > { %v2384_v49 = vadd.f32 1.0, %v2256_v60  ;;  %v1234_v45 = vmul.f32 %v1106_v36, %v3799_v18  ;;  %v1235_v38 = vmul.f32 %v1107_v6, %v3801_v20  ;;  %v1110_v54 = vadd.f32 -0.02580689, %v982_v37  ;;  %v216_v8 = vld [vmem:[%s3068_s30 + $0x270] sm:$0xff] }
 0x189   : > { %v2385_v14 = vadd.f32 1.0, %v2257_v0  ;;  %v1236_v53 = vmul.f32 %v1108_v41, %v3804_v13  ;;  %v1237_v35 = vmul.f32 %v1109_v32, %v3806_v52  ;;  %v1111_v55 = vadd.f32 -0.02580689, %v983_v9 }
 0x18a   : > { %v2512_v22 = vmul.f32 %v2384_v49, %v2384_v49  ;;  %v1362_v56 = vadd.f32 0.23533063, %v1234_v45  ;;  %v1363_v57 = vadd.f32 0.23533063, %v1235_v38  ;;  %v1238_v16 = vmul.f32 %v1110_v54, %v3810_v26 }
 0x18b   : > { %v2513_v46 = vmul.f32 %v2385_v14, %v2385_v14  ;;  %v1364_v58 = vadd.f32 0.23533063, %v1236_v53  ;;  %v1365_v51 = vadd.f32 0.23533063, %v1237_v35  ;;  %v1239_v59 = vmul.f32 %v1111_v55, %v3814_v48 }
 0x18c   : > { %2640 = vst [vmem:[%s3152_s17 + $0x230] sm:$0xff] %v2512_v22  ;;  %v1490_v19 = vmul.f32 %v1362_v56, %v3799_v18  ;;  %v1491_v62 = vmul.f32 %v1363_v57, %v3801_v20  ;;  %v1366_v25 = vadd.f32 0.23533063, %v1238_v16  ;;  %v344_v1 = vmul.f32 0.5, %v216_v8 }
 0x18d   : > { %2641 = vst [vmem:[%s3152_s17 + $0x238] sm:$0xff] %v2513_v46  ;;  %v1492_v23 = vmul.f32 %v1364_v58, %v3804_v13  ;;  %v1493_v10 = vmul.f32 %v1365_v51, %v3806_v52  ;;  %v1367_v33 = vadd.f32 0.23533063, %v1239_v59  ;;  %v345_v31 = vmul.f32 0.5, %v217_v7 }
 0x18e   : > { %v1618_v3 = vadd.f32 -1.3352628, %v1490_v19  ;;  %v1619_v39 = vadd.f32 -1.3352628, %v1491_v62  ;;  %v1494_v12 = vmul.f32 %v1366_v25, %v3810_v26  ;;  %v472_v4 = vadd.f32 0.5, %v344_v1 }
 0x18f   : > { %v1620_v42 = vadd.f32 -1.3352628, %v1492_v23  ;;  %v1621_v63 = vadd.f32 -1.3352628, %v1493_v10  ;;  %v1495_v15 = vmul.f32 %v1367_v33, %v3814_v48  ;;  %v473_v43 = vadd.f32 0.5, %v345_v31 }
 0x190   : > { %v1746_v47 = vmul.f32 %v1618_v3, %v3799_v18  ;;  %v1747_v44 = vmul.f32 %v1619_v39, %v3801_v20  ;;  %v1622_v50 = vadd.f32 -1.3352628, %v1494_v12  ;;  %v600_v5 = vfloor.f32 %v472_v4  ;;  %v221_v3 = vld [vmem:[%s3068_s30 + $0x298] sm:$0xff] }
 0x191   : > { %v1748_v11 = vmul.f32 %v1620_v42, %v3804_v13  ;;  %v1749_v17 = vmul.f32 %v1621_v63, %v3806_v52  ;;  %v1623_v40 = vadd.f32 -1.3352628, %v1495_v15  ;;  %v601_v21 = vfloor.f32 %v473_v43 }
 0x192   : > { %v1874_v24 = vadd.f32 4.058712, %v1746_v47  ;;  %v1875_v30 = vadd.f32 4.058712, %v1747_v44  ;;  %v1750_v27 = vmul.f32 %v1622_v50, %v3810_v26  ;;  %v728_v2 = vsub.f32 %v344_v1, %v600_v5  ;;  %v219_v1 = vld [vmem:[%s3068_s30 + $0x288] sm:$0xff] }
 0x193   : > { %v1876_v28 = vadd.f32 4.058712, %v1748_v11  ;;  %v1877_v34 = vadd.f32 4.058712, %v1749_v17  ;;  %v1751_v29 = vmul.f32 %v1623_v40, %v3814_v48  ;;  %v729_v61 = vsub.f32 %v345_v31, %v601_v21  ;;  %v223_v44 = vld [vmem:[%s3068_s30 + $0x2a8] sm:$0xff] }
 0x194   : > { %v2002_v60 = vmul.f32 %v1874_v24, %v3799_v18  ;;  %v2003_v36 = vmul.f32 %v1875_v30, %v3801_v20  ;;  %v1878_v6 = vadd.f32 4.058712, %v1750_v27  ;;  %v3844_v37 = vmul.f32 %v728_v2, %v728_v2 }
 0x195   : > { %v2004_v0 = vmul.f32 %v1876_v28, %v3804_v13  ;;  %v2005_v41 = vmul.f32 %v1877_v34, %v3806_v52  ;;  %v1879_v32 = vadd.f32 4.058712, %v1751_v29  ;;  %v3848_v9 = vmul.f32 %v729_v61, %v729_v61 }
 0x196   : > { %v2130_v49 = vadd.f32 -4.934802, %v2002_v60  ;;  %v2131_v45 = vadd.f32 -4.934802, %v2003_v36  ;;  %v2006_v38 = vmul.f32 %v1878_v6, %v3810_v26  ;;  %v984_v54 = vmul.f32 0.0019295743, %v3844_v37 }
 0x197   : > { %v2132_v14 = vadd.f32 -4.934802, %v2004_v0  ;;  %v2133_v53 = vadd.f32 -4.934802, %v2005_v41  ;;  %v2007_v35 = vmul.f32 %v1879_v32, %v3814_v48  ;;  %v985_v55 = vmul.f32 0.0019295743, %v3848_v9 }
 0x198   : > { %v2258_v8 = vmul.f32 %v2130_v49, %v3799_v18  ;;  %v2259_v22 = vmul.f32 %v2131_v45, %v3801_v20  ;;  %v2134_v56 = vadd.f32 -4.934802, %v2006_v38  ;;  %v1112_v57 = vadd.f32 -0.02580689, %v984_v54 }
 0x199   : > { %v2260_v16 = vmul.f32 %v2132_v14, %v3804_v13  ;;  %v2261_v7 = vmul.f32 %v2133_v53, %v3806_v52  ;;  %v2135_v46 = vadd.f32 -4.934802, %v2007_v35  ;;  %v1113_v58 = vadd.f32 -0.02580689, %v985_v55  ;;  %v218_v52 = vld [vmem:[%s3068_s30 + $0x280] sm:$0xff] }
 0x19a   : > { %v2386_v51 = vadd.f32 1.0, %v2258_v8  ;;  %v2387_v59 = vadd.f32 1.0, %v2259_v22  ;;  %v2262_v19 = vmul.f32 %v2134_v56, %v3810_v26  ;;  %v1240_v18 = vmul.f32 %v1112_v57, %v3844_v37  ;;  %v220_v26 = vld [vmem:[%s3068_s30 + $0x290] sm:$0xff] }
 0x19b   : > { %v2388_v62 = vadd.f32 1.0, %v2260_v16  ;;  %v2389_v20 = vadd.f32 1.0, %v2261_v7  ;;  %v2263_v25 = vmul.f32 %v2135_v46, %v3814_v48  ;;  %v1241_v13 = vmul.f32 %v1113_v58, %v3848_v9  ;;  %v222_v48 = vld [vmem:[%s3068_s30 + $0x2a0] sm:$0xff] }
 0x19c   : > { %v2514_v23 = vmul.f32 %v2386_v51, %v2386_v51  ;;  %v2515_v10 = vmul.f32 %v2387_v59, %v2387_v59  ;;  %v2390_v33 = vadd.f32 1.0, %v2262_v19  ;;  %v1368_v31 = vadd.f32 0.23533063, %v1240_v18 }
 0x19d   : > { %v2516_v39 = vmul.f32 %v2388_v62, %v2388_v62  ;;  %v2517_v12 = vmul.f32 %v2389_v20, %v2389_v20  ;;  %v2391_v4 = vadd.f32 1.0, %v2263_v25  ;;  %v1369_v42 = vadd.f32 0.23533063, %v1241_v13 }
 0x19e   : > { %2642 = vst [vmem:[%s3152_s17 + $0x240] sm:$0xff] %v2514_v23  ;;  %2643 = vst [vmem:[%s3152_s17 + $0x248] sm:$0xff] %v2515_v10  ;;  %v2518_v63 = vmul.f32 %v2390_v33, %v2390_v33  ;;  %v1496_v15 = vmul.f32 %v1368_v31, %v3844_v37  ;;  %v346_v43 = vmul.f32 0.5, %v218_v52  ;;  %v347_v47 = vmul.f32 0.5, %v219_v1 }
 0x19f   : > { %2644 = vst [vmem:[%s3152_s17 + $0x250] sm:$0xff] %v2516_v39  ;;  %2645 = vst [vmem:[%s3152_s17 + $0x258] sm:$0xff] %v2517_v12  ;;  %v2519_v50 = vmul.f32 %v2391_v4, %v2391_v4  ;;  %v1497_v5 = vmul.f32 %v1369_v42, %v3848_v9  ;;  %v348_v11 = vmul.f32 0.5, %v220_v26  ;;  %v349_v17 = vmul.f32 0.5, %v221_v3 }
 0x1a0   : > { %2646 = vst [vmem:[%s3152_s17 + $0x260] sm:$0xff] %v2518_v63  ;;  %v1624_v40 = vadd.f32 -1.3352628, %v1496_v15  ;;  %v474_v21 = vadd.f32 0.5, %v346_v43  ;;  %v475_v24 = vadd.f32 0.5, %v347_v47  ;;  %v350_v30 = vmul.f32 0.5, %v222_v48 }
 0x1a1   : > { %2647 = vst [vmem:[%s3152_s17 + $0x268] sm:$0xff] %v2519_v50  ;;  %v1625_v27 = vadd.f32 -1.3352628, %v1497_v5  ;;  %v476_v2 = vadd.f32 0.5, %v348_v11  ;;  %v477_v28 = vadd.f32 0.5, %v349_v17  ;;  %v351_v34 = vmul.f32 0.5, %v223_v44 }
 0x1a2   : > { %v1752_v29 = vmul.f32 %v1624_v40, %v3844_v37  ;;  %v602_v61 = vfloor.f32 %v474_v21  ;;  %v603_v60 = vfloor.f32 %v475_v24  ;;  %v478_v36 = vadd.f32 0.5, %v350_v30  ;;  %v225_v5 = vld [vmem:[%s3068_s30 + $0x2b8] sm:$0xff] }
 0x1a3   : > { %v1753_v6 = vmul.f32 %v1625_v27, %v3848_v9  ;;  %v604_v0 = vfloor.f32 %v476_v2  ;;  %v605_v41 = vfloor.f32 %v477_v28  ;;  %v479_v32 = vadd.f32 0.5, %v351_v34 }
 0x1a4   : > { %v1880_v49 = vadd.f32 4.058712, %v1752_v29  ;;  %v730_v45 = vsub.f32 %v346_v43, %v602_v61  ;;  %v731_v38 = vsub.f32 %v347_v47, %v603_v60  ;;  %v606_v54 = vfloor.f32 %v478_v36 }
 0x1a5   : > { %v1881_v14 = vadd.f32 4.058712, %v1753_v6  ;;  %v732_v53 = vsub.f32 %v348_v11, %v604_v0  ;;  %v733_v35 = vsub.f32 %v349_v17, %v605_v41  ;;  %v607_v55 = vfloor.f32 %v479_v32 }
 0x1a6   : > { %v2008_v8 = vmul.f32 %v1880_v49, %v3844_v37  ;;  %v3879_v22 = vmul.f32 %v730_v45, %v730_v45  ;;  %v3881_v56 = vmul.f32 %v731_v38, %v731_v38  ;;  %v734_v57 = vsub.f32 %v350_v30, %v606_v54 }
 0x1a7   : > { %v2009_v16 = vmul.f32 %v1881_v14, %v3848_v9  ;;  %v3884_v7 = vmul.f32 %v732_v53, %v732_v53  ;;  %v3886_v46 = vmul.f32 %v733_v35, %v733_v35  ;;  %v735_v58 = vsub.f32 %v351_v34, %v607_v55 }
 0x1a8   : > { %v2136_v51 = vadd.f32 -4.934802, %v2008_v8  ;;  %v986_v59 = vmul.f32 0.0019295743, %v3879_v22  ;;  %v987_v19 = vmul.f32 0.0019295743, %v3881_v56  ;;  %v3890_v18 = vmul.f32 %v734_v57, %v734_v57 }
 0x1a9   : > { %v2137_v62 = vadd.f32 -4.934802, %v2009_v16  ;;  %v988_v20 = vmul.f32 0.0019295743, %v3884_v7  ;;  %v989_v25 = vmul.f32 0.0019295743, %v3886_v46  ;;  %v3894_v13 = vmul.f32 %v735_v58, %v735_v58 }
 0x1aa   : > { %v2264_v52 = vmul.f32 %v2136_v51, %v3844_v37  ;;  %v1114_v1 = vadd.f32 -0.02580689, %v986_v59  ;;  %v1115_v23 = vadd.f32 -0.02580689, %v987_v19  ;;  %v990_v10 = vmul.f32 0.0019295743, %v3890_v18 }
 0x1ab   : > { %v2265_v33 = vmul.f32 %v2137_v62, %v3848_v9  ;;  %v1116_v31 = vadd.f32 -0.02580689, %v988_v20  ;;  %v1117_v26 = vadd.f32 -0.02580689, %v989_v25  ;;  %v991_v3 = vmul.f32 0.0019295743, %v3894_v13 }
 0x1ac   : > { %v2392_v39 = vadd.f32 1.0, %v2264_v52  ;;  %v1242_v12 = vmul.f32 %v1114_v1, %v3879_v22  ;;  %v1243_v4 = vmul.f32 %v1115_v23, %v3881_v56  ;;  %v1118_v42 = vadd.f32 -0.02580689, %v990_v10  ;;  %v224_v9 = vld [vmem:[%s3068_s30 + $0x2b0] sm:$0xff] }
 0x1ad   : > { %v2393_v37 = vadd.f32 1.0, %v2265_v33  ;;  %v1244_v48 = vmul.f32 %v1116_v31, %v3884_v7  ;;  %v1245_v63 = vmul.f32 %v1117_v26, %v3886_v46  ;;  %v1119_v15 = vadd.f32 -0.02580689, %v991_v3 }
 0x1ae   : > { %v2520_v43 = vmul.f32 %v2392_v39, %v2392_v39  ;;  %v1370_v47 = vadd.f32 0.23533063, %v1242_v12  ;;  %v1371_v44 = vadd.f32 0.23533063, %v1243_v4  ;;  %v1246_v50 = vmul.f32 %v1118_v42, %v3890_v18 }
 0x1af   : > { %v2521_v11 = vmul.f32 %v2393_v37, %v2393_v37  ;;  %v1372_v17 = vadd.f32 0.23533063, %v1244_v48  ;;  %v1373_v40 = vadd.f32 0.23533063, %v1245_v63  ;;  %v1247_v21 = vmul.f32 %v1119_v15, %v3894_v13 }
 0x1b0   : > { %2648 = vst [vmem:[%s3152_s17 + $0x270] sm:$0xff] %v2520_v43  ;;  %v1498_v24 = vmul.f32 %v1370_v47, %v3879_v22  ;;  %v1499_v30 = vmul.f32 %v1371_v44, %v3881_v56  ;;  %v1374_v27 = vadd.f32 0.23533063, %v1246_v50  ;;  %v352_v2 = vmul.f32 0.5, %v224_v9 }
 0x1b1   : > { %2649 = vst [vmem:[%s3152_s17 + $0x278] sm:$0xff] %v2521_v11  ;;  %v1500_v28 = vmul.f32 %v1372_v17, %v3884_v7  ;;  %v1501_v34 = vmul.f32 %v1373_v40, %v3886_v46  ;;  %v1375_v29 = vadd.f32 0.23533063, %v1247_v21  ;;  %v353_v61 = vmul.f32 0.5, %v225_v5 }
 0x1b2   : > { %v1626_v60 = vadd.f32 -1.3352628, %v1498_v24  ;;  %v1627_v36 = vadd.f32 -1.3352628, %v1499_v30  ;;  %v1502_v6 = vmul.f32 %v1374_v27, %v3890_v18  ;;  %v480_v0 = vadd.f32 0.5, %v352_v2 }
 0x1b3   : > { %v1628_v41 = vadd.f32 -1.3352628, %v1500_v28  ;;  %v1629_v32 = vadd.f32 -1.3352628, %v1501_v34  ;;  %v1503_v49 = vmul.f32 %v1375_v29, %v3894_v13  ;;  %v481_v45 = vadd.f32 0.5, %v353_v61 }
 0x1b4   : > { %v1754_v38 = vmul.f32 %v1626_v60, %v3879_v22  ;;  %v1755_v54 = vmul.f32 %v1627_v36, %v3881_v56  ;;  %v1630_v14 = vadd.f32 -1.3352628, %v1502_v6  ;;  %v608_v53 = vfloor.f32 %v480_v0  ;;  %v229_v60 = vld [vmem:[%s3068_s30 + $0x2d8] sm:$0xff] }
 0x1b5   : > { %v1756_v35 = vmul.f32 %v1628_v41, %v3884_v7  ;;  %v1757_v55 = vmul.f32 %v1629_v32, %v3886_v46  ;;  %v1631_v8 = vadd.f32 -1.3352628, %v1503_v49  ;;  %v609_v57 = vfloor.f32 %v481_v45 }
 0x1b6   : > { %v1882_v16 = vadd.f32 4.058712, %v1754_v38  ;;  %v1883_v58 = vadd.f32 4.058712, %v1755_v54  ;;  %v1758_v51 = vmul.f32 %v1630_v14, %v3890_v18  ;;  %v736_v59 = vsub.f32 %v352_v2, %v608_v53  ;;  %v227_v2 = vld [vmem:[%s3068_s30 + $0x2c8] sm:$0xff] }
 0x1b7   : > { %v1884_v19 = vadd.f32 4.058712, %v1756_v35  ;;  %v1885_v62 = vadd.f32 4.058712, %v1757_v55  ;;  %v1759_v20 = vmul.f32 %v1631_v8, %v3894_v13  ;;  %v737_v25 = vsub.f32 %v353_v61, %v609_v57  ;;  %v231_v54 = vld [vmem:[%s3068_s30 + $0x2e8] sm:$0xff] }
 0x1b8   : > { %v2010_v52 = vmul.f32 %v1882_v16, %v3879_v22  ;;  %v2011_v1 = vmul.f32 %v1883_v58, %v3881_v56  ;;  %v1886_v23 = vadd.f32 4.058712, %v1758_v51  ;;  %v3924_v10 = vmul.f32 %v736_v59, %v736_v59 }
 0x1b9   : > { %v2012_v33 = vmul.f32 %v1884_v19, %v3884_v7  ;;  %v2013_v31 = vmul.f32 %v1885_v62, %v3886_v46  ;;  %v1887_v26 = vadd.f32 4.058712, %v1759_v20  ;;  %v3928_v3 = vmul.f32 %v737_v25, %v737_v25 }
 0x1ba   : > { %v2138_v39 = vadd.f32 -4.934802, %v2010_v52  ;;  %v2139_v12 = vadd.f32 -4.934802, %v2011_v1  ;;  %v2014_v4 = vmul.f32 %v1886_v23, %v3890_v18  ;;  %v992_v42 = vmul.f32 0.0019295743, %v3924_v10 }
 0x1bb   : > { %v2140_v37 = vadd.f32 -4.934802, %v2012_v33  ;;  %v2141_v48 = vadd.f32 -4.934802, %v2013_v31  ;;  %v2015_v63 = vmul.f32 %v1887_v26, %v3894_v13  ;;  %v993_v15 = vmul.f32 0.0019295743, %v3928_v3 }
 0x1bc   : > { %v2266_v9 = vmul.f32 %v2138_v39, %v3879_v22  ;;  %v2267_v43 = vmul.f32 %v2139_v12, %v3881_v56  ;;  %v2142_v47 = vadd.f32 -4.934802, %v2014_v4  ;;  %v1120_v44 = vadd.f32 -0.02580689, %v992_v42 }
 0x1bd   : > { %v2268_v50 = vmul.f32 %v2140_v37, %v3884_v7  ;;  %v2269_v5 = vmul.f32 %v2141_v48, %v3886_v46  ;;  %v2143_v11 = vadd.f32 -4.934802, %v2015_v63  ;;  %v1121_v17 = vadd.f32 -0.02580689, %v993_v15  ;;  %v226_v46 = vld [vmem:[%s3068_s30 + $0x2c0] sm:$0xff] }
 0x1be   : > { %v2394_v40 = vadd.f32 1.0, %v2266_v9  ;;  %v2395_v21 = vadd.f32 1.0, %v2267_v43  ;;  %v2270_v24 = vmul.f32 %v2142_v47, %v3890_v18  ;;  %v1248_v22 = vmul.f32 %v1120_v44, %v3924_v10  ;;  %v228_v18 = vld [vmem:[%s3068_s30 + $0x2d0] sm:$0xff] }
 0x1bf   : > { %v2396_v30 = vadd.f32 1.0, %v2268_v50  ;;  %v2397_v56 = vadd.f32 1.0, %v2269_v5  ;;  %v2271_v27 = vmul.f32 %v2143_v11, %v3894_v13  ;;  %v1249_v7 = vmul.f32 %v1121_v17, %v3928_v3  ;;  %v230_v13 = vld [vmem:[%s3068_s30 + $0x2e0] sm:$0xff] }
 0x1c0   : > { %v2522_v28 = vmul.f32 %v2394_v40, %v2394_v40  ;;  %v2523_v34 = vmul.f32 %v2395_v21, %v2395_v21  ;;  %v2398_v29 = vadd.f32 1.0, %v2270_v24  ;;  %v1376_v61 = vadd.f32 0.23533063, %v1248_v22 }
 0x1c1   : > { %v2524_v36 = vmul.f32 %v2396_v30, %v2396_v30  ;;  %v2525_v6 = vmul.f32 %v2397_v56, %v2397_v56  ;;  %v2399_v0 = vadd.f32 1.0, %v2271_v27  ;;  %v1377_v41 = vadd.f32 0.23533063, %v1249_v7 }
 0x1c2   : > { %2650 = vst [vmem:[%s3152_s17 + $0x280] sm:$0xff] %v2522_v28  ;;  %2651 = vst [vmem:[%s3152_s17 + $0x288] sm:$0xff] %v2523_v34  ;;  %v2526_v32 = vmul.f32 %v2398_v29, %v2398_v29  ;;  %v1504_v49 = vmul.f32 %v1376_v61, %v3924_v10  ;;  %v354_v45 = vmul.f32 0.5, %v226_v46  ;;  %v355_v38 = vmul.f32 0.5, %v227_v2 }
 0x1c3   : > { %2652 = vst [vmem:[%s3152_s17 + $0x290] sm:$0xff] %v2524_v36  ;;  %2653 = vst [vmem:[%s3152_s17 + $0x298] sm:$0xff] %v2525_v6  ;;  %v2527_v14 = vmul.f32 %v2399_v0, %v2399_v0  ;;  %v1505_v53 = vmul.f32 %v1377_v41, %v3928_v3  ;;  %v356_v35 = vmul.f32 0.5, %v228_v18  ;;  %v357_v55 = vmul.f32 0.5, %v229_v60 }
 0x1c4   : > { %2654 = vst [vmem:[%s3152_s17 + $0x2a0] sm:$0xff] %v2526_v32  ;;  %v1632_v8 = vadd.f32 -1.3352628, %v1504_v49  ;;  %v482_v57 = vadd.f32 0.5, %v354_v45  ;;  %v483_v16 = vadd.f32 0.5, %v355_v38  ;;  %v358_v58 = vmul.f32 0.5, %v230_v13 }
 0x1c5   : > { %2655 = vst [vmem:[%s3152_s17 + $0x2a8] sm:$0xff] %v2527_v14  ;;  %v1633_v51 = vadd.f32 -1.3352628, %v1505_v53  ;;  %v484_v59 = vadd.f32 0.5, %v356_v35  ;;  %v485_v19 = vadd.f32 0.5, %v357_v55  ;;  %v359_v62 = vmul.f32 0.5, %v231_v54 }
 0x1c6   : > { %v1760_v20 = vmul.f32 %v1632_v8, %v3924_v10  ;;  %v610_v25 = vfloor.f32 %v482_v57  ;;  %v611_v52 = vfloor.f32 %v483_v16  ;;  %v486_v1 = vadd.f32 0.5, %v358_v58  ;;  %v233_v53 = vld [vmem:[%s3068_s30 + $0x2f8] sm:$0xff] }
 0x1c7   : > { %v1761_v23 = vmul.f32 %v1633_v51, %v3928_v3  ;;  %v612_v33 = vfloor.f32 %v484_v59  ;;  %v613_v31 = vfloor.f32 %v485_v19  ;;  %v487_v26 = vadd.f32 0.5, %v359_v62 }
 0x1c8   : > { %v1888_v39 = vadd.f32 4.058712, %v1760_v20  ;;  %v738_v12 = vsub.f32 %v354_v45, %v610_v25  ;;  %v739_v4 = vsub.f32 %v355_v38, %v611_v52  ;;  %v614_v42 = vfloor.f32 %v486_v1 }
 0x1c9   : > { %v1889_v37 = vadd.f32 4.058712, %v1761_v23  ;;  %v740_v48 = vsub.f32 %v356_v35, %v612_v33  ;;  %v741_v63 = vsub.f32 %v357_v55, %v613_v31  ;;  %v615_v15 = vfloor.f32 %v487_v26 }
 0x1ca   : > { %v2016_v9 = vmul.f32 %v1888_v39, %v3924_v10  ;;  %v3959_v43 = vmul.f32 %v738_v12, %v738_v12  ;;  %v3961_v47 = vmul.f32 %v739_v4, %v739_v4  ;;  %v742_v44 = vsub.f32 %v358_v58, %v614_v42 }
 0x1cb   : > { %v2017_v50 = vmul.f32 %v1889_v37, %v3928_v3  ;;  %v3964_v5 = vmul.f32 %v740_v48, %v740_v48  ;;  %v3966_v11 = vmul.f32 %v741_v63, %v741_v63  ;;  %v743_v17 = vsub.f32 %v359_v62, %v615_v15 }
 0x1cc   : > { %v2144_v40 = vadd.f32 -4.934802, %v2016_v9  ;;  %v994_v21 = vmul.f32 0.0019295743, %v3959_v43  ;;  %v995_v24 = vmul.f32 0.0019295743, %v3961_v47  ;;  %v3970_v22 = vmul.f32 %v742_v44, %v742_v44 }
 0x1cd   : > { %v2145_v30 = vadd.f32 -4.934802, %v2017_v50  ;;  %v996_v56 = vmul.f32 0.0019295743, %v3964_v5  ;;  %v997_v27 = vmul.f32 0.0019295743, %v3966_v11  ;;  %v3974_v7 = vmul.f32 %v743_v17, %v743_v17 }
 0x1ce   : > { %v2272_v46 = vmul.f32 %v2144_v40, %v3924_v10  ;;  %v1122_v2 = vadd.f32 -0.02580689, %v994_v21  ;;  %v1123_v28 = vadd.f32 -0.02580689, %v995_v24  ;;  %v998_v34 = vmul.f32 0.0019295743, %v3970_v22 }
 0x1cf   : > { %v2273_v29 = vmul.f32 %v2145_v30, %v3928_v3  ;;  %v1124_v61 = vadd.f32 -0.02580689, %v996_v56  ;;  %v1125_v18 = vadd.f32 -0.02580689, %v997_v27  ;;  %v999_v60 = vmul.f32 0.0019295743, %v3974_v7 }
 0x1d0   : > { %v2400_v36 = vadd.f32 1.0, %v2272_v46  ;;  %v1250_v6 = vmul.f32 %v1122_v2, %v3959_v43  ;;  %v1251_v0 = vmul.f32 %v1123_v28, %v3961_v47  ;;  %v1126_v41 = vadd.f32 -0.02580689, %v998_v34  ;;  %v232_v3 = vld [vmem:[%s3068_s30 + $0x2f0] sm:$0xff] }
 0x1d1   : > { %v2401_v10 = vadd.f32 1.0, %v2273_v29  ;;  %v1252_v13 = vmul.f32 %v1124_v61, %v3964_v5  ;;  %v1253_v32 = vmul.f32 %v1125_v18, %v3966_v11  ;;  %v1127_v49 = vadd.f32 -0.02580689, %v999_v60 }
 0x1d2   : > { %v2528_v45 = vmul.f32 %v2400_v36, %v2400_v36  ;;  %v1378_v38 = vadd.f32 0.23533063, %v1250_v6  ;;  %v1379_v54 = vadd.f32 0.23533063, %v1251_v0  ;;  %v1254_v14 = vmul.f32 %v1126_v41, %v3970_v22 }
 0x1d3   : > { %v2529_v35 = vmul.f32 %v2401_v10, %v2401_v10  ;;  %v1380_v55 = vadd.f32 0.23533063, %v1252_v13  ;;  %v1381_v8 = vadd.f32 0.23533063, %v1253_v32  ;;  %v1255_v57 = vmul.f32 %v1127_v49, %v3974_v7 }
 0x1d4   : > { %2656 = vst [vmem:[%s3152_s17 + $0x2b0] sm:$0xff] %v2528_v45  ;;  %v1506_v16 = vmul.f32 %v1378_v38, %v3959_v43  ;;  %v1507_v58 = vmul.f32 %v1379_v54, %v3961_v47  ;;  %v1382_v51 = vadd.f32 0.23533063, %v1254_v14  ;;  %v360_v59 = vmul.f32 0.5, %v232_v3 }
 0x1d5   : > { %2657 = vst [vmem:[%s3152_s17 + $0x2b8] sm:$0xff] %v2529_v35  ;;  %v1508_v19 = vmul.f32 %v1380_v55, %v3964_v5  ;;  %v1509_v62 = vmul.f32 %v1381_v8, %v3966_v11  ;;  %v1383_v20 = vadd.f32 0.23533063, %v1255_v57  ;;  %v361_v25 = vmul.f32 0.5, %v233_v53 }
 0x1d6   : > { %v1634_v52 = vadd.f32 -1.3352628, %v1506_v16  ;;  %v1635_v1 = vadd.f32 -1.3352628, %v1507_v58  ;;  %v1510_v23 = vmul.f32 %v1382_v51, %v3970_v22  ;;  %v488_v33 = vadd.f32 0.5, %v360_v59 }
 0x1d7   : > { %v1636_v31 = vadd.f32 -1.3352628, %v1508_v19  ;;  %v1637_v26 = vadd.f32 -1.3352628, %v1509_v62  ;;  %v1511_v39 = vmul.f32 %v1383_v20, %v3974_v7  ;;  %v489_v12 = vadd.f32 0.5, %v361_v25 }
 0x1d8   : > { %v1762_v4 = vmul.f32 %v1634_v52, %v3959_v43  ;;  %v1763_v42 = vmul.f32 %v1635_v1, %v3961_v47  ;;  %v1638_v37 = vadd.f32 -1.3352628, %v1510_v23  ;;  %v616_v48 = vfloor.f32 %v488_v33  ;;  %v237_v52 = vld [vmem:[%s3068_s30 + $0x318] sm:$0xff] }
 0x1d9   : > { %v1764_v63 = vmul.f32 %v1636_v31, %v3964_v5  ;;  %v1765_v15 = vmul.f32 %v1637_v26, %v3966_v11  ;;  %v1639_v9 = vadd.f32 -1.3352628, %v1511_v39  ;;  %v617_v44 = vfloor.f32 %v489_v12 }
 0x1da   : > { %v1890_v50 = vadd.f32 4.058712, %v1762_v4  ;;  %v1891_v17 = vadd.f32 4.058712, %v1763_v42  ;;  %v1766_v40 = vmul.f32 %v1638_v37, %v3970_v22  ;;  %v744_v21 = vsub.f32 %v360_v59, %v616_v48  ;;  %v235_v59 = vld [vmem:[%s3068_s30 + $0x308] sm:$0xff] }
 0x1db   : > { %v1892_v24 = vadd.f32 4.058712, %v1764_v63  ;;  %v1893_v30 = vadd.f32 4.058712, %v1765_v15  ;;  %v1767_v56 = vmul.f32 %v1639_v9, %v3974_v7  ;;  %v745_v27 = vsub.f32 %v361_v25, %v617_v44  ;;  %v239_v42 = vld [vmem:[%s3068_s30 + $0x328] sm:$0xff] }
 0x1dc   : > { %v2018_v46 = vmul.f32 %v1890_v50, %v3959_v43  ;;  %v2019_v2 = vmul.f32 %v1891_v17, %v3961_v47  ;;  %v1894_v28 = vadd.f32 4.058712, %v1766_v40  ;;  %v4004_v34 = vmul.f32 %v744_v21, %v744_v21 }
 0x1dd   : > { %v2020_v29 = vmul.f32 %v1892_v24, %v3964_v5  ;;  %v2021_v61 = vmul.f32 %v1893_v30, %v3966_v11  ;;  %v1895_v18 = vadd.f32 4.058712, %v1767_v56  ;;  %v4008_v60 = vmul.f32 %v745_v27, %v745_v27 }
 0x1de   : > { %v2146_v36 = vadd.f32 -4.934802, %v2018_v46  ;;  %v2147_v6 = vadd.f32 -4.934802, %v2019_v2  ;;  %v2022_v0 = vmul.f32 %v1894_v28, %v3970_v22  ;;  %v1000_v41 = vmul.f32 0.0019295743, %v4004_v34 }
 0x1df   : > { %v2148_v10 = vadd.f32 -4.934802, %v2020_v29  ;;  %v2149_v13 = vadd.f32 -4.934802, %v2021_v61  ;;  %v2023_v32 = vmul.f32 %v1895_v18, %v3974_v7  ;;  %v1001_v49 = vmul.f32 0.0019295743, %v4008_v60 }
 0x1e0   : > { %v2274_v3 = vmul.f32 %v2146_v36, %v3959_v43  ;;  %v2275_v45 = vmul.f32 %v2147_v6, %v3961_v47  ;;  %v2150_v38 = vadd.f32 -4.934802, %v2022_v0  ;;  %v1128_v54 = vadd.f32 -0.02580689, %v1000_v41 }
 0x1e1   : > { %v2276_v14 = vmul.f32 %v2148_v10, %v3964_v5  ;;  %v2277_v53 = vmul.f32 %v2149_v13, %v3966_v11  ;;  %v2151_v35 = vadd.f32 -4.934802, %v2023_v32  ;;  %v1129_v55 = vadd.f32 -0.02580689, %v1001_v49  ;;  %v234_v11 = vld [vmem:[%s3068_s30 + $0x300] sm:$0xff] }
 0x1e2   : > { %v2402_v8 = vadd.f32 1.0, %v2274_v3  ;;  %v2403_v57 = vadd.f32 1.0, %v2275_v45  ;;  %v2278_v16 = vmul.f32 %v2150_v38, %v3970_v22  ;;  %v1256_v43 = vmul.f32 %v1128_v54, %v4004_v34  ;;  %v236_v22 = vld [vmem:[%s3068_s30 + $0x310] sm:$0xff] }
 0x1e3   : > { %v2404_v58 = vadd.f32 1.0, %v2276_v14  ;;  %v2405_v47 = vadd.f32 1.0, %v2277_v53  ;;  %v2279_v51 = vmul.f32 %v2151_v35, %v3974_v7  ;;  %v1257_v5 = vmul.f32 %v1129_v55, %v4008_v60  ;;  %v238_v7 = vld [vmem:[%s3068_s30 + $0x320] sm:$0xff] }
 0x1e4   : > { %v2530_v19 = vmul.f32 %v2402_v8, %v2402_v8  ;;  %v2531_v62 = vmul.f32 %v2403_v57, %v2403_v57  ;;  %v2406_v20 = vadd.f32 1.0, %v2278_v16  ;;  %v1384_v25 = vadd.f32 0.23533063, %v1256_v43 }
 0x1e5   : > { %v2532_v1 = vmul.f32 %v2404_v58, %v2404_v58  ;;  %v2533_v23 = vmul.f32 %v2405_v47, %v2405_v47  ;;  %v2407_v33 = vadd.f32 1.0, %v2279_v51  ;;  %v1385_v31 = vadd.f32 0.23533063, %v1257_v5 }
 0x1e6   : > { %2658 = vst [vmem:[%s3152_s17 + $0x2c0] sm:$0xff] %v2530_v19  ;;  %2659 = vst [vmem:[%s3152_s17 + $0x2c8] sm:$0xff] %v2531_v62  ;;  %v2534_v26 = vmul.f32 %v2406_v20, %v2406_v20  ;;  %v1512_v39 = vmul.f32 %v1384_v25, %v4004_v34  ;;  %v362_v12 = vmul.f32 0.5, %v234_v11  ;;  %v363_v4 = vmul.f32 0.5, %v235_v59 }
 0x1e7   : > { %2660 = vst [vmem:[%s3152_s17 + $0x2d0] sm:$0xff] %v2532_v1  ;;  %2661 = vst [vmem:[%s3152_s17 + $0x2d8] sm:$0xff] %v2533_v23  ;;  %v2535_v37 = vmul.f32 %v2407_v33, %v2407_v33  ;;  %v1513_v48 = vmul.f32 %v1385_v31, %v4008_v60  ;;  %v364_v63 = vmul.f32 0.5, %v236_v22  ;;  %v365_v15 = vmul.f32 0.5, %v237_v52 }
 0x1e8   : > { %2662 = vst [vmem:[%s3152_s17 + $0x2e0] sm:$0xff] %v2534_v26  ;;  %v1640_v9 = vadd.f32 -1.3352628, %v1512_v39  ;;  %v490_v44 = vadd.f32 0.5, %v362_v12  ;;  %v491_v50 = vadd.f32 0.5, %v363_v4  ;;  %v366_v17 = vmul.f32 0.5, %v238_v7 }
 0x1e9   : > { %2663 = vst [vmem:[%s3152_s17 + $0x2e8] sm:$0xff] %v2535_v37  ;;  %v1641_v40 = vadd.f32 -1.3352628, %v1513_v48  ;;  %v492_v21 = vadd.f32 0.5, %v364_v63  ;;  %v493_v24 = vadd.f32 0.5, %v365_v15  ;;  %v367_v30 = vmul.f32 0.5, %v239_v42 }
 0x1ea   : > { %v1768_v56 = vmul.f32 %v1640_v9, %v4004_v34  ;;  %v618_v27 = vfloor.f32 %v490_v44  ;;  %v619_v46 = vfloor.f32 %v491_v50  ;;  %v494_v2 = vadd.f32 0.5, %v366_v17  ;;  %v241_v48 = vld [vmem:[%s3068_s30 + $0x338] sm:$0xff] }
 0x1eb   : > { %v1769_v28 = vmul.f32 %v1641_v40, %v4008_v60  ;;  %v620_v29 = vfloor.f32 %v492_v21  ;;  %v621_v61 = vfloor.f32 %v493_v24  ;;  %v495_v18 = vadd.f32 0.5, %v367_v30 }
 0x1ec   : > { %v1896_v36 = vadd.f32 4.058712, %v1768_v56  ;;  %v746_v6 = vsub.f32 %v362_v12, %v618_v27  ;;  %v747_v0 = vsub.f32 %v363_v4, %v619_v46  ;;  %v622_v41 = vfloor.f32 %v494_v2 }
 0x1ed   : > { %v1897_v10 = vadd.f32 4.058712, %v1769_v28  ;;  %v748_v13 = vsub.f32 %v364_v63, %v620_v29  ;;  %v749_v32 = vsub.f32 %v365_v15, %v621_v61  ;;  %v623_v49 = vfloor.f32 %v495_v18 }
 0x1ee   : > { %v2024_v3 = vmul.f32 %v1896_v36, %v4004_v34  ;;  %v4039_v45 = vmul.f32 %v746_v6, %v746_v6  ;;  %v4041_v38 = vmul.f32 %v747_v0, %v747_v0  ;;  %v750_v54 = vsub.f32 %v366_v17, %v622_v41 }
 0x1ef   : > { %v2025_v14 = vmul.f32 %v1897_v10, %v4008_v60  ;;  %v4044_v53 = vmul.f32 %v748_v13, %v748_v13  ;;  %v4046_v35 = vmul.f32 %v749_v32, %v749_v32  ;;  %v751_v55 = vsub.f32 %v367_v30, %v623_v49 }
 0x1f0   : > { %v2152_v8 = vadd.f32 -4.934802, %v2024_v3  ;;  %v1002_v57 = vmul.f32 0.0019295743, %v4039_v45  ;;  %v1003_v16 = vmul.f32 0.0019295743, %v4041_v38  ;;  %v4050_v43 = vmul.f32 %v750_v54, %v750_v54 }
 0x1f1   : > { %v2153_v58 = vadd.f32 -4.934802, %v2025_v14  ;;  %v1004_v47 = vmul.f32 0.0019295743, %v4044_v53  ;;  %v1005_v51 = vmul.f32 0.0019295743, %v4046_v35  ;;  %v4054_v5 = vmul.f32 %v751_v55, %v751_v55 }
 0x1f2   : > { %v2280_v11 = vmul.f32 %v2152_v8, %v4004_v34  ;;  %v1130_v59 = vadd.f32 -0.02580689, %v1002_v57  ;;  %v1131_v19 = vadd.f32 -0.02580689, %v1003_v16  ;;  %v1006_v62 = vmul.f32 0.0019295743, %v4050_v43 }
 0x1f3   : > { %v2281_v20 = vmul.f32 %v2153_v58, %v4008_v60  ;;  %v1132_v25 = vadd.f32 -0.02580689, %v1004_v47  ;;  %v1133_v22 = vadd.f32 -0.02580689, %v1005_v51  ;;  %v1007_v52 = vmul.f32 0.0019295743, %v4054_v5 }
 0x1f4   : > { %v2408_v1 = vadd.f32 1.0, %v2280_v11  ;;  %v1258_v23 = vmul.f32 %v1130_v59, %v4039_v45  ;;  %v1259_v33 = vmul.f32 %v1131_v19, %v4041_v38  ;;  %v1134_v31 = vadd.f32 -0.02580689, %v1006_v62  ;;  %v240_v60 = vld [vmem:[%s3068_s30 + $0x330] sm:$0xff] }
 0x1f5   : > { %v2409_v34 = vadd.f32 1.0, %v2281_v20  ;;  %v1260_v7 = vmul.f32 %v1132_v25, %v4044_v53  ;;  %v1261_v26 = vmul.f32 %v1133_v22, %v4046_v35  ;;  %v1135_v39 = vadd.f32 -0.02580689, %v1007_v52 }
 0x1f6   : > { %v2536_v12 = vmul.f32 %v2408_v1, %v2408_v1  ;;  %v1386_v4 = vadd.f32 0.23533063, %v1258_v23  ;;  %v1387_v42 = vadd.f32 0.23533063, %v1259_v33  ;;  %v1262_v37 = vmul.f32 %v1134_v31, %v4050_v43 }
 0x1f7   : > { %v2537_v63 = vmul.f32 %v2409_v34, %v2409_v34  ;;  %v1388_v15 = vadd.f32 0.23533063, %v1260_v7  ;;  %v1389_v9 = vadd.f32 0.23533063, %v1261_v26  ;;  %v1263_v44 = vmul.f32 %v1135_v39, %v4054_v5 }
 0x1f8   : > { %2664 = vst [vmem:[%s3152_s17 + $0x2f0] sm:$0xff] %v2536_v12  ;;  %v1514_v50 = vmul.f32 %v1386_v4, %v4039_v45  ;;  %v1515_v17 = vmul.f32 %v1387_v42, %v4041_v38  ;;  %v1390_v40 = vadd.f32 0.23533063, %v1262_v37  ;;  %v368_v21 = vmul.f32 0.5, %v240_v60 }
 0x1f9   : > { %2665 = vst [vmem:[%s3152_s17 + $0x2f8] sm:$0xff] %v2537_v63  ;;  %v1516_v24 = vmul.f32 %v1388_v15, %v4044_v53  ;;  %v1517_v30 = vmul.f32 %v1389_v9, %v4046_v35  ;;  %v1391_v56 = vadd.f32 0.23533063, %v1263_v44  ;;  %v369_v27 = vmul.f32 0.5, %v241_v48 }
 0x1fa   : > { %v1642_v46 = vadd.f32 -1.3352628, %v1514_v50  ;;  %v1643_v2 = vadd.f32 -1.3352628, %v1515_v17  ;;  %v1518_v28 = vmul.f32 %v1390_v40, %v4050_v43  ;;  %v496_v29 = vadd.f32 0.5, %v368_v21 }
 0x1fb   : > { %v1644_v61 = vadd.f32 -1.3352628, %v1516_v24  ;;  %v1645_v18 = vadd.f32 -1.3352628, %v1517_v30  ;;  %v1519_v36 = vmul.f32 %v1391_v56, %v4054_v5  ;;  %v497_v6 = vadd.f32 0.5, %v369_v27 }
 0x1fc   : > { %v1770_v0 = vmul.f32 %v1642_v46, %v4039_v45  ;;  %v1771_v41 = vmul.f32 %v1643_v2, %v4041_v38  ;;  %v1646_v10 = vadd.f32 -1.3352628, %v1518_v28  ;;  %v624_v13 = vfloor.f32 %v496_v29  ;;  %v245_v46 = vld [vmem:[%s3068_s30 + $0x358] sm:$0xff] }
 0x1fd   : > { %v1772_v32 = vmul.f32 %v1644_v61, %v4044_v53  ;;  %v1773_v49 = vmul.f32 %v1645_v18, %v4046_v35  ;;  %v1647_v3 = vadd.f32 -1.3352628, %v1519_v36  ;;  %v625_v54 = vfloor.f32 %v497_v6 }
 0x1fe   : > { %v1898_v14 = vadd.f32 4.058712, %v1770_v0  ;;  %v1899_v55 = vadd.f32 4.058712, %v1771_v41  ;;  %v1774_v8 = vmul.f32 %v1646_v10, %v4050_v43  ;;  %v752_v57 = vsub.f32 %v368_v21, %v624_v13  ;;  %v243_v21 = vld [vmem:[%s3068_s30 + $0x348] sm:$0xff] }
 0x1ff   : > { %v1900_v16 = vadd.f32 4.058712, %v1772_v32  ;;  %v1901_v58 = vadd.f32 4.058712, %v1773_v49  ;;  %v1775_v47 = vmul.f32 %v1647_v3, %v4054_v5  ;;  %v753_v51 = vsub.f32 %v369_v27, %v625_v54  ;;  %v247_v41 = vld [vmem:[%s3068_s30 + $0x368] sm:$0xff] }
 0x200   : > { %v2026_v11 = vmul.f32 %v1898_v14, %v4039_v45  ;;  %v2027_v59 = vmul.f32 %v1899_v55, %v4041_v38  ;;  %v1902_v19 = vadd.f32 4.058712, %v1774_v8  ;;  %v4084_v62 = vmul.f32 %v752_v57, %v752_v57 }
 0x201   : > { %v2028_v20 = vmul.f32 %v1900_v16, %v4044_v53  ;;  %v2029_v25 = vmul.f32 %v1901_v58, %v4046_v35  ;;  %v1903_v22 = vadd.f32 4.058712, %v1775_v47  ;;  %v4088_v52 = vmul.f32 %v753_v51, %v753_v51 }
 0x202   : > { %v2154_v1 = vadd.f32 -4.934802, %v2026_v11  ;;  %v2155_v23 = vadd.f32 -4.934802, %v2027_v59  ;;  %v2030_v33 = vmul.f32 %v1902_v19, %v4050_v43  ;;  %v1008_v31 = vmul.f32 0.0019295743, %v4084_v62 }
 0x203   : > { %v2156_v34 = vadd.f32 -4.934802, %v2028_v20  ;;  %v2157_v7 = vadd.f32 -4.934802, %v2029_v25  ;;  %v2031_v26 = vmul.f32 %v1903_v22, %v4054_v5  ;;  %v1009_v39 = vmul.f32 0.0019295743, %v4088_v52 }
 0x204   : > { %v2282_v60 = vmul.f32 %v2154_v1, %v4039_v45  ;;  %v2283_v12 = vmul.f32 %v2155_v23, %v4041_v38  ;;  %v2158_v4 = vadd.f32 -4.934802, %v2030_v33  ;;  %v1136_v42 = vadd.f32 -0.02580689, %v1008_v31 }
 0x205   : > { %v2284_v37 = vmul.f32 %v2156_v34, %v4044_v53  ;;  %v2285_v48 = vmul.f32 %v2157_v7, %v4046_v35  ;;  %v2159_v63 = vadd.f32 -4.934802, %v2031_v26  ;;  %v1137_v15 = vadd.f32 -0.02580689, %v1009_v39  ;;  %v242_v35 = vld [vmem:[%s3068_s30 + $0x340] sm:$0xff] }
 0x206   : > { %v2410_v9 = vadd.f32 1.0, %v2282_v60  ;;  %v2411_v44 = vadd.f32 1.0, %v2283_v12  ;;  %v2286_v50 = vmul.f32 %v2158_v4, %v4050_v43  ;;  %v1264_v45 = vmul.f32 %v1136_v42, %v4084_v62  ;;  %v244_v43 = vld [vmem:[%s3068_s30 + $0x350] sm:$0xff] }
 0x207   : > { %v2412_v17 = vadd.f32 1.0, %v2284_v37  ;;  %v2413_v38 = vadd.f32 1.0, %v2285_v48  ;;  %v2287_v40 = vmul.f32 %v2159_v63, %v4054_v5  ;;  %v1265_v53 = vmul.f32 %v1137_v15, %v4088_v52  ;;  %v246_v5 = vld [vmem:[%s3068_s30 + $0x360] sm:$0xff] }
 0x208   : > { %v2538_v24 = vmul.f32 %v2410_v9, %v2410_v9  ;;  %v2539_v30 = vmul.f32 %v2411_v44, %v2411_v44  ;;  %v2414_v56 = vadd.f32 1.0, %v2286_v50  ;;  %v1392_v27 = vadd.f32 0.23533063, %v1264_v45 }
 0x209   : > { %v2540_v2 = vmul.f32 %v2412_v17, %v2412_v17  ;;  %v2541_v28 = vmul.f32 %v2413_v38, %v2413_v38  ;;  %v2415_v29 = vadd.f32 1.0, %v2287_v40  ;;  %v1393_v61 = vadd.f32 0.23533063, %v1265_v53 }
 0x20a   : > { %2666 = vst [vmem:[%s3152_s17 + $0x300] sm:$0xff] %v2538_v24  ;;  %2667 = vst [vmem:[%s3152_s17 + $0x308] sm:$0xff] %v2539_v30  ;;  %v2542_v18 = vmul.f32 %v2414_v56, %v2414_v56  ;;  %v1520_v36 = vmul.f32 %v1392_v27, %v4084_v62  ;;  %v370_v6 = vmul.f32 0.5, %v242_v35  ;;  %v371_v0 = vmul.f32 0.5, %v243_v21 }
 0x20b   : > { %2668 = vst [vmem:[%s3152_s17 + $0x310] sm:$0xff] %v2540_v2  ;;  %2669 = vst [vmem:[%s3152_s17 + $0x318] sm:$0xff] %v2541_v28  ;;  %v2543_v10 = vmul.f32 %v2415_v29, %v2415_v29  ;;  %v1521_v13 = vmul.f32 %v1393_v61, %v4088_v52  ;;  %v372_v32 = vmul.f32 0.5, %v244_v43  ;;  %v373_v49 = vmul.f32 0.5, %v245_v46 }
 0x20c   : > { %2670 = vst [vmem:[%s3152_s17 + $0x320] sm:$0xff] %v2542_v18  ;;  %v1648_v3 = vadd.f32 -1.3352628, %v1520_v36  ;;  %v498_v54 = vadd.f32 0.5, %v370_v6  ;;  %v499_v14 = vadd.f32 0.5, %v371_v0  ;;  %v374_v55 = vmul.f32 0.5, %v246_v5 }
 0x20d   : > { %2671 = vst [vmem:[%s3152_s17 + $0x328] sm:$0xff] %v2543_v10  ;;  %v1649_v8 = vadd.f32 -1.3352628, %v1521_v13  ;;  %v500_v57 = vadd.f32 0.5, %v372_v32  ;;  %v501_v16 = vadd.f32 0.5, %v373_v49  ;;  %v375_v58 = vmul.f32 0.5, %v247_v41 }
 0x20e   : > { %v1776_v47 = vmul.f32 %v1648_v3, %v4084_v62  ;;  %v626_v51 = vfloor.f32 %v498_v54  ;;  %v627_v11 = vfloor.f32 %v499_v14  ;;  %v502_v59 = vadd.f32 0.5, %v374_v55  ;;  %v249_v13 = vld [vmem:[%s3068_s30 + $0x378] sm:$0xff] }
 0x20f   : > { %v1777_v19 = vmul.f32 %v1649_v8, %v4088_v52  ;;  %v628_v20 = vfloor.f32 %v500_v57  ;;  %v629_v25 = vfloor.f32 %v501_v16  ;;  %v503_v22 = vadd.f32 0.5, %v375_v58 }
 0x210   : > { %v1904_v1 = vadd.f32 4.058712, %v1776_v47  ;;  %v754_v23 = vsub.f32 %v370_v6, %v626_v51  ;;  %v755_v33 = vsub.f32 %v371_v0, %v627_v11  ;;  %v630_v31 = vfloor.f32 %v502_v59 }
 0x211   : > { %v1905_v34 = vadd.f32 4.058712, %v1777_v19  ;;  %v756_v7 = vsub.f32 %v372_v32, %v628_v20  ;;  %v757_v26 = vsub.f32 %v373_v49, %v629_v25  ;;  %v631_v39 = vfloor.f32 %v503_v22 }
 0x212   : > { %v2032_v60 = vmul.f32 %v1904_v1, %v4084_v62  ;;  %v4119_v12 = vmul.f32 %v754_v23, %v754_v23  ;;  %v4121_v4 = vmul.f32 %v755_v33, %v755_v33  ;;  %v758_v42 = vsub.f32 %v374_v55, %v630_v31 }
 0x213   : > { %v2033_v37 = vmul.f32 %v1905_v34, %v4088_v52  ;;  %v4124_v48 = vmul.f32 %v756_v7, %v756_v7  ;;  %v4126_v63 = vmul.f32 %v757_v26, %v757_v26  ;;  %v759_v15 = vsub.f32 %v375_v58, %v631_v39 }
 0x214   : > { %v2160_v9 = vadd.f32 -4.934802, %v2032_v60  ;;  %v1010_v44 = vmul.f32 0.0019295743, %v4119_v12  ;;  %v1011_v50 = vmul.f32 0.0019295743, %v4121_v4  ;;  %v4130_v45 = vmul.f32 %v758_v42, %v758_v42 }
 0x215   : > { %v2161_v17 = vadd.f32 -4.934802, %v2033_v37  ;;  %v1012_v38 = vmul.f32 0.0019295743, %v4124_v48  ;;  %v1013_v40 = vmul.f32 0.0019295743, %v4126_v63  ;;  %v4134_v53 = vmul.f32 %v759_v15, %v759_v15 }
 0x216   : > { %v2288_v35 = vmul.f32 %v2160_v9, %v4084_v62  ;;  %v1138_v21 = vadd.f32 -0.02580689, %v1010_v44  ;;  %v1139_v24 = vadd.f32 -0.02580689, %v1011_v50  ;;  %v1014_v30 = vmul.f32 0.0019295743, %v4130_v45 }
 0x217   : > { %v2289_v56 = vmul.f32 %v2161_v17, %v4088_v52  ;;  %v1140_v27 = vadd.f32 -0.02580689, %v1012_v38  ;;  %v1141_v43 = vadd.f32 -0.02580689, %v1013_v40  ;;  %v1015_v46 = vmul.f32 0.0019295743, %v4134_v53 }
 0x218   : > { %v2416_v2 = vadd.f32 1.0, %v2288_v35  ;;  %v1266_v28 = vmul.f32 %v1138_v21, %v4119_v12  ;;  %v1267_v29 = vmul.f32 %v1139_v24, %v4121_v4  ;;  %v1142_v61 = vadd.f32 -0.02580689, %v1014_v30  ;;  %v248_v52 = vld [vmem:[%s3068_s30 + $0x370] sm:$0xff] }
 0x219   : > { %v2417_v62 = vadd.f32 1.0, %v2289_v56  ;;  %v1268_v5 = vmul.f32 %v1140_v27, %v4124_v48  ;;  %v1269_v18 = vmul.f32 %v1141_v43, %v4126_v63  ;;  %v1143_v36 = vadd.f32 -0.02580689, %v1015_v46 }
 0x21a   : > { %v2544_v6 = vmul.f32 %v2416_v2, %v2416_v2  ;;  %v1394_v0 = vadd.f32 0.23533063, %v1266_v28  ;;  %v1395_v41 = vadd.f32 0.23533063, %v1267_v29  ;;  %v1270_v10 = vmul.f32 %v1142_v61, %v4130_v45 }
 0x21b   : > { %v2545_v32 = vmul.f32 %v2417_v62, %v2417_v62  ;;  %v1396_v49 = vadd.f32 0.23533063, %v1268_v5  ;;  %v1397_v3 = vadd.f32 0.23533063, %v1269_v18  ;;  %v1271_v54 = vmul.f32 %v1143_v36, %v4134_v53 }
 0x21c   : > { %2672 = vst [vmem:[%s3152_s17 + $0x330] sm:$0xff] %v2544_v6  ;;  %v1522_v14 = vmul.f32 %v1394_v0, %v4119_v12  ;;  %v1523_v55 = vmul.f32 %v1395_v41, %v4121_v4  ;;  %v1398_v8 = vadd.f32 0.23533063, %v1270_v10  ;;  %v376_v57 = vmul.f32 0.5, %v248_v52 }
 0x21d   : > { %2673 = vst [vmem:[%s3152_s17 + $0x338] sm:$0xff] %v2545_v32  ;;  %v1524_v16 = vmul.f32 %v1396_v49, %v4124_v48  ;;  %v1525_v58 = vmul.f32 %v1397_v3, %v4126_v63  ;;  %v1399_v47 = vadd.f32 0.23533063, %v1271_v54  ;;  %v377_v51 = vmul.f32 0.5, %v249_v13 }
 0x21e   : > { %v1650_v11 = vadd.f32 -1.3352628, %v1522_v14  ;;  %v1651_v59 = vadd.f32 -1.3352628, %v1523_v55  ;;  %v1526_v19 = vmul.f32 %v1398_v8, %v4130_v45  ;;  %v504_v20 = vadd.f32 0.5, %v376_v57 }
 0x21f   : > { %v1652_v25 = vadd.f32 -1.3352628, %v1524_v16  ;;  %v1653_v22 = vadd.f32 -1.3352628, %v1525_v58  ;;  %v1527_v1 = vmul.f32 %v1399_v47, %v4134_v53  ;;  %v505_v23 = vadd.f32 0.5, %v377_v51 }
 0x220   : > { %v1778_v33 = vmul.f32 %v1650_v11, %v4119_v12  ;;  %v1779_v31 = vmul.f32 %v1651_v59, %v4121_v4  ;;  %v1654_v34 = vadd.f32 -1.3352628, %v1526_v19  ;;  %v632_v7 = vfloor.f32 %v504_v20  ;;  %v253_v11 = vld [vmem:[%s3068_s30 + $0x398] sm:$0xff] }
 0x221   : > { %v1780_v26 = vmul.f32 %v1652_v25, %v4124_v48  ;;  %v1781_v39 = vmul.f32 %v1653_v22, %v4126_v63  ;;  %v1655_v60 = vadd.f32 -1.3352628, %v1527_v1  ;;  %v633_v42 = vfloor.f32 %v505_v23 }
 0x222   : > { %v1906_v37 = vadd.f32 4.058712, %v1778_v33  ;;  %v1907_v15 = vadd.f32 4.058712, %v1779_v31  ;;  %v1782_v9 = vmul.f32 %v1654_v34, %v4130_v45  ;;  %v760_v44 = vsub.f32 %v376_v57, %v632_v7  ;;  %v251_v57 = vld [vmem:[%s3068_s30 + $0x388] sm:$0xff] }
 0x223   : > { %v1908_v50 = vadd.f32 4.058712, %v1780_v26  ;;  %v1909_v17 = vadd.f32 4.058712, %v1781_v39  ;;  %v1783_v38 = vmul.f32 %v1655_v60, %v4134_v53  ;;  %v761_v40 = vsub.f32 %v377_v51, %v633_v42  ;;  %v255_v31 = vld [vmem:[%s3068_s30 + $0x3a8] sm:$0xff] }
 0x224   : > { %v2034_v35 = vmul.f32 %v1906_v37, %v4119_v12  ;;  %v2035_v21 = vmul.f32 %v1907_v15, %v4121_v4  ;;  %v1910_v24 = vadd.f32 4.058712, %v1782_v9  ;;  %v4164_v30 = vmul.f32 %v760_v44, %v760_v44 }
 0x225   : > { %v2036_v56 = vmul.f32 %v1908_v50, %v4124_v48  ;;  %v2037_v27 = vmul.f32 %v1909_v17, %v4126_v63  ;;  %v1911_v43 = vadd.f32 4.058712, %v1783_v38  ;;  %v4168_v46 = vmul.f32 %v761_v40, %v761_v40 }
 0x226   : > { %v2162_v2 = vadd.f32 -4.934802, %v2034_v35  ;;  %v2163_v28 = vadd.f32 -4.934802, %v2035_v21  ;;  %v2038_v29 = vmul.f32 %v1910_v24, %v4130_v45  ;;  %v1016_v61 = vmul.f32 0.0019295743, %v4164_v30 }
 0x227   : > { %v2164_v62 = vadd.f32 -4.934802, %v2036_v56  ;;  %v2165_v5 = vadd.f32 -4.934802, %v2037_v27  ;;  %v2039_v18 = vmul.f32 %v1911_v43, %v4134_v53  ;;  %v1017_v36 = vmul.f32 0.0019295743, %v4168_v46 }
 0x228   : > { %v2290_v52 = vmul.f32 %v2162_v2, %v4119_v12  ;;  %v2291_v6 = vmul.f32 %v2163_v28, %v4121_v4  ;;  %v2166_v0 = vadd.f32 -4.934802, %v2038_v29  ;;  %v1144_v41 = vadd.f32 -0.02580689, %v1016_v61 }
 0x229   : > { %v2292_v10 = vmul.f32 %v2164_v62, %v4124_v48  ;;  %v2293_v13 = vmul.f32 %v2165_v5, %v4126_v63  ;;  %v2167_v32 = vadd.f32 -4.934802, %v2039_v18  ;;  %v1145_v49 = vadd.f32 -0.02580689, %v1017_v36  ;;  %v250_v63 = vld [vmem:[%s3068_s30 + $0x380] sm:$0xff] }
 0x22a   : > { %v2418_v3 = vadd.f32 1.0, %v2290_v52  ;;  %v2419_v54 = vadd.f32 1.0, %v2291_v6  ;;  %v2294_v14 = vmul.f32 %v2166_v0, %v4130_v45  ;;  %v1272_v12 = vmul.f32 %v1144_v41, %v4164_v30  ;;  %v252_v45 = vld [vmem:[%s3068_s30 + $0x390] sm:$0xff] }
 0x22b   : > { %v2420_v55 = vadd.f32 1.0, %v2292_v10  ;;  %v2421_v4 = vadd.f32 1.0, %v2293_v13  ;;  %v2295_v8 = vmul.f32 %v2167_v32, %v4134_v53  ;;  %v1273_v48 = vmul.f32 %v1145_v49, %v4168_v46  ;;  %v254_v53 = vld [vmem:[%s3068_s30 + $0x3a0] sm:$0xff] }
 0x22c   : > { %v2546_v16 = vmul.f32 %v2418_v3, %v2418_v3  ;;  %v2547_v58 = vmul.f32 %v2419_v54, %v2419_v54  ;;  %v2422_v47 = vadd.f32 1.0, %v2294_v14  ;;  %v1400_v51 = vadd.f32 0.23533063, %v1272_v12 }
 0x22d   : > { %v2548_v59 = vmul.f32 %v2420_v55, %v2420_v55  ;;  %v2549_v19 = vmul.f32 %v2421_v4, %v2421_v4  ;;  %v2423_v20 = vadd.f32 1.0, %v2295_v8  ;;  %v1401_v25 = vadd.f32 0.23533063, %v1273_v48 }
 0x22e   : > { %2674 = vst [vmem:[%s3152_s17 + $0x340] sm:$0xff] %v2546_v16  ;;  %2675 = vst [vmem:[%s3152_s17 + $0x348] sm:$0xff] %v2547_v58  ;;  %v2550_v22 = vmul.f32 %v2422_v47, %v2422_v47  ;;  %v1528_v1 = vmul.f32 %v1400_v51, %v4164_v30  ;;  %v378_v23 = vmul.f32 0.5, %v250_v63  ;;  %v379_v33 = vmul.f32 0.5, %v251_v57 }
 0x22f   : > { %2676 = vst [vmem:[%s3152_s17 + $0x350] sm:$0xff] %v2548_v59  ;;  %2677 = vst [vmem:[%s3152_s17 + $0x358] sm:$0xff] %v2549_v19  ;;  %v2551_v34 = vmul.f32 %v2423_v20, %v2423_v20  ;;  %v1529_v7 = vmul.f32 %v1401_v25, %v4168_v46  ;;  %v380_v26 = vmul.f32 0.5, %v252_v45  ;;  %v381_v39 = vmul.f32 0.5, %v253_v11 }
 0x230   : > { %2678 = vst [vmem:[%s3152_s17 + $0x360] sm:$0xff] %v2550_v22  ;;  %v1656_v60 = vadd.f32 -1.3352628, %v1528_v1  ;;  %v506_v42 = vadd.f32 0.5, %v378_v23  ;;  %v507_v37 = vadd.f32 0.5, %v379_v33  ;;  %v382_v15 = vmul.f32 0.5, %v254_v53 }
 0x231   : > { %2679 = vst [vmem:[%s3152_s17 + $0x368] sm:$0xff] %v2551_v34  ;;  %v1657_v9 = vadd.f32 -1.3352628, %v1529_v7  ;;  %v508_v44 = vadd.f32 0.5, %v380_v26  ;;  %v509_v50 = vadd.f32 0.5, %v381_v39  ;;  %v383_v17 = vmul.f32 0.5, %v255_v31 }
 0x232   : > { %v1784_v38 = vmul.f32 %v1656_v60, %v4164_v30  ;;  %v634_v40 = vfloor.f32 %v506_v42  ;;  %v635_v35 = vfloor.f32 %v507_v37  ;;  %v510_v21 = vadd.f32 0.5, %v382_v15  ;;  %v257_v7 = vld [vmem:[%s3068_s30 + $0x3b8] sm:$0xff] }
 0x233   : > { %v1785_v24 = vmul.f32 %v1657_v9, %v4168_v46  ;;  %v636_v56 = vfloor.f32 %v508_v44  ;;  %v637_v27 = vfloor.f32 %v509_v50  ;;  %v511_v43 = vadd.f32 0.5, %v383_v17 }
 0x234   : > { %v1912_v2 = vadd.f32 4.058712, %v1784_v38  ;;  %v762_v28 = vsub.f32 %v378_v23, %v634_v40  ;;  %v763_v29 = vsub.f32 %v379_v33, %v635_v35  ;;  %v638_v61 = vfloor.f32 %v510_v21 }
 0x235   : > { %v1913_v62 = vadd.f32 4.058712, %v1785_v24  ;;  %v764_v5 = vsub.f32 %v380_v26, %v636_v56  ;;  %v765_v18 = vsub.f32 %v381_v39, %v637_v27  ;;  %v639_v36 = vfloor.f32 %v511_v43 }
 0x236   : > { %v2040_v52 = vmul.f32 %v1912_v2, %v4164_v30  ;;  %v4199_v6 = vmul.f32 %v762_v28, %v762_v28  ;;  %v4201_v0 = vmul.f32 %v763_v29, %v763_v29  ;;  %v766_v41 = vsub.f32 %v382_v15, %v638_v61 }
 0x237   : > { %v2041_v10 = vmul.f32 %v1913_v62, %v4168_v46  ;;  %v4204_v13 = vmul.f32 %v764_v5, %v764_v5  ;;  %v4206_v32 = vmul.f32 %v765_v18, %v765_v18  ;;  %v767_v49 = vsub.f32 %v383_v17, %v639_v36 }
 0x238   : > { %v2168_v3 = vadd.f32 -4.934802, %v2040_v52  ;;  %v1018_v54 = vmul.f32 0.0019295743, %v4199_v6  ;;  %v1019_v14 = vmul.f32 0.0019295743, %v4201_v0  ;;  %v4210_v12 = vmul.f32 %v766_v41, %v766_v41 }
 0x239   : > { %v2169_v55 = vadd.f32 -4.934802, %v2041_v10  ;;  %v1020_v4 = vmul.f32 0.0019295743, %v4204_v13  ;;  %v1021_v8 = vmul.f32 0.0019295743, %v4206_v32  ;;  %v4214_v48 = vmul.f32 %v767_v49, %v767_v49 }
 0x23a   : > { %v2296_v63 = vmul.f32 %v2168_v3, %v4164_v30  ;;  %v1146_v57 = vadd.f32 -0.02580689, %v1018_v54  ;;  %v1147_v16 = vadd.f32 -0.02580689, %v1019_v14  ;;  %v1022_v58 = vmul.f32 0.0019295743, %v4210_v12 }
 0x23b   : > { %v2297_v47 = vmul.f32 %v2169_v55, %v4168_v46  ;;  %v1148_v51 = vadd.f32 -0.02580689, %v1020_v4  ;;  %v1149_v45 = vadd.f32 -0.02580689, %v1021_v8  ;;  %v1023_v11 = vmul.f32 0.0019295743, %v4214_v48 }
 0x23c   : > { %v2424_v59 = vadd.f32 1.0, %v2296_v63  ;;  %v1274_v19 = vmul.f32 %v1146_v57, %v4199_v6  ;;  %v1275_v20 = vmul.f32 %v1147_v16, %v4201_v0  ;;  %v1150_v25 = vadd.f32 -0.02580689, %v1022_v58  ;;  %v256_v46 = vld [vmem:[%s3068_s30 + $0x3b0] sm:$0xff] }
 0x23d   : > { %v2425_v30 = vadd.f32 1.0, %v2297_v47  ;;  %v1276_v53 = vmul.f32 %v1148_v51, %v4204_v13  ;;  %v1277_v22 = vmul.f32 %v1149_v45, %v4206_v32  ;;  %v1151_v1 = vadd.f32 -0.02580689, %v1023_v11 }
 0x23e   : > { %v2552_v23 = vmul.f32 %v2424_v59, %v2424_v59  ;;  %v1402_v33 = vadd.f32 0.23533063, %v1274_v19  ;;  %v1403_v31 = vadd.f32 0.23533063, %v1275_v20  ;;  %v1278_v34 = vmul.f32 %v1150_v25, %v4210_v12 }
 0x23f   : > { %v2553_v26 = vmul.f32 %v2425_v30, %v2425_v30  ;;  %v1404_v39 = vadd.f32 0.23533063, %v1276_v53  ;;  %v1405_v60 = vadd.f32 0.23533063, %v1277_v22  ;;  %v1279_v42 = vmul.f32 %v1151_v1, %v4214_v48 }
 0x240   : > { %2680 = vst [vmem:[%s3152_s17 + $0x370] sm:$0xff] %v2552_v23  ;;  %v1530_v37 = vmul.f32 %v1402_v33, %v4199_v6  ;;  %v1531_v15 = vmul.f32 %v1403_v31, %v4201_v0  ;;  %v1406_v9 = vadd.f32 0.23533063, %v1278_v34  ;;  %v384_v44 = vmul.f32 0.5, %v256_v46 }
 0x241   : > { %2681 = vst [vmem:[%s3152_s17 + $0x378] sm:$0xff] %v2553_v26  ;;  %v1532_v50 = vmul.f32 %v1404_v39, %v4204_v13  ;;  %v1533_v17 = vmul.f32 %v1405_v60, %v4206_v32  ;;  %v1407_v38 = vadd.f32 0.23533063, %v1279_v42  ;;  %v385_v40 = vmul.f32 0.5, %v257_v7 }
 0x242   : > { %v1658_v35 = vadd.f32 -1.3352628, %v1530_v37  ;;  %v1659_v21 = vadd.f32 -1.3352628, %v1531_v15  ;;  %v1534_v24 = vmul.f32 %v1406_v9, %v4210_v12  ;;  %v512_v56 = vadd.f32 0.5, %v384_v44 }
 0x243   : > { %v1660_v27 = vadd.f32 -1.3352628, %v1532_v50  ;;  %v1661_v43 = vadd.f32 -1.3352628, %v1533_v17  ;;  %v1535_v2 = vmul.f32 %v1407_v38, %v4214_v48  ;;  %v513_v28 = vadd.f32 0.5, %v385_v40 }
 0x244   : > { %v1786_v29 = vmul.f32 %v1658_v35, %v4199_v6  ;;  %v1787_v61 = vmul.f32 %v1659_v21, %v4201_v0  ;;  %v1662_v62 = vadd.f32 -1.3352628, %v1534_v24  ;;  %v640_v5 = vfloor.f32 %v512_v56  ;;  %v261_v35 = vld [vmem:[%s3068_s30 + $0x3d8] sm:$0xff] }
 0x245   : > { %v1788_v18 = vmul.f32 %v1660_v27, %v4204_v13  ;;  %v1789_v36 = vmul.f32 %v1661_v43, %v4206_v32  ;;  %v1663_v52 = vadd.f32 -1.3352628, %v1535_v2  ;;  %v641_v41 = vfloor.f32 %v513_v28 }
 0x246   : > { %v1914_v10 = vadd.f32 4.058712, %v1786_v29  ;;  %v1915_v49 = vadd.f32 4.058712, %v1787_v61  ;;  %v1790_v3 = vmul.f32 %v1662_v62, %v4210_v12  ;;  %v768_v54 = vsub.f32 %v384_v44, %v640_v5  ;;  %v259_v44 = vld [vmem:[%s3068_s30 + $0x3c8] sm:$0xff] }
 0x247   : > { %v1916_v14 = vadd.f32 4.058712, %v1788_v18  ;;  %v1917_v55 = vadd.f32 4.058712, %v1789_v36  ;;  %v1791_v4 = vmul.f32 %v1663_v52, %v4214_v48  ;;  %v769_v8 = vsub.f32 %v385_v40, %v641_v41  ;;  %v263_v61 = vld [vmem:[%s3068_s30 + $0x3e8] sm:$0xff] }
 0x248   : > { %v2042_v63 = vmul.f32 %v1914_v10, %v4199_v6  ;;  %v2043_v57 = vmul.f32 %v1915_v49, %v4201_v0  ;;  %v1918_v16 = vadd.f32 4.058712, %v1790_v3  ;;  %v4244_v58 = vmul.f32 %v768_v54, %v768_v54 }
 0x249   : > { %v2044_v47 = vmul.f32 %v1916_v14, %v4204_v13  ;;  %v2045_v51 = vmul.f32 %v1917_v55, %v4206_v32  ;;  %v1919_v45 = vadd.f32 4.058712, %v1791_v4  ;;  %v4248_v11 = vmul.f32 %v769_v8, %v769_v8 }
 0x24a   : > { %v2170_v59 = vadd.f32 -4.934802, %v2042_v63  ;;  %v2171_v19 = vadd.f32 -4.934802, %v2043_v57  ;;  %v2046_v20 = vmul.f32 %v1918_v16, %v4210_v12  ;;  %v1024_v25 = vmul.f32 0.0019295743, %v4244_v58 }
 0x24b   : > { %v2172_v30 = vadd.f32 -4.934802, %v2044_v47  ;;  %v2173_v53 = vadd.f32 -4.934802, %v2045_v51  ;;  %v2047_v22 = vmul.f32 %v1919_v45, %v4214_v48  ;;  %v1025_v1 = vmul.f32 0.0019295743, %v4248_v11 }
 0x24c   : > { %v2298_v46 = vmul.f32 %v2170_v59, %v4199_v6  ;;  %v2299_v23 = vmul.f32 %v2171_v19, %v4201_v0  ;;  %v2174_v33 = vadd.f32 -4.934802, %v2046_v20  ;;  %v1152_v31 = vadd.f32 -0.02580689, %v1024_v25 }
 0x24d   : > { %v2300_v34 = vmul.f32 %v2172_v30, %v4204_v13  ;;  %v2301_v7 = vmul.f32 %v2173_v53, %v4206_v32  ;;  %v2175_v26 = vadd.f32 -4.934802, %v2047_v22  ;;  %v1153_v39 = vadd.f32 -0.02580689, %v1025_v1  ;;  %v258_v32 = vld [vmem:[%s3068_s30 + $0x3c0] sm:$0xff] }
 0x24e   : > { %v2426_v60 = vadd.f32 1.0, %v2298_v46  ;;  %v2427_v42 = vadd.f32 1.0, %v2299_v23  ;;  %v2302_v37 = vmul.f32 %v2174_v33, %v4210_v12  ;;  %v1280_v6 = vmul.f32 %v1152_v31, %v4244_v58  ;;  %v260_v12 = vld [vmem:[%s3068_s30 + $0x3d0] sm:$0xff] }
 0x24f   : > { %v2428_v15 = vadd.f32 1.0, %v2300_v34  ;;  %v2429_v0 = vadd.f32 1.0, %v2301_v7  ;;  %v2303_v9 = vmul.f32 %v2175_v26, %v4214_v48  ;;  %v1281_v13 = vmul.f32 %v1153_v39, %v4248_v11  ;;  %v262_v48 = vld [vmem:[%s3068_s30 + $0x3e0] sm:$0xff] }
 0x250   : > { %v2554_v50 = vmul.f32 %v2426_v60, %v2426_v60  ;;  %v2555_v17 = vmul.f32 %v2427_v42, %v2427_v42  ;;  %v2430_v38 = vadd.f32 1.0, %v2302_v37  ;;  %v1408_v40 = vadd.f32 0.23533063, %v1280_v6 }
 0x251   : > { %v2556_v21 = vmul.f32 %v2428_v15, %v2428_v15  ;;  %v2557_v24 = vmul.f32 %v2429_v0, %v2429_v0  ;;  %v2431_v56 = vadd.f32 1.0, %v2303_v9  ;;  %v1409_v27 = vadd.f32 0.23533063, %v1281_v13 }
 0x252   : > { %2682 = vst [vmem:[%s3152_s17 + $0x380] sm:$0xff] %v2554_v50  ;;  %2683 = vst [vmem:[%s3152_s17 + $0x388] sm:$0xff] %v2555_v17  ;;  %v2558_v43 = vmul.f32 %v2430_v38, %v2430_v38  ;;  %v1536_v2 = vmul.f32 %v1408_v40, %v4244_v58  ;;  %v386_v28 = vmul.f32 0.5, %v258_v32  ;;  %v387_v29 = vmul.f32 0.5, %v259_v44 }
 0x253   : > { %2684 = vst [vmem:[%s3152_s17 + $0x390] sm:$0xff] %v2556_v21  ;;  %2685 = vst [vmem:[%s3152_s17 + $0x398] sm:$0xff] %v2557_v24  ;;  %v2559_v62 = vmul.f32 %v2431_v56, %v2431_v56  ;;  %v1537_v5 = vmul.f32 %v1409_v27, %v4248_v11  ;;  %v388_v18 = vmul.f32 0.5, %v260_v12  ;;  %v389_v36 = vmul.f32 0.5, %v261_v35 }
 0x254   : > { %2686 = vst [vmem:[%s3152_s17 + $0x3a0] sm:$0xff] %v2558_v43  ;;  %v1664_v52 = vadd.f32 -1.3352628, %v1536_v2  ;;  %v514_v41 = vadd.f32 0.5, %v386_v28  ;;  %v515_v10 = vadd.f32 0.5, %v387_v29  ;;  %v390_v49 = vmul.f32 0.5, %v262_v48 }
 0x255   : > { %2687 = vst [vmem:[%s3152_s17 + $0x3a8] sm:$0xff] %v2559_v62  ;;  %v1665_v3 = vadd.f32 -1.3352628, %v1537_v5  ;;  %v516_v54 = vadd.f32 0.5, %v388_v18  ;;  %v517_v14 = vadd.f32 0.5, %v389_v36  ;;  %v391_v55 = vmul.f32 0.5, %v263_v61 }
 0x256   : > { %v1792_v4 = vmul.f32 %v1664_v52, %v4244_v58  ;;  %v642_v8 = vfloor.f32 %v514_v41  ;;  %v643_v63 = vfloor.f32 %v515_v10  ;;  %v518_v57 = vadd.f32 0.5, %v390_v49  ;;  %v265_v5 = vld [vmem:[%s3068_s30 + $0x3f8] sm:$0xff] }
 0x257   : > { %v1793_v16 = vmul.f32 %v1665_v3, %v4248_v11  ;;  %v644_v47 = vfloor.f32 %v516_v54  ;;  %v645_v51 = vfloor.f32 %v517_v14  ;;  %v519_v45 = vadd.f32 0.5, %v391_v55 }
 0x258   : > { %v1920_v59 = vadd.f32 4.058712, %v1792_v4  ;;  %v770_v19 = vsub.f32 %v386_v28, %v642_v8  ;;  %v771_v20 = vsub.f32 %v387_v29, %v643_v63  ;;  %v646_v25 = vfloor.f32 %v518_v57 }
 0x259   : > { %v1921_v30 = vadd.f32 4.058712, %v1793_v16  ;;  %v772_v53 = vsub.f32 %v388_v18, %v644_v47  ;;  %v773_v22 = vsub.f32 %v389_v36, %v645_v51  ;;  %v647_v1 = vfloor.f32 %v519_v45 }
 0x25a   : > { %v2048_v46 = vmul.f32 %v1920_v59, %v4244_v58  ;;  %v4279_v23 = vmul.f32 %v770_v19, %v770_v19  ;;  %v4281_v33 = vmul.f32 %v771_v20, %v771_v20  ;;  %v774_v31 = vsub.f32 %v390_v49, %v646_v25 }
 0x25b   : > { %v2049_v34 = vmul.f32 %v1921_v30, %v4248_v11  ;;  %v4284_v7 = vmul.f32 %v772_v53, %v772_v53  ;;  %v4286_v26 = vmul.f32 %v773_v22, %v773_v22  ;;  %v775_v39 = vsub.f32 %v391_v55, %v647_v1 }
 0x25c   : > { %v2176_v60 = vadd.f32 -4.934802, %v2048_v46  ;;  %v1026_v42 = vmul.f32 0.0019295743, %v4279_v23  ;;  %v1027_v37 = vmul.f32 0.0019295743, %v4281_v33  ;;  %v4290_v6 = vmul.f32 %v774_v31, %v774_v31 }
 0x25d   : > { %v2177_v15 = vadd.f32 -4.934802, %v2049_v34  ;;  %v1028_v0 = vmul.f32 0.0019295743, %v4284_v7  ;;  %v1029_v9 = vmul.f32 0.0019295743, %v4286_v26  ;;  %v4294_v13 = vmul.f32 %v775_v39, %v775_v39 }
 0x25e   : > { %v2304_v32 = vmul.f32 %v2176_v60, %v4244_v58  ;;  %v1154_v44 = vadd.f32 -0.02580689, %v1026_v42  ;;  %v1155_v50 = vadd.f32 -0.02580689, %v1027_v37  ;;  %v1030_v17 = vmul.f32 0.0019295743, %v4290_v6 }
 0x25f   : > { %v2305_v38 = vmul.f32 %v2177_v15, %v4248_v11  ;;  %v1156_v40 = vadd.f32 -0.02580689, %v1028_v0  ;;  %v1157_v12 = vadd.f32 -0.02580689, %v1029_v9  ;;  %v1031_v35 = vmul.f32 0.0019295743, %v4294_v13 }
 0x260   : > { %v2432_v21 = vadd.f32 1.0, %v2304_v32  ;;  %v1282_v24 = vmul.f32 %v1154_v44, %v4279_v23  ;;  %v1283_v56 = vmul.f32 %v1155_v50, %v4281_v33  ;;  %v1158_v27 = vadd.f32 -0.02580689, %v1030_v17  ;;  %v264_v11 = vld [vmem:[%s3068_s30 + $0x3f0] sm:$0xff] }
 0x261   : > { %v2433_v58 = vadd.f32 1.0, %v2305_v38  ;;  %v1284_v48 = vmul.f32 %v1156_v40, %v4284_v7  ;;  %v1285_v43 = vmul.f32 %v1157_v12, %v4286_v26  ;;  %v1159_v2 = vadd.f32 -0.02580689, %v1031_v35 }
 0x262   : > { %v2560_v28 = vmul.f32 %v2432_v21, %v2432_v21  ;;  %v1410_v29 = vadd.f32 0.23533063, %v1282_v24  ;;  %v1411_v61 = vadd.f32 0.23533063, %v1283_v56  ;;  %v1286_v62 = vmul.f32 %v1158_v27, %v4290_v6 }
 0x263   : > { %v2561_v18 = vmul.f32 %v2433_v58, %v2433_v58  ;;  %v1412_v36 = vadd.f32 0.23533063, %v1284_v48  ;;  %v1413_v52 = vadd.f32 0.23533063, %v1285_v43  ;;  %v1287_v41 = vmul.f32 %v1159_v2, %v4294_v13 }
 0x264   : > { %2688 = vst [vmem:[%s3152_s17 + $0x3b0] sm:$0xff] %v2560_v28  ;;  %v1538_v10 = vmul.f32 %v1410_v29, %v4279_v23  ;;  %v1539_v49 = vmul.f32 %v1411_v61, %v4281_v33  ;;  %v1414_v3 = vadd.f32 0.23533063, %v1286_v62  ;;  %v392_v54 = vmul.f32 0.5, %v264_v11 }
 0x265   : > { %2689 = vst [vmem:[%s3152_s17 + $0x3b8] sm:$0xff] %v2561_v18  ;;  %v1540_v14 = vmul.f32 %v1412_v36, %v4284_v7  ;;  %v1541_v55 = vmul.f32 %v1413_v52, %v4286_v26  ;;  %v1415_v4 = vadd.f32 0.23533063, %v1287_v41  ;;  %v393_v8 = vmul.f32 0.5, %v265_v5 }
 0x266   : > { %v1666_v63 = vadd.f32 -1.3352628, %v1538_v10  ;;  %v1667_v57 = vadd.f32 -1.3352628, %v1539_v49  ;;  %v1542_v16 = vmul.f32 %v1414_v3, %v4290_v6  ;;  %v520_v47 = vadd.f32 0.5, %v392_v54 }
 0x267   : > { %v1668_v51 = vadd.f32 -1.3352628, %v1540_v14  ;;  %v1669_v45 = vadd.f32 -1.3352628, %v1541_v55  ;;  %v1543_v59 = vmul.f32 %v1415_v4, %v4294_v13  ;;  %v521_v19 = vadd.f32 0.5, %v393_v8 }
 0x268   : > { %v1794_v20 = vmul.f32 %v1666_v63, %v4279_v23  ;;  %v1795_v25 = vmul.f32 %v1667_v57, %v4281_v33  ;;  %v1670_v30 = vadd.f32 -1.3352628, %v1542_v16  ;;  %v648_v53 = vfloor.f32 %v520_v47 }
 0x269   : > { %v1796_v22 = vmul.f32 %v1668_v51, %v4284_v7  ;;  %v1797_v1 = vmul.f32 %v1669_v45, %v4286_v26  ;;  %v1671_v46 = vadd.f32 -1.3352628, %v1543_v59  ;;  %v649_v31 = vfloor.f32 %v521_v19 }
 0x26a   : > { %v1922_v34 = vadd.f32 4.058712, %v1794_v20  ;;  %v1923_v39 = vadd.f32 4.058712, %v1795_v25  ;;  %v1798_v60 = vmul.f32 %v1670_v30, %v4290_v6  ;;  %v776_v42 = vsub.f32 %v392_v54, %v648_v53 }
 0x26b   : > { %v1924_v37 = vadd.f32 4.058712, %v1796_v22  ;;  %v1925_v15 = vadd.f32 4.058712, %v1797_v1  ;;  %v1799_v0 = vmul.f32 %v1671_v46, %v4294_v13  ;;  %v777_v9 = vsub.f32 %v393_v8, %v649_v31 }
 0x26c   : > { %v2050_v32 = vmul.f32 %v1922_v34, %v4279_v23  ;;  %v2051_v44 = vmul.f32 %v1923_v39, %v4281_v33  ;;  %v1926_v50 = vadd.f32 4.058712, %v1798_v60  ;;  %v904_v17 = vmul.f32 %v776_v42, %v776_v42 }
 0x26d   : > { %v2052_v38 = vmul.f32 %v1924_v37, %v4284_v7  ;;  %v2053_v40 = vmul.f32 %v1925_v15, %v4286_v26  ;;  %v1927_v12 = vadd.f32 4.058712, %v1799_v0  ;;  %v905_v35 = vmul.f32 %v777_v9, %v777_v9 }
 0x26e   : > { %v2178_v21 = vadd.f32 -4.934802, %v2050_v32  ;;  %v2179_v24 = vadd.f32 -4.934802, %v2051_v44  ;;  %v2054_v56 = vmul.f32 %v1926_v50, %v4290_v6  ;;  %v1032_v27 = vmul.f32 0.0019295743, %v904_v17 }
 0x26f   : > { %v2180_v58 = vadd.f32 -4.934802, %v2052_v38  ;;  %v2181_v48 = vadd.f32 -4.934802, %v2053_v40  ;;  %v2055_v43 = vmul.f32 %v1927_v12, %v4294_v13  ;;  %v1033_v2 = vmul.f32 0.0019295743, %v905_v35 }
 0x270   : > { %v2306_v11 = vmul.f32 %v2178_v21, %v4279_v23  ;;  %v2307_v28 = vmul.f32 %v2179_v24, %v4281_v33  ;;  %v2182_v29 = vadd.f32 -4.934802, %v2054_v56  ;;  %v1160_v61 = vadd.f32 -0.02580689, %v1032_v27 }
 0x271   : > { %v2308_v62 = vmul.f32 %v2180_v58, %v4284_v7  ;;  %v2309_v5 = vmul.f32 %v2181_v48, %v4286_v26  ;;  %v2183_v18 = vadd.f32 -4.934802, %v2055_v43  ;;  %v1161_v36 = vadd.f32 -0.02580689, %v1033_v2 }
 0x272   : > { %v2434_v52 = vadd.f32 1.0, %v2306_v11  ;;  %v2435_v41 = vadd.f32 1.0, %v2307_v28  ;;  %v2310_v10 = vmul.f32 %v2182_v29, %v4290_v6  ;;  %v1288_v49 = vmul.f32 %v1160_v61, %v904_v17 }
 0x273   : > { %v2436_v3 = vadd.f32 1.0, %v2308_v62  ;;  %v2437_v23 = vadd.f32 1.0, %v2309_v5  ;;  %v2311_v33 = vmul.f32 %v2183_v18, %v4294_v13  ;;  %v1289_v54 = vmul.f32 %v1161_v36, %v905_v35 }
 0x274   : > { %v2562_v14 = vmul.f32 %v2434_v52, %v2434_v52  ;;  %v2563_v7 = vmul.f32 %v2435_v41, %v2435_v41  ;;  %v2438_v26 = vadd.f32 1.0, %v2310_v10  ;;  %v1416_v55 = vadd.f32 0.23533063, %v1288_v49 }
 0x275   : > { %v2564_v4 = vmul.f32 %v2436_v3, %v2436_v3  ;;  %v2565_v8 = vmul.f32 %v2437_v23, %v2437_v23  ;;  %v2439_v63 = vadd.f32 1.0, %v2311_v33  ;;  %v1417_v57 = vadd.f32 0.23533063, %v1289_v54 }
 0x276   : > { %2690 = vst [vmem:[%s3152_s17 + $0x3c0] sm:$0xff] %v2562_v14  ;;  %2691 = vst [vmem:[%s3152_s17 + $0x3c8] sm:$0xff] %v2563_v7  ;;  %v2566_v6 = vmul.f32 %v2438_v26, %v2438_v26  ;;  %v1544_v16 = vmul.f32 %v1416_v55, %v904_v17 }
 0x277   : > { %2692 = vst [vmem:[%s3152_s17 + $0x3d0] sm:$0xff] %v2564_v4  ;;  %2693 = vst [vmem:[%s3152_s17 + $0x3d8] sm:$0xff] %v2565_v8  ;;  %v2567_v47 = vmul.f32 %v2439_v63, %v2439_v63  ;;  %v1545_v13 = vmul.f32 %v1417_v57, %v905_v35 }
 0x278   : > { %2694 = vst [vmem:[%s3152_s17 + $0x3e0] sm:$0xff] %v2566_v6  ;;  %v1672_v51 = vadd.f32 -1.3352628, %v1544_v16 }
 0x279   : > { %2695 = vst [vmem:[%s3152_s17 + $0x3e8] sm:$0xff] %v2567_v47  ;;  %v1673_v45 = vadd.f32 -1.3352628, %v1545_v13 }
 0x27a   : > { %v1800_v59 = vmul.f32 %v1672_v51, %v904_v17 }
 0x27b   : > { %v1801_v19 = vmul.f32 %v1673_v45, %v905_v35 }
 0x27c   : > { %v1928_v20 = vadd.f32 4.058712, %v1800_v59 }
 0x27d   : > { %v1929_v25 = vadd.f32 4.058712, %v1801_v19 }
 0x27e   : > { %v2056_v30 = vmul.f32 %v1928_v20, %v904_v17 }
 0x27f   : > { %v2057_v53 = vmul.f32 %v1929_v25, %v905_v35 }
 0x280   : > { %v2184_v22 = vadd.f32 -4.934802, %v2056_v30 }
 0x281   : > { %v2185_v1 = vadd.f32 -4.934802, %v2057_v53 }
 0x282   : > { %v2312_v46 = vmul.f32 %v2184_v22, %v904_v17 }
 0x283   : > { %v2313_v31 = vmul.f32 %v2185_v1, %v905_v35 }
 0x284   : > { %v2440_v34 = vadd.f32 1.0, %v2312_v46 }
 0x285   : > { %v2441_v39 = vadd.f32 1.0, %v2313_v31 }
 0x286   : > { %v2568_v60 = vmul.f32 %v2440_v34, %v2440_v34 }
 0x287   : > { %v2569_v42 = vmul.f32 %v2441_v39, %v2441_v39 }
 0x288   : > { %2696 = vst [vmem:[%s3152_s17 + $0x3f0] sm:$0xff] %v2568_v60 }
 0x289   : > { %2697 = vst [vmem:[%s3152_s17 + $0x3f8] sm:$0xff] %v2569_v42 }
 0x28a   : > { %2897 = shalt.err (!%p2894_p9)
}
 0x28b   : > { %s2898_s13 = scalar_lea.hbm %s4345_s2, 16384  ;;  %s2902_s20 = scalar_lea.hbm %s4392_s1, 65536 }
 0x28c   : > { %p2899_p13 = scmp.ne.s32.totalorder %s4345_s2, %s2898_s13  ;;  %p2903_p2 = scmp.lt.s32.totalorder %s4345_s2, %s4392_s1 }
 0x28d   : > { %p2904_p3 = scmp.lt.s32.totalorder %s2902_s20, %s2898_s13 }
 0x28e   : > { %p2900_p1 = pnand %p2899_p13, %p4401_p11 }
 0x28f   : > { %p2905_p6 = por %p2904_p3, %p2903_p2 }
 0x290   : > { %p2901_p0 = pneg %p2900_p1 }
 0x292   : > { %p2906_p10 = pnand %p2905_p6, %p2901_p0 }
 0x294   : > { %2909 = shalt.err (!%p2906_p10)
}
 0x295   : > { %s2954_s24 = smov 2048   ;;  %s2955_s26 = smov 128  }
 0x296   : > { %2808 = dma.vmem_to_hbm [thread:$0]  (%p4401_p11), %s4347_s27, 16384, %s4345_s2, %s2699_s3, %s2954_s24, %s2954_s24, %s2955_s26  }
 0x297 PF: > { %p2819_p12 = scmp.ge.s32.totalorder %s2948_s9, 2  ;;  %s2728_s30 = sand.u32 1, %s2936_s6  }
 0x298   : > { %p4402_p4 = scmp.ne.s32.totalorder %s4398_s19, 0  ;;  %s2729_s17 = scalar_lea.sflag [#allocation4], %s2728_s30 }
 0x29a   : > { %p2815_p5 = pnand %p2819_p12, %p4402_p4 }
 0x29c   : > { %p2816_p7 = pneg %p2815_p5 }
 0x29e   : > { %2931 = dma.done.wait (%p2816_p7), %s2729_s17, 16384  }
 0x29f   : > { %2933 = vsyncadd (%p2816_p7), %s2729_s17, 4294950912  ;;  %p14_p8 = scmp.ge.s32.totalorder %s2991_s12, 6   ;;  %s4403_s6 = smov %s2940_s7 }
 0x2a0   : > { %s4404_s7 = smov %s2944_s8  ;;  %s4405_s8 = smov %s3003_s15 }
 0x2a1   : > { %s4406_s9 = smov %s2991_s12  ;;  %16 = sbr.rel (!%p14_p8) target bundleno = 5 (0x5), region = 69 }
 0x2a6   :  { %2734 = vsyncpa [#allocation3], 1 }
 0x2a7   :  { %2736 = vsyncpa [#allocation3 + $0x1], 1 }
 0x2a8   :  { %2737 = vsyncpa [#allocation4], 1 }
 0x2a9   :  { %2739 = vsyncpa [#allocation4 + $0x1], 1 }

</bundles_post_ra>
